<compile_context>
chip_gen: v7x
topology: tpu7x:2x2x1
jax: 0.10.0
libtpu: 0.0.40
codegen_flags: <defaults>
</compile_context>

<pallas_src>
import functools

import jax
import jax.numpy as jnp
from jax.experimental import pallas as pl
from jax.experimental.pallas import tpu as pltpu

LN_EPS = 1e-6          # torchvision ViT uses LayerNorm(eps=1e-6)
PATCH = 16
NEG_INF = -1e30


def _layernorm(z, g, b):
    mu = jnp.mean(z, axis=-1, keepdims=True)
    zc = z - mu
    var = jnp.mean(zc * zc, axis=-1, keepdims=True)
    return zc * jax.lax.rsqrt(var + LN_EPS) * g + b


def _mm(a, w, cd):
    """(M, K) @ (K, N) MXU matmul in compute dtype `cd`, f32 accumulation."""
    return jnp.dot(a.astype(cd), w.astype(cd), preferred_element_type=jnp.float32)


def vit_encoder_kernel(
    patch_ref, wp_ref, add_ref,
    ln1g_ref, ln1b_ref, wqkv_ref, bqkv_ref, wo_ref, bo_ref,
    ln2g_ref, ln2b_ref, w1_ref, b1_ref, w2_ref, b2_ref,
    out_ref, x_scratch,
    *, n_heads, t_real, compute_dtype, exp_dtype,
):
    l = pl.program_id(1)
    n_layers = pl.num_programs(1)
    cd = compute_dtype

    Bc, Tp, C = x_scratch.shape
    H = n_heads
    hd = C // H
    M = Bc * Tp
    P = patch_ref.shape[-1]

    # ---- embedding (once per batch block): patch projection + class token + pos embedding.
    #      Row 0 of the patch block is a zero patch -> class token; rows >= t_real are padding.
    @pl.when(l == 0)
    def _embed():
        tok = _mm(patch_ref[...].reshape(M, P), wp_ref[...], cd)          # (M, C) f32
        x_scratch[...] = tok.reshape(Bc, Tp, C) + add_ref[...]            # add = [cls+pos0; pos+conv_b; 0]

    x = x_scratch[...].reshape(M, C)                                      # f32 residual stream

    # ---- LayerNorm 1 + fused QKV projection (columns pre-permuted head-major, q-scale folded)
    xln = _layernorm(x, ln1g_ref[0], ln1b_ref[0])
    qkv = (_mm(xln, wqkv_ref[0], cd) + bqkv_ref[0]).astype(cd)            # (M, 3C) in compute dtype
    qkv = qkv.reshape(Bc, Tp, 3 * C)

    # ---- head-batched packing: H per-head [q|k|v] blocks -> ONE leading-axis concat
    qkvh = jnp.concatenate(
        [qkv[:, :, h * 3 * hd:(h + 1) * 3 * hd] for h in range(H)], axis=0)   # (H*Bc, Tp, 3hd)
    qh = qkvh[:, :, :hd]
    kh = qkvh[:, :, hd:2 * hd]
    vh = qkvh[:, :, 2 * hd:]

    # ---- attention: batched MXU einsums, f32 stats, flash-style post-PV normalization
    s = jnp.einsum("zqd,zkd->zqk", qh, kh, preferred_element_type=jnp.float32)  # (Z, Tp, Tp) f32
    if Tp > t_real:   # mask padded key columns
        col = jax.lax.broadcasted_iota(jnp.int32, (1, 1, Tp), 2)
        s = s + jnp.where(col < t_real, 0.0, NEG_INF).astype(jnp.float32)
    m = jnp.max(s, axis=-1, keepdims=True)
    e = jnp.exp((s - m).astype(exp_dtype))                                 # bf16 exp on v6e/v7x only
    rowsum = jnp.sum(e.astype(jnp.float32), axis=-1, keepdims=True)       # stats stay f32
    ctx = jnp.einsum("zqk,zkd->zqd", e.astype(cd), vh,
                     preferred_element_type=jnp.float32)                   # (Z, Tp, hd) f32
    ctx = (ctx * pl.reciprocal(rowsum, approx=True)).astype(cd)

    # ---- merge heads (single lane concat, compute dtype) + full-depth output projection
    attn = jnp.concatenate(
        [ctx[h * Bc:(h + 1) * Bc].reshape(M, hd) for h in range(H)], axis=-1)  # (M, C)
    attn = _mm(attn, wo_ref[0], cd) + bo_ref[0]

    x2 = x + attn                                                          # residual 1 (dropout = id)

    # ---- MLP
    y = _layernorm(x2, ln2g_ref[0], ln2b_ref[0])
    h1 = _mm(y, w1_ref[0], cd) + b1_ref[0]
    # TODO(synk): torch nn.GELU is erf-exact; tanh approximation used (guaranteed Mosaic lowering,
    # EUP path); covered by the test tolerance.
    h1 = jax.nn.gelu(h1, approximate=True)
    x_new = x2 + _mm(h1.astype(cd), w2_ref[0], cd) + b2_ref[0]             # residual 2 (dropout = id)

    x3 = x_new.reshape(Bc, Tp, C)
    x_scratch[...] = x3

    # ---- module output = class-token row only, written once at the last layer
    @pl.when(l == n_layers - 1)
    def _write():
        out_ref[...] = x3[:, 0:1, :]


def _tpu_generation():
    try:
        kind = jax.devices()[0].device_kind.lower()
    except Exception:
        return 6
    for gen in (7, 6, 5, 4, 3, 2):
        if (f"v{gen}" in kind) or (f"tpu{gen}" in kind):
            return gen
    return 6


def _vmem_budget_bytes(gen):
    # v7x: 64 MiB / TensorCore physical -> leave headroom; v4/v5e/v6e: 128 MiB physical
    # (explicit limit is mandatory on v5e where the scoped default is only 16 MiB).
    return (56 if gen >= 7 else 100) * 1024 * 1024


def _permute_qkv_heads(wqkv, bqkv, n_heads, scale):
    """Reorder (C, 3C) QKV columns head-major ([q_h | k_h | v_h] blocks); fold q scale."""
    C = wqkv.shape[0]
    hd = C // n_heads
    wq, wk, wv = wqkv[:, :C] * scale, wqkv[:, C:2 * C], wqkv[:, 2 * C:]
    bq, bk, bv = bqkv[..., :C] * scale, bqkv[..., C:2 * C], bqkv[..., 2 * C:]
    w = jnp.concatenate([wq.reshape(C, n_heads, hd),
                         wk.reshape(C, n_heads, hd),
                         wv.reshape(C, n_heads, hd)], axis=2).reshape(C, 3 * C)
    b = jnp.concatenate([bq.reshape(1, n_heads, hd),
                         bk.reshape(1, n_heads, hd),
                         bv.reshape(1, n_heads, hd)], axis=2).reshape(1, 3 * C)
    return w, b


def img_encoder_forward(img, params, *, n_heads, compute_dtype=jnp.bfloat16, block_b=None):
    conv_w, conv_b, cls_tok, pos_emb, layer_params = params
    B, Cin, Himg, Wimg = img.shape
    C = conv_w.shape[0]
    p = conv_w.shape[-1]
    assert Himg % p == 0 and Wimg % p == 0 and C % n_heads == 0
    gh, gw = Himg // p, Wimg // p
    N = gh * gw
    T = N + 1                                  # real tokens (class token + patches)
    Tp = ((T + 7) // 8) * 8                    # sublane-aligned token count (padded keys masked)
    P = Cin * p * p
    L = len(layer_params)
    hd = C // n_heads
    mlp_dim = layer_params[0][8].shape[1]

    gen = _tpu_generation()
    budget = _vmem_budget_bytes(gen)
    # bf16 exp only where EUP/VPU have a bf16 path (v6e / v7x); never on v5e or older.
    exp_dtype = compute_dtype if (compute_dtype == jnp.bfloat16 and gen >= 6) else jnp.float32

    # ---- wrapper-side layout plumbing --------------------------------------------------
    # patchify; fold the class token into a zero patch row + additive embedding; pad to Tp.
    patches = img.reshape(B, Cin, gh, p, gw, p).transpose(0, 2, 4, 1, 3, 5).reshape(B, N, P)
    patches_ext = jnp.zeros((B, Tp, P), compute_dtype)
    patches_ext = patches_ext.at[:, 1:T, :].set(patches.astype(compute_dtype))

    w_patch = conv_w.reshape(C, P).T.astype(compute_dtype)                 # (P, C)
    pos2, cls2 = pos_emb[0], cls_tok[0]                                    # (T, C), (1, C)
    emb_add = jnp.zeros((Tp, C), jnp.float32)
    emb_add = emb_add.at[0].set(cls2[0] + pos2[0])
    emb_add = emb_add.at[1:T].set(pos2[1:] + conv_b[None, :])

    # per-layer params: permute QKV head-major (q scale folded), stack along a layer axis.
    scale = hd ** -0.5
    per_layer = []
    for lp in layer_params:
        (ln1g, ln1b, wqkv, bqkv, wo, bo, ln2g, ln2b, w1, b1, w2, b2) = lp
        wqkv_p, bqkv_p = _permute_qkv_heads(wqkv, bqkv, n_heads, scale)
        per_layer.append((ln1g, ln1b, wqkv_p, bqkv_p, wo, bo, ln2g, ln2b, w1, b1, w2, b2))
    stacked = [jnp.stack([lp[i] for lp in per_layer], axis=0) for i in range(12)]
    (ln1g, ln1b, wqkv, bqkv, wo, bo, ln2g, ln2b, w1, b1, w2, b2) = stacked
    # matmul weights in compute dtype (halves streamed-weight DMA on bf16); LN/bias stay f32.
    wqkv = wqkv.astype(compute_dtype)
    wo = wo.astype(compute_dtype)
    w1 = w1.astype(compute_dtype)
    w2 = w2.astype(compute_dtype)
    layer_arrays = [ln1g, ln1b, wqkv, bqkv, wo, bo, ln2g, ln2b, w1, b1, w2, b2]

    # ---- VMEM-derived batch block size + generation-aware vmem limit --------------------
    wbytes = jnp.dtype(compute_dtype).itemsize
    ebytes = jnp.dtype(exp_dtype).itemsize
    layer_w_bytes = (C * 3 * C + C * C + 2 * C * mlp_dim) * wbytes + (3 * C + 6 * C + mlp_dim) * 4
    fixed = 2 * layer_w_bytes                    # double-buffered streamed layer params
    fixed += P * C * wbytes + Tp * C * 4         # l-invariant inputs (single-buffered)
    fixed += 2 * 1024 * 1024                     # slack for compiler-internal scratch
    per_b = Tp * P * wbytes                      # patches block
    per_b += Tp * C * 4                          # residual-stream scratch
    per_b += Tp * 3 * C * (4 + wbytes)           # qkv + head-packed copy
    per_b += n_heads * Tp * Tp * (4 + ebytes)    # scores + exp'd scores
    per_b += Tp * mlp_dim * (4 + wbytes)         # MLP hidden
    per_b += 4 * Tp * C * 4                      # xln / attn / residual temporaries
    if block_b is None:
        block_b = 1
        for cand in range(1, min(B, 8) + 1):
            if B % cand:
                continue
            if B >= 2 and (B // cand) < 2:       # keep >= 2 steps on the parallel axis
                continue
            if fixed + cand * per_b <= budget:
                block_b = cand
    assert B % block_b == 0
    nb = B // block_b

    kernel = functools.partial(
        vit_encoder_kernel, n_heads=n_heads, t_real=T,
        compute_dtype=compute_dtype, exp_dtype=exp_dtype)

    def layer_spec(a):
        return pl.BlockSpec((1,) + a.shape[1:], lambda b, l: (l, 0, 0))

    def build_in_specs(single_buffer):
        extra = dict(pipeline_mode=pl.Buffered(1)) if single_buffer else {}
        patches_spec = pl.BlockSpec((block_b, Tp, P), lambda b, l: (b, 0, 0), **extra)
        wp_spec = pl.BlockSpec(w_patch.shape, lambda b, l: (0, 0), **extra)
        add_spec = pl.BlockSpec(emb_add.shape, lambda b, l: (0, 0), **extra)
        return [patches_spec, wp_spec, add_spec] + [layer_spec(a) for a in layer_arrays]

    def run(single_buffer):
        return pl.pallas_call(
            kernel,
            out_shape=jax.ShapeDtypeStruct((B, 1, C), jnp.float32),
            grid_spec=pltpu.PrefetchScalarGridSpec(
                num_scalar_prefetch=0,
                grid=(nb, L),
                in_specs=build_in_specs(single_buffer),
                out_specs=pl.BlockSpec((block_b, 1, C), lambda b, l: (b, 0, 0)),
                scratch_shapes=[pltpu.VMEM((block_b, Tp, C), jnp.float32)],
            ),
            compiler_params=pltpu.CompilerParams(
                dimension_semantics=("parallel", "arbitrary"),
                vmem_limit_bytes=budget,
            ),
        )(patches_ext, w_patch, emb_add, *layer_arrays)

    try:
        out = run(True)        # single-buffer l-invariant inputs (VMEM saver, esp. v7x)
    except Exception:
        out = run(False)       # pipeline_mode=pl.Buffered(1) unavailable: default buffering

    return out[:, 0, :]        # (B, C): ImgEncoder output = class-token embedding


def reference_forward(img, conv_w, conv_b, cls_tok, pos_emb, layer_params, n_heads):
    """Pure-JAX replica of the PyTorch forward (eval mode, exact-erf GELU) for verification."""
    p = conv_w.shape[-1]
    B = img.shape[0]
    C = conv_w.shape[0]
    x = jax.lax.conv_general_dilated(
        img, conv_w, window_strides=(p, p), padding="VALID",
        dimension_numbers=("NCHW", "OIHW", "NCHW"))                        # (B, C, gh, gw)
    x = x.reshape(B, C, -1).transpose(0, 2, 1) + conv_b[None, None, :]      # (B, N, C)
    x = jnp.concatenate([jnp.broadcast_to(cls_tok, (B, 1, C)), x], axis=1) + pos_emb
    T = x.shape[1]
    hd = C // n_heads

    def ln(z, g, b):
        mu = jnp.mean(z, -1, keepdims=True)
        var = jnp.mean((z - mu) ** 2, -1, keepdims=True)
        return (z - mu) / jnp.sqrt(var + LN_EPS) * g + b

    for (ln1g, ln1b, wqkv, bqkv, wo, bo, ln2g, ln2b, w1, b1, w2, b2) in layer_params:
        y = ln(x, ln1g, ln1b)
        qkv = y @ wqkv + bqkv
        q, k, v = qkv[..., :C], qkv[..., C:2 * C], qkv[..., 2 * C:]
        q = q.reshape(B, T, n_heads, hd)
        k = k.reshape(B, T, n_heads, hd)
        v = v.reshape(B, T, n_heads, hd)
        s = jnp.einsum("bqhd,bkhd->bhqk", q, k) * (hd ** -0.5)
        a = jnp.einsum("bhqk,bkhd->bqhd", jax.nn.softmax(s, -1), v).reshape(B, T, C)
        x = x + (a @ wo + bo)
        y2 = ln(x, ln2g, ln2b)
        h = jax.nn.gelu(y2 @ w1 + b1, approximate=False)
        x = x + (h @ w2 + b2)
    return x[:, 0, :]          # no final encoder LayerNorm (layers are iterated directly)


if __name__ == "__main__":
    # Small ViT-B/16-like config: 32x32 image -> 4 patches (+1 cls token = 5 tokens, padded
    # to 8 inside the kernel), hidden 128, 2 heads (head_dim 64, same as real ViT-B/16),
    # MLP 4x, 2 layers.
    B, Cin, Himg, Wimg = 2, 3, 32, 32
    C, n_heads, n_layers = 128, 2, 2
    mlp_dim = 4 * C
    T = (Himg // PATCH) * (Wimg // PATCH) + 1

    key = jax.random.PRNGKey(0)
    keys = iter(jax.random.split(key, 8 + 12 * n_layers))

    def init(k, shape, scale=0.05):
        return scale * jax.random.normal(k, shape, jnp.float32)

    img = jax.random.normal(next(keys), (B, Cin, Himg, Wimg), jnp.float32)
    # TODO(synk): pretrained torchvision vit_b_16 weights cannot be loaded in-script;
    # deterministic random weights stand in (forward-pass structure is identical).
    conv_w = init(next(keys), (C, Cin, PATCH, PATCH))
    conv_b = init(next(keys), (C,))
    cls_tok = init(next(keys), (1, 1, C), 0.02)
    pos_emb = init(next(keys), (1, T, C), 0.02)

    layer_params = []
    for _ in range(n_layers):
        ln1g = 1.0 + init(next(keys), (1, C), 0.02)
        ln1b = init(next(keys), (1, C), 0.02)
        wqkv = init(next(keys), (C, 3 * C))
        bqkv = init(next(keys), (1, 3 * C), 0.02)
        wo = init(next(keys), (C, C))
        bo = init(next(keys), (1, C), 0.02)
        ln2g = 1.0 + init(next(keys), (1, C), 0.02)
        ln2b = init(next(keys), (1, C), 0.02)
        w1 = init(next(keys), (C, mlp_dim))
        b1 = init(next(keys), (1, mlp_dim), 0.02)
        w2 = init(next(keys), (mlp_dim, C))
        b2 = init(next(keys), (1, C), 0.02)
        layer_params.append((ln1g, ln1b, wqkv, bqkv, wo, bo, ln2g, ln2b, w1, b1, w2, b2))

    params = (conv_w, conv_b, cls_tok, pos_emb, layer_params)

    ref = jax.block_until_ready(
        reference_forward(img, conv_w, conv_b, cls_tok, pos_emb, layer_params, n_heads))

    # f32 compute path: tight-ish check (tolerance covers tanh-GELU and approx-reciprocal).
    out_f32 = jax.block_until_ready(
        img_encoder_forward(img, params, n_heads=n_heads, compute_dtype=jnp.float32))
    assert out_f32.shape == (B, C)
    err32 = float(jnp.max(jnp.abs(out_f32 - ref)))
    assert jnp.allclose(out_f32, ref, atol=2e-2, rtol=2e-2), f"f32 max abs err {err32}"

    # bf16 matmul path (perf configuration): f32 accumulation, looser tolerance.
    out_bf16 = jax.block_until_ready(
        img_encoder_forward(img, params, n_heads=n_heads, compute_dtype=jnp.bfloat16))
    assert out_bf16.shape == (B, C)
    err16 = float(jnp.max(jnp.abs(out_bf16 - ref)))
    assert jnp.allclose(out_bf16, ref, atol=8e-2, rtol=8e-2), f"bf16 max abs err {err16}"

    print("KERNEL_OK")
</pallas_src>

<mosaic_0001>
module attributes {stable_mosaic.version = 11 : i64} {
  func.func @vit_encoder_kernel(%arg0: i32, %arg1: i32, %arg2: memref<1x8x768xf32, #tpu.memory_space<vmem>>, %arg3: memref<768x128xf32, #tpu.memory_space<vmem>>, %arg4: memref<8x128xf32, #tpu.memory_space<vmem>>, %arg5: memref<1x1x128xf32, #tpu.memory_space<vmem>>, %arg6: memref<1x1x128xf32, #tpu.memory_space<vmem>>, %arg7: memref<1x128x384xf32, #tpu.memory_space<vmem>>, %arg8: memref<1x1x384xf32, #tpu.memory_space<vmem>>, %arg9: memref<1x128x128xf32, #tpu.memory_space<vmem>>, %arg10: memref<1x1x128xf32, #tpu.memory_space<vmem>>, %arg11: memref<1x1x128xf32, #tpu.memory_space<vmem>>, %arg12: memref<1x1x128xf32, #tpu.memory_space<vmem>>, %arg13: memref<1x128x512xf32, #tpu.memory_space<vmem>>, %arg14: memref<1x1x512xf32, #tpu.memory_space<vmem>>, %arg15: memref<1x512x128xf32, #tpu.memory_space<vmem>>, %arg16: memref<1x1x128xf32, #tpu.memory_space<vmem>>, %arg17: memref<1x1x128xf32, #tpu.memory_space<vmem>>, %arg18: memref<1x8x128xf32, #tpu.memory_space<vmem>>) attributes {dimension_semantics = [#tpu.dimension_semantics<parallel>, #tpu.dimension_semantics<arbitrary>], iteration_bounds = array<i64: 2, 2>, scalar_prefetch = 0 : i64, scratch_operands = 1 : i64, tpu.core_type = #tpu.core_type<tc>, window_params = [{pipeline_mode = #tpu.pipeline_mode<synchronous>, transform_indices = @transform_0, window_bounds = array<i64: 1, 8, 768>}, {pipeline_mode = #tpu.pipeline_mode<synchronous>, transform_indices = @transform_1, window_bounds = array<i64: 768, 128>}, {pipeline_mode = #tpu.pipeline_mode<synchronous>, transform_indices = @transform_2, window_bounds = array<i64: 8, 128>}, {transform_indices = @transform_3, window_bounds = array<i64: 1, 1, 128>}, {transform_indices = @transform_4, window_bounds = array<i64: 1, 1, 128>}, {transform_indices = @transform_5, window_bounds = array<i64: 1, 128, 384>}, {transform_indices = @transform_6, window_bounds = array<i64: 1, 1, 384>}, {transform_indices = @transform_7, window_bounds = array<i64: 1, 128, 128>}, {transform_indices = @transform_8, window_bounds = array<i64: 1, 1, 128>}, {transform_indices = @transform_9, window_bounds = array<i64: 1, 1, 128>}, {transform_indices = @transform_10, window_bounds = array<i64: 1, 1, 128>}, {transform_indices = @transform_11, window_bounds = array<i64: 1, 128, 512>}, {transform_indices = @transform_12, window_bounds = array<i64: 1, 1, 512>}, {transform_indices = @transform_13, window_bounds = array<i64: 1, 512, 128>}, {transform_indices = @transform_14, window_bounds = array<i64: 1, 1, 128>}, {transform_indices = @transform_15, window_bounds = array<i64: 1, 1, 128>}]} {
    %c0_i32 = arith.constant 0 : i32
    %0 = arith.cmpi eq, %arg1, %c0_i32 : i32
    %1 = arith.extui %0 : i1 to i32
    %c0_i32_0 = arith.constant 0 : i32
    %2 = arith.cmpi ne, %1, %c0_i32_0 : i32
    scf.if %2 {
      %c0_66 = arith.constant 0 : index
      %c0_67 = arith.constant 0 : index
      %c0_68 = arith.constant 0 : index
      %133 = vector.load %arg2[%c0_66, %c0_67, %c0_68] : memref<1x8x768xf32, #tpu.memory_space<vmem>>, vector<1x8x768xf32>
      %134 = vector.shape_cast %133 : vector<1x8x768xf32> to vector<8x768xf32>
      %c0_69 = arith.constant 0 : index
      %c0_70 = arith.constant 0 : index
      %135 = vector.load %arg3[%c0_69, %c0_70] : memref<768x128xf32, #tpu.memory_space<vmem>>, vector<768x128xf32>
      %cst_71 = arith.constant dense<0.000000e+00> : vector<8x128xf32>
      %136 = tpu.matmul %134, %135, %cst_71 {dimension_numbers = #tpu.dot_dimension_numbers<[1], [0], [0], [1], [0, 0, 1, 1], [], []>} : vector<8x768xf32>, vector<768x128xf32>, vector<8x128xf32> -> vector<8x128xf32>
      %137 = vector.shape_cast %136 : vector<8x128xf32> to vector<1x8x128xf32>
      %c0_72 = arith.constant 0 : index
      %c0_73 = arith.constant 0 : index
      %138 = vector.load %arg4[%c0_72, %c0_73] : memref<8x128xf32, #tpu.memory_space<vmem>>, vector<8x128xf32>
      %139 = vector.shape_cast %138 : vector<8x128xf32> to vector<1x8x128xf32>
      %140 = arith.addf %137, %139 : vector<1x8x128xf32>
      %c0_74 = arith.constant 0 : index
      %c0_75 = arith.constant 0 : index
      %c0_76 = arith.constant 0 : index
      %141 = vector.load %arg18[%c0_74, %c0_75, %c0_76] : memref<1x8x128xf32, #tpu.memory_space<vmem>>, vector<1x8x128xf32>
      tpu.vector_store %arg18[%c0_74, %c0_75, %c0_76], %140 {strides = array<i32>} : memref<1x8x128xf32, #tpu.memory_space<vmem>>, vector<1x8x128xf32>,
    } else {
    }
    %c0 = arith.constant 0 : index
    %c0_1 = arith.constant 0 : index
    %c0_2 = arith.constant 0 : index
    %3 = vector.load %arg18[%c0, %c0_1, %c0_2] : memref<1x8x128xf32, #tpu.memory_space<vmem>>, vector<1x8x128xf32>
    %4 = vector.shape_cast %3 : vector<1x8x128xf32> to vector<8x128xf32>
    %c0_3 = arith.constant 0 : index
    %c0_4 = arith.constant 0 : index
    %c0_5 = arith.constant 0 : index
    %5 = vector.load %arg5[%c0_3, %c0_4, %c0_5] : memref<1x1x128xf32, #tpu.memory_space<vmem>>, vector<1x1x128xf32>
    %6 = vector.shape_cast %5 : vector<1x1x128xf32> to vector<1x128xf32>
    %c0_6 = arith.constant 0 : index
    %c0_7 = arith.constant 0 : index
    %c0_8 = arith.constant 0 : index
    %7 = vector.load %arg6[%c0_6, %c0_7, %c0_8] : memref<1x1x128xf32, #tpu.memory_space<vmem>>, vector<1x1x128xf32>
    %8 = vector.shape_cast %7 : vector<1x1x128xf32> to vector<1x128xf32>
    %cst = arith.constant dense<0.000000e+00> : vector<8xf32>
    %9 = vector.multi_reduction <add>, %4, %cst [1] : vector<8x128xf32> to vector<8xf32>
    %10 = vector.shape_cast %9 : vector<8xf32> to vector<8x1xf32>
    %cst_9 = arith.constant 1.280000e+02 : f32
    %11 = vector.broadcast %cst_9 : f32 to vector<8x1xf32>
    %12 = arith.divf %10, %11 : vector<8x1xf32>
    %13 = vector.broadcast %12 : vector<8x1xf32> to vector<8x128xf32>
    %14 = arith.subf %4, %13 : vector<8x128xf32>
    %15 = arith.mulf %14, %14 : vector<8x128xf32>
    %cst_10 = arith.constant dense<0.000000e+00> : vector<8xf32>
    %16 = vector.multi_reduction <add>, %15, %cst_10 [1] : vector<8x128xf32> to vector<8xf32>
    %17 = vector.shape_cast %16 : vector<8xf32> to vector<8x1xf32>
    %cst_11 = arith.constant 1.280000e+02 : f32
    %18 = vector.broadcast %cst_11 : f32 to vector<8x1xf32>
    %19 = arith.divf %17, %18 : vector<8x1xf32>
    %cst_12 = arith.constant 9.99999997E-7 : f32
    %20 = vector.broadcast %cst_12 : f32 to vector<8x1xf32>
    %21 = arith.addf %19, %20 : vector<8x1xf32>
    %22 = math.rsqrt %21 : vector<8x1xf32>
    %23 = vector.broadcast %22 : vector<8x1xf32> to vector<8x128xf32>
    %24 = arith.mulf %14, %23 : vector<8x128xf32>
    %25 = vector.broadcast %6 : vector<1x128xf32> to vector<8x128xf32>
    %26 = arith.mulf %24, %25 : vector<8x128xf32>
    %27 = vector.broadcast %8 : vector<1x128xf32> to vector<8x128xf32>
    %28 = arith.addf %26, %27 : vector<8x128xf32>
    %c0_13 = arith.constant 0 : index
    %c0_14 = arith.constant 0 : index
    %c0_15 = arith.constant 0 : index
    %29 = vector.load %arg7[%c0_13, %c0_14, %c0_15] : memref<1x128x384xf32, #tpu.memory_space<vmem>>, vector<1x128x384xf32>
    %30 = vector.shape_cast %29 : vector<1x128x384xf32> to vector<128x384xf32>
    %cst_16 = arith.constant dense<0.000000e+00> : vector<8x384xf32>
    %31 = tpu.matmul %28, %30, %cst_16 {dimension_numbers = #tpu.dot_dimension_numbers<[1], [0], [0], [1], [0, 0, 1, 1], [], []>} : vector<8x128xf32>, vector<128x384xf32>, vector<8x384xf32> -> vector<8x384xf32>
    %c0_17 = arith.constant 0 : index
    %c0_18 = arith.constant 0 : index
    %c0_19 = arith.constant 0 : index
    %32 = vector.load %arg8[%c0_17, %c0_18, %c0_19] : memref<1x1x384xf32, #tpu.memory_space<vmem>>, vector<1x1x384xf32>
    %33 = vector.shape_cast %32 : vector<1x1x384xf32> to vector<1x384xf32>
    %34 = vector.broadcast %33 : vector<1x384xf32> to vector<8x384xf32>
    %35 = arith.addf %31, %34 : vector<8x384xf32>
    %36 = vector.shape_cast %35 : vector<8x384xf32> to vector<1x8x384xf32>
    %37 = vector.extract_strided_slice %36 {offsets = [0, 0, 0], sizes = [1, 8, 192], strides = [1, 1, 1]} : vector<1x8x384xf32> to vector<1x8x192xf32>
    %38 = vector.extract_strided_slice %36 {offsets = [0, 0, 192], sizes = [1, 8, 192], strides = [1, 1, 1]} : vector<1x8x384xf32> to vector<1x8x192xf32>
    %39 = tpu.concatenate %37, %38 in 0 : vector<1x8x192xf32>, vector<1x8x192xf32> -> vector<2x8x192xf32>
    %40 = vector.extract_strided_slice %39 {offsets = [0, 0, 0], sizes = [2, 8, 64], strides = [1, 1, 1]} : vector<2x8x192xf32> to vector<2x8x64xf32>
    %41 = vector.extract_strided_slice %39 {offsets = [0, 0, 64], sizes = [2, 8, 64], strides = [1, 1, 1]} : vector<2x8x192xf32> to vector<2x8x64xf32>
    %42 = vector.extract_strided_slice %39 {offsets = [0, 0, 128], sizes = [2, 8, 64], strides = [1, 1, 1]} : vector<2x8x192xf32> to vector<2x8x64xf32>
    "tpu.trace_start"() <{level = 10 : i32, message = "zqd,zkd->zqk"}> : () -> ()
    %cst_20 = arith.constant dense<0.000000e+00> : vector<2x8x8xf32>
    %43 = tpu.matmul %40, %41, %cst_20 {dimension_numbers = #tpu.dot_dimension_numbers<[2], [2], [1], [1], [0, 0, 0, 1, 1, 1], [0], [0]>} : vector<2x8x64xf32>, vector<2x8x64xf32>, vector<2x8x8xf32> -> vector<2x8x8xf32>
    "tpu.trace_stop"() : () -> ()
    %44 = tpu.iota {dimensions = array<i32: 2>} : vector<1x1x8xi32>
    %c5_i32 = arith.constant 5 : i32
    %45 = vector.broadcast %c5_i32 : i32 to vector<1x1x8xi32>
    %46 = arith.cmpi slt, %44, %45 : vector<1x1x8xi32>
    %cst_21 = arith.constant 0.000000e+00 : f32
    %cst_22 = arith.constant -1.000000e+30 : f32
    %47 = vector.broadcast %cst_21 : f32 to vector<1x1x8xf32>
    %48 = vector.broadcast %cst_22 : f32 to vector<1x1x8xf32>
    %49 = arith.select %46, %47, %48 : vector<1x1x8xi1>, vector<1x1x8xf32>
    %50 = vector.broadcast %49 : vector<1x1x8xf32> to vector<2x8x8xf32>
    %51 = arith.addf %43, %50 : vector<2x8x8xf32>
    %cst_23 = arith.constant dense<0xFF800000> : vector<2x8xf32>
    %52 = vector.multi_reduction <maximumf>, %51, %cst_23 [2] : vector<2x8x8xf32> to vector<2x8xf32>
    %53 = vector.shape_cast %52 : vector<2x8xf32> to vector<2x8x1xf32>
    %54 = vector.broadcast %53 : vector<2x8x1xf32> to vector<2x8x8xf32>
    %55 = arith.subf %51, %54 : vector<2x8x8xf32>
    %56 = math.exp %55 : vector<2x8x8xf32>
    %cst_24 = arith.constant dense<0.000000e+00> : vector<2x8xf32>
    %57 = vector.multi_reduction <add>, %56, %cst_24 [2] : vector<2x8x8xf32> to vector<2x8xf32>
    %58 = vector.shape_cast %57 : vector<2x8xf32> to vector<2x8x1xf32>
    "tpu.trace_start"() <{level = 10 : i32, message = "zqk,zkd->zqd"}> : () -> ()
    %cst_25 = arith.constant dense<0.000000e+00> : vector<2x8x64xf32>
    %59 = tpu.matmul %56, %42, %cst_25 {dimension_numbers = #tpu.dot_dimension_numbers<[2], [1], [1], [2], [0, 0, 0, 1, 1, 2], [0], [0]>} : vector<2x8x8xf32>, vector<2x8x64xf32>, vector<2x8x64xf32> -> vector<2x8x64xf32>
    "tpu.trace_stop"() : () -> ()
    %60 = tpu.reciprocal %58 {approx = true} : vector<2x8x1xf32> -> vector<2x8x1xf32>
    %61 = vector.broadcast %60 : vector<2x8x1xf32> to vector<2x8x64xf32>
    %62 = arith.mulf %59, %61 : vector<2x8x64xf32>
    %63 = vector.extract_strided_slice %62 {offsets = [0, 0, 0], sizes = [1, 8, 64], strides = [1, 1, 1]} : vector<2x8x64xf32> to vector<1x8x64xf32>
    %64 = vector.shape_cast %63 : vector<1x8x64xf32> to vector<8x64xf32>
    %65 = vector.extract_strided_slice %62 {offsets = [1, 0, 0], sizes = [1, 8, 64], strides = [1, 1, 1]} : vector<2x8x64xf32> to vector<1x8x64xf32>
    %66 = vector.shape_cast %65 : vector<1x8x64xf32> to vector<8x64xf32>
    %67 = tpu.concatenate %64, %66 in 1 : vector<8x64xf32>, vector<8x64xf32> -> vector<8x128xf32>
    %c0_26 = arith.constant 0 : index
    %c0_27 = arith.constant 0 : index
    %c0_28 = arith.constant 0 : index
    %68 = vector.load %arg9[%c0_26, %c0_27, %c0_28] : memref<1x128x128xf32, #tpu.memory_space<vmem>>, vector<1x128x128xf32>
    %69 = vector.shape_cast %68 : vector<1x128x128xf32> to vector<128x128xf32>
    %cst_29 = arith.constant dense<0.000000e+00> : vector<8x128xf32>
    %70 = tpu.matmul %67, %69, %cst_29 {dimension_numbers = #tpu.dot_dimension_numbers<[1], [0], [0], [1], [0, 0, 1, 1], [], []>} : vector<8x128xf32>, vector<128x128xf32>, vector<8x128xf32> -> vector<8x128xf32>
    %c0_30 = arith.constant 0 : index
    %c0_31 = arith.constant 0 : index
    %c0_32 = arith.constant 0 : index
    %71 = vector.load %arg10[%c0_30, %c0_31, %c0_32] : memref<1x1x128xf32, #tpu.memory_space<vmem>>, vector<1x1x128xf32>
    %72 = vector.shape_cast %71 : vector<1x1x128xf32> to vector<1x128xf32>
    %73 = vector.broadcast %72 : vector<1x128xf32> to vector<8x128xf32>
    %74 = arith.addf %70, %73 : vector<8x128xf32>
    %75 = arith.addf %4, %74 : vector<8x128xf32>
    %c0_33 = arith.constant 0 : index
    %c0_34 = arith.constant 0 : index
    %c0_35 = arith.constant 0 : index
    %76 = vector.load %arg11[%c0_33, %c0_34, %c0_35] : memref<1x1x128xf32, #tpu.memory_space<vmem>>, vector<1x1x128xf32>
    %77 = vector.shape_cast %76 : vector<1x1x128xf32> to vector<1x128xf32>
    %c0_36 = arith.constant 0 : index
    %c0_37 = arith.constant 0 : index
    %c0_38 = arith.constant 0 : index
    %78 = vector.load %arg12[%c0_36, %c0_37, %c0_38] : memref<1x1x128xf32, #tpu.memory_space<vmem>>, vector<1x1x128xf32>
    %79 = vector.shape_cast %78 : vector<1x1x128xf32> to vector<1x128xf32>
    %cst_39 = arith.constant dense<0.000000e+00> : vector<8xf32>
    %80 = vector.multi_reduction <add>, %75, %cst_39 [1] : vector<8x128xf32> to vector<8xf32>
    %81 = vector.shape_cast %80 : vector<8xf32> to vector<8x1xf32>
    %cst_40 = arith.constant 1.280000e+02 : f32
    %82 = vector.broadcast %cst_40 : f32 to vector<8x1xf32>
    %83 = arith.divf %81, %82 : vector<8x1xf32>
    %84 = vector.broadcast %83 : vector<8x1xf32> to vector<8x128xf32>
    %85 = arith.subf %75, %84 : vector<8x128xf32>
    %86 = arith.mulf %85, %85 : vector<8x128xf32>
    %cst_41 = arith.constant dense<0.000000e+00> : vector<8xf32>
    %87 = vector.multi_reduction <add>, %86, %cst_41 [1] : vector<8x128xf32> to vector<8xf32>
    %88 = vector.shape_cast %87 : vector<8xf32> to vector<8x1xf32>
    %cst_42 = arith.constant 1.280000e+02 : f32
    %89 = vector.broadcast %cst_42 : f32 to vector<8x1xf32>
    %90 = arith.divf %88, %89 : vector<8x1xf32>
    %cst_43 = arith.constant 9.99999997E-7 : f32
    %91 = vector.broadcast %cst_43 : f32 to vector<8x1xf32>
    %92 = arith.addf %90, %91 : vector<8x1xf32>
    %93 = math.rsqrt %92 : vector<8x1xf32>
    %94 = vector.broadcast %93 : vector<8x1xf32> to vector<8x128xf32>
    %95 = arith.mulf %85, %94 : vector<8x128xf32>
    %96 = vector.broadcast %77 : vector<1x128xf32> to vector<8x128xf32>
    %97 = arith.mulf %95, %96 : vector<8x128xf32>
    %98 = vector.broadcast %79 : vector<1x128xf32> to vector<8x128xf32>
    %99 = arith.addf %97, %98 : vector<8x128xf32>
    %c0_44 = arith.constant 0 : index
    %c0_45 = arith.constant 0 : index
    %c0_46 = arith.constant 0 : index
    %100 = vector.load %arg13[%c0_44, %c0_45, %c0_46] : memref<1x128x512xf32, #tpu.memory_space<vmem>>, vector<1x128x512xf32>
    %101 = vector.shape_cast %100 : vector<1x128x512xf32> to vector<128x512xf32>
    %cst_47 = arith.constant dense<0.000000e+00> : vector<8x512xf32>
    %102 = tpu.matmul %99, %101, %cst_47 {dimension_numbers = #tpu.dot_dimension_numbers<[1], [0], [0], [1], [0, 0, 1, 1], [], []>} : vector<8x128xf32>, vector<128x512xf32>, vector<8x512xf32> -> vector<8x512xf32>
    %c0_48 = arith.constant 0 : index
    %c0_49 = arith.constant 0 : index
    %c0_50 = arith.constant 0 : index
    %103 = vector.load %arg14[%c0_48, %c0_49, %c0_50] : memref<1x1x512xf32, #tpu.memory_space<vmem>>, vector<1x1x512xf32>
    %104 = vector.shape_cast %103 : vector<1x1x512xf32> to vector<1x512xf32>
    %105 = vector.broadcast %104 : vector<1x512xf32> to vector<8x512xf32>
    %106 = arith.addf %102, %105 : vector<8x512xf32>
    %107 = arith.mulf %106, %106 : vector<8x512xf32>
    %108 = arith.mulf %106, %107 : vector<8x512xf32>
    %cst_51 = arith.constant 4.471500e-02 : f32
    %109 = vector.broadcast %cst_51 : f32 to vector<8x512xf32>
    %110 = arith.mulf %109, %108 : vector<8x512xf32>
    %111 = arith.addf %106, %110 : vector<8x512xf32>
    %cst_52 = arith.constant 0.797884583 : f32
    %112 = vector.broadcast %cst_52 : f32 to vector<8x512xf32>
    %113 = arith.mulf %112, %111 : vector<8x512xf32>
    %114 = math.tanh %113 : vector<8x512xf32>
    %cst_53 = arith.constant 1.000000e+00 : f32
    %115 = vector.broadcast %cst_53 : f32 to vector<8x512xf32>
    %116 = arith.addf %115, %114 : vector<8x512xf32>
    %cst_54 = arith.constant 5.000000e-01 : f32
    %117 = vector.broadcast %cst_54 : f32 to vector<8x512xf32>
    %118 = arith.mulf %117, %116 : vector<8x512xf32>
    %119 = arith.mulf %106, %118 : vector<8x512xf32>
    %c0_55 = arith.constant 0 : index
    %c0_56 = arith.constant 0 : index
    %c0_57 = arith.constant 0 : index
    %120 = vector.load %arg15[%c0_55, %c0_56, %c0_57] : memref<1x512x128xf32, #tpu.memory_space<vmem>>, vector<1x512x128xf32>
    %121 = vector.shape_cast %120 : vector<1x512x128xf32> to vector<512x128xf32>
    %cst_58 = arith.constant dense<0.000000e+00> : vector<8x128xf32>
    %122 = tpu.matmul %119, %121, %cst_58 {dimension_numbers = #tpu.dot_dimension_numbers<[1], [0], [0], [1], [0, 0, 1, 1], [], []>} : vector<8x512xf32>, vector<512x128xf32>, vector<8x128xf32> -> vector<8x128xf32>
    %123 = arith.addf %75, %122 : vector<8x128xf32>
    %c0_59 = arith.constant 0 : index
    %c0_60 = arith.constant 0 : index
    %c0_61 = arith.constant 0 : index
    %124 = vector.load %arg16[%c0_59, %c0_60, %c0_61] : memref<1x1x128xf32, #tpu.memory_space<vmem>>, vector<1x1x128xf32>
    %125 = vector.shape_cast %124 : vector<1x1x128xf32> to vector<1x128xf32>
    %126 = vector.broadcast %125 : vector<1x128xf32> to vector<8x128xf32>
    %127 = arith.addf %123, %126 : vector<8x128xf32>
    %128 = vector.shape_cast %127 : vector<8x128xf32> to vector<1x8x128xf32>
    %c0_62 = arith.constant 0 : index
    %c0_63 = arith.constant 0 : index
    %c0_64 = arith.constant 0 : index
    %129 = vector.load %arg18[%c0_62, %c0_63, %c0_64] : memref<1x8x128xf32, #tpu.memory_space<vmem>>, vector<1x8x128xf32>
    tpu.vector_store %arg18[%c0_62, %c0_63, %c0_64], %128 {strides = array<i32>} : memref<1x8x128xf32, #tpu.memory_space<vmem>>, vector<1x8x128xf32>,
    %c1_i32 = arith.constant 1 : i32
    %130 = arith.cmpi eq, %arg1, %c1_i32 : i32
    %131 = arith.extui %130 : i1 to i32
    %c0_i32_65 = arith.constant 0 : i32
    %132 = arith.cmpi ne, %131, %c0_i32_65 : i32
    scf.if %132 {
      %133 = vector.extract_strided_slice %128 {offsets = [0, 0, 0], sizes = [1, 1, 128], strides = [1, 1, 1]} : vector<1x8x128xf32> to vector<1x1x128xf32>
      %c0_66 = arith.constant 0 : index
      %c0_67 = arith.constant 0 : index
      %c0_68 = arith.constant 0 : index
      %134 = vector.load %arg17[%c0_66, %c0_67, %c0_68] : memref<1x1x128xf32, #tpu.memory_space<vmem>>, vector<1x1x128xf32>
      tpu.vector_store %arg17[%c0_66, %c0_67, %c0_68], %133 {strides = array<i32>} : memref<1x1x128xf32, #tpu.memory_space<vmem>>, vector<1x1x128xf32>,
    } else {
    }
    return
  }
  func.func @transform_0(%arg0: i32, %arg1: i32) -> (i32, i32, i32) {
    %c0_i32 = arith.constant 0 : i32
    %c0_i32_0 = arith.constant 0 : i32
    %c0_i32_1 = arith.constant 0 : i32
    return %arg0, %c0_i32, %c0_i32_0 : i32, i32, i32
  }
  func.func @transform_1(%arg0: i32, %arg1: i32) -> (i32, i32) {
    %c0_i32 = arith.constant 0 : i32
    %c0_i32_0 = arith.constant 0 : i32
    %c0_i32_1 = arith.constant 0 : i32
    return %c0_i32, %c0_i32_0 : i32, i32
  }
  func.func @transform_2(%arg0: i32, %arg1: i32) -> (i32, i32) {
    %c0_i32 = arith.constant 0 : i32
    %c0_i32_0 = arith.constant 0 : i32
    %c0_i32_1 = arith.constant 0 : i32
    return %c0_i32, %c0_i32_0 : i32, i32
  }
  func.func @transform_3(%arg0: i32, %arg1: i32) -> (i32, i32, i32) {
    %c0_i32 = arith.constant 0 : i32
    %c0_i32_0 = arith.constant 0 : i32
    %c0_i32_1 = arith.constant 0 : i32
    return %arg1, %c0_i32, %c0_i32_0 : i32, i32, i32
  }
  func.func @transform_4(%arg0: i32, %arg1: i32) -> (i32, i32, i32) {
    %c0_i32 = arith.constant 0 : i32
    %c0_i32_0 = arith.constant 0 : i32
    %c0_i32_1 = arith.constant 0 : i32
    return %arg1, %c0_i32, %c0_i32_0 : i32, i32, i32
  }
  func.func @transform_5(%arg0: i32, %arg1: i32) -> (i32, i32, i32) {
    %c0_i32 = arith.constant 0 : i32
    %c0_i32_0 = arith.constant 0 : i32
    %c0_i32_1 = arith.constant 0 : i32
    return %arg1, %c0_i32, %c0_i32_0 : i32, i32, i32
  }
  func.func @transform_6(%arg0: i32, %arg1: i32) -> (i32, i32, i32) {
    %c0_i32 = arith.constant 0 : i32
    %c0_i32_0 = arith.constant 0 : i32
    %c0_i32_1 = arith.constant 0 : i32
    return %arg1, %c0_i32, %c0_i32_0 : i32, i32, i32
  }
  func.func @transform_7(%arg0: i32, %arg1: i32) -> (i32, i32, i32) {
    %c0_i32 = arith.constant 0 : i32
    %c0_i32_0 = arith.constant 0 : i32
    %c0_i32_1 = arith.constant 0 : i32
    return %arg1, %c0_i32, %c0_i32_0 : i32, i32, i32
  }
  func.func @transform_8(%arg0: i32, %arg1: i32) -> (i32, i32, i32) {
    %c0_i32 = arith.constant 0 : i32
    %c0_i32_0 = arith.constant 0 : i32
    %c0_i32_1 = arith.constant 0 : i32
    return %arg1, %c0_i32, %c0_i32_0 : i32, i32, i32
  }
  func.func @transform_9(%arg0: i32, %arg1: i32) -> (i32, i32, i32) {
    %c0_i32 = arith.constant 0 : i32
    %c0_i32_0 = arith.constant 0 : i32
    %c0_i32_1 = arith.constant 0 : i32
    return %arg1, %c0_i32, %c0_i32_0 : i32, i32, i32
  }
  func.func @transform_10(%arg0: i32, %arg1: i32) -> (i32, i32, i32) {
    %c0_i32 = arith.constant 0 : i32
    %c0_i32_0 = arith.constant 0 : i32
    %c0_i32_1 = arith.constant 0 : i32
    return %arg1, %c0_i32, %c0_i32_0 : i32, i32, i32
  }
  func.func @transform_11(%arg0: i32, %arg1: i32) -> (i32, i32, i32) {
    %c0_i32 = arith.constant 0 : i32
    %c0_i32_0 = arith.constant 0 : i32
    %c0_i32_1 = arith.constant 0 : i32
    return %arg1, %c0_i32, %c0_i32_0 : i32, i32, i32
  }
  func.func @transform_12(%arg0: i32, %arg1: i32) -> (i32, i32, i32) {
    %c0_i32 = arith.constant 0 : i32
    %c0_i32_0 = arith.constant 0 : i32
    %c0_i32_1 = arith.constant 0 : i32
    return %arg1, %c0_i32, %c0_i32_0 : i32, i32, i32
  }
  func.func @transform_13(%arg0: i32, %arg1: i32) -> (i32, i32, i32) {
    %c0_i32 = arith.constant 0 : i32
    %c0_i32_0 = arith.constant 0 : i32
    %c0_i32_1 = arith.constant 0 : i32
    return %arg1, %c0_i32, %c0_i32_0 : i32, i32, i32
  }
  func.func @transform_14(%arg0: i32, %arg1: i32) -> (i32, i32, i32) {
    %c0_i32 = arith.constant 0 : i32
    %c0_i32_0 = arith.constant 0 : i32
    %c0_i32_1 = arith.constant 0 : i32
    return %arg1, %c0_i32, %c0_i32_0 : i32, i32, i32
  }
  func.func @transform_15(%arg0: i32, %arg1: i32) -> (i32, i32, i32) {
    %c0_i32 = arith.constant 0 : i32
    %c0_i32_0 = arith.constant 0 : i32
    %c0_i32_1 = arith.constant 0 : i32
    return %arg0, %c0_i32, %c0_i32_0 : i32, i32, i32
  }
}

module attributes {stable_mosaic.version = 11 : i64} {
  func.func @vit_encoder_kernel(%arg0: i32, %arg1: i32, %arg2: memref<1x8x768xf32, #tpu.memory_space<vmem>>, %arg3: memref<768x128xf32, #tpu.memory_space<vmem>>, %arg4: memref<8x128xf32, #tpu.memory_space<vmem>>, %arg5: memref<1x1x128xf32, #tpu.memory_space<vmem>>, %arg6: memref<1x1x128xf32, #tpu.memory_space<vmem>>, %arg7: memref<1x128x384xf32, #tpu.memory_space<vmem>>, %arg8: memref<1x1x384xf32, #tpu.memory_space<vmem>>, %arg9: memref<1x128x128xf32, #tpu.memory_space<vmem>>, %arg10: memref<1x1x128xf32, #tpu.memory_space<vmem>>, %arg11: memref<1x1x128xf32, #tpu.memory_space<vmem>>, %arg12: memref<1x1x128xf32, #tpu.memory_space<vmem>>, %arg13: memref<1x128x512xf32, #tpu.memory_space<vmem>>, %arg14: memref<1x1x512xf32, #tpu.memory_space<vmem>>, %arg15: memref<1x512x128xf32, #tpu.memory_space<vmem>>, %arg16: memref<1x1x128xf32, #tpu.memory_space<vmem>>, %arg17: memref<1x1x128xf32, #tpu.memory_space<vmem>>, %arg18: memref<1x8x128xf32, #tpu.memory_space<vmem>>) attributes {dimension_semantics = [#tpu.dimension_semantics<parallel>, #tpu.dimension_semantics<arbitrary>], iteration_bounds = array<i64: 2, 2>, scalar_prefetch = 0 : i64, scratch_operands = 1 : i64, tpu.core_type = #tpu.core_type<tc>, window_params = [{transform_indices = @transform_0, window_bounds = array<i64: 1, 8, 768>}, {pipeline_mode = #tpu.pipeline_mode<synchronous>, transform_indices = @transform_1, window_bounds = array<i64: 768, 128>}, {pipeline_mode = #tpu.pipeline_mode<synchronous>, transform_indices = @transform_2, window_bounds = array<i64: 8, 128>}, {transform_indices = @transform_3, window_bounds = array<i64: 1, 1, 128>}, {transform_indices = @transform_4, window_bounds = array<i64: 1, 1, 128>}, {transform_indices = @transform_5, window_bounds = array<i64: 1, 128, 384>}, {transform_indices = @transform_6, window_bounds = array<i64: 1, 1, 384>}, {transform_indices = @transform_7, window_bounds = array<i64: 1, 128, 128>}, {transform_indices = @transform_8, window_bounds = array<i64: 1, 1, 128>}, {transform_indices = @transform_9, window_bounds = array<i64: 1, 1, 128>}, {transform_indices = @transform_10, window_bounds = array<i64: 1, 1, 128>}, {transform_indices = @transform_11, window_bounds = array<i64: 1, 128, 512>}, {transform_indices = @transform_12, window_bounds = array<i64: 1, 1, 512>}, {transform_indices = @transform_13, window_bounds = array<i64: 1, 512, 128>}, {transform_indices = @transform_14, window_bounds = array<i64: 1, 1, 128>}, {transform_indices = @transform_15, window_bounds = array<i64: 1, 1, 128>}]} {
    %c0_i32 = arith.constant 0 : i32
    %0 = arith.cmpi eq, %arg1, %c0_i32 : i32
    %1 = arith.extui %0 : i1 to i32
    %c0_i32_0 = arith.constant 0 : i32
    %2 = arith.cmpi ne, %1, %c0_i32_0 : i32
    scf.if %2 {
      %c0_66 = arith.constant 0 : index
      %c0_67 = arith.constant 0 : index
      %c0_68 = arith.constant 0 : index
      %133 = vector.load %arg2[%c0_66, %c0_67, %c0_68] : memref<1x8x768xf32, #tpu.memory_space<vmem>>, vector<1x8x768xf32>
      %134 = vector.shape_cast %133 : vector<1x8x768xf32> to vector<8x768xf32>
      %c0_69 = arith.constant 0 : index
      %c0_70 = arith.constant 0 : index
      %135 = vector.load %arg3[%c0_69, %c0_70] : memref<768x128xf32, #tpu.memory_space<vmem>>, vector<768x128xf32>
      %cst_71 = arith.constant dense<0.000000e+00> : vector<8x128xf32>
      %136 = tpu.matmul %134, %135, %cst_71 {dimension_numbers = #tpu.dot_dimension_numbers<[1], [0], [0], [1], [0, 0, 1, 1], [], []>} : vector<8x768xf32>, vector<768x128xf32>, vector<8x128xf32> -> vector<8x128xf32>
      %137 = vector.shape_cast %136 : vector<8x128xf32> to vector<1x8x128xf32>
      %c0_72 = arith.constant 0 : index
      %c0_73 = arith.constant 0 : index
      %138 = vector.load %arg4[%c0_72, %c0_73] : memref<8x128xf32, #tpu.memory_space<vmem>>, vector<8x128xf32>
      %139 = vector.shape_cast %138 : vector<8x128xf32> to vector<1x8x128xf32>
      %140 = arith.addf %137, %139 : vector<1x8x128xf32>
      %c0_74 = arith.constant 0 : index
      %c0_75 = arith.constant 0 : index
      %c0_76 = arith.constant 0 : index
      %141 = vector.load %arg18[%c0_74, %c0_75, %c0_76] : memref<1x8x128xf32, #tpu.memory_space<vmem>>, vector<1x8x128xf32>
      tpu.vector_store %arg18[%c0_74, %c0_75, %c0_76], %140 {strides = array<i32>} : memref<1x8x128xf32, #tpu.memory_space<vmem>>, vector<1x8x128xf32>,
    } else {
    }
    %c0 = arith.constant 0 : index
    %c0_1 = arith.constant 0 : index
    %c0_2 = arith.constant 0 : index
    %3 = vector.load %arg18[%c0, %c0_1, %c0_2] : memref<1x8x128xf32, #tpu.memory_space<vmem>>, vector<1x8x128xf32>
    %4 = vector.shape_cast %3 : vector<1x8x128xf32> to vector<8x128xf32>
    %c0_3 = arith.constant 0 : index
    %c0_4 = arith.constant 0 : index
    %c0_5 = arith.constant 0 : index
    %5 = vector.load %arg5[%c0_3, %c0_4, %c0_5] : memref<1x1x128xf32, #tpu.memory_space<vmem>>, vector<1x1x128xf32>
    %6 = vector.shape_cast %5 : vector<1x1x128xf32> to vector<1x128xf32>
    %c0_6 = arith.constant 0 : index
    %c0_7 = arith.constant 0 : index
    %c0_8 = arith.constant 0 : index
    %7 = vector.load %arg6[%c0_6, %c0_7, %c0_8] : memref<1x1x128xf32, #tpu.memory_space<vmem>>, vector<1x1x128xf32>
    %8 = vector.shape_cast %7 : vector<1x1x128xf32> to vector<1x128xf32>
    %cst = arith.constant dense<0.000000e+00> : vector<8xf32>
    %9 = vector.multi_reduction <add>, %4, %cst [1] : vector<8x128xf32> to vector<8xf32>
    %10 = vector.shape_cast %9 : vector<8xf32> to vector<8x1xf32>
    %cst_9 = arith.constant 1.280000e+02 : f32
    %11 = vector.broadcast %cst_9 : f32 to vector<8x1xf32>
    %12 = arith.divf %10, %11 : vector<8x1xf32>
    %13 = vector.broadcast %12 : vector<8x1xf32> to vector<8x128xf32>
    %14 = arith.subf %4, %13 : vector<8x128xf32>
    %15 = arith.mulf %14, %14 : vector<8x128xf32>
    %cst_10 = arith.constant dense<0.000000e+00> : vector<8xf32>
    %16 = vector.multi_reduction <add>, %15, %cst_10 [1] : vector<8x128xf32> to vector<8xf32>
    %17 = vector.shape_cast %16 : vector<8xf32> to vector<8x1xf32>
    %cst_11 = arith.constant 1.280000e+02 : f32
    %18 = vector.broadcast %cst_11 : f32 to vector<8x1xf32>
    %19 = arith.divf %17, %18 : vector<8x1xf32>
    %cst_12 = arith.constant 9.99999997E-7 : f32
    %20 = vector.broadcast %cst_12 : f32 to vector<8x1xf32>
    %21 = arith.addf %19, %20 : vector<8x1xf32>
    %22 = math.rsqrt %21 : vector<8x1xf32>
    %23 = vector.broadcast %22 : vector<8x1xf32> to vector<8x128xf32>
    %24 = arith.mulf %14, %23 : vector<8x128xf32>
    %25 = vector.broadcast %6 : vector<1x128xf32> to vector<8x128xf32>
    %26 = arith.mulf %24, %25 : vector<8x128xf32>
    %27 = vector.broadcast %8 : vector<1x128xf32> to vector<8x128xf32>
    %28 = arith.addf %26, %27 : vector<8x128xf32>
    %c0_13 = arith.constant 0 : index
    %c0_14 = arith.constant 0 : index
    %c0_15 = arith.constant 0 : index
    %29 = vector.load %arg7[%c0_13, %c0_14, %c0_15] : memref<1x128x384xf32, #tpu.memory_space<vmem>>, vector<1x128x384xf32>
    %30 = vector.shape_cast %29 : vector<1x128x384xf32> to vector<128x384xf32>
    %cst_16 = arith.constant dense<0.000000e+00> : vector<8x384xf32>
    %31 = tpu.matmul %28, %30, %cst_16 {dimension_numbers = #tpu.dot_dimension_numbers<[1], [0], [0], [1], [0, 0, 1, 1], [], []>} : vector<8x128xf32>, vector<128x384xf32>, vector<8x384xf32> -> vector<8x384xf32>
    %c0_17 = arith.constant 0 : index
    %c0_18 = arith.constant 0 : index
    %c0_19 = arith.constant 0 : index
    %32 = vector.load %arg8[%c0_17, %c0_18, %c0_19] : memref<1x1x384xf32, #tpu.memory_space<vmem>>, vector<1x1x384xf32>
    %33 = vector.shape_cast %32 : vector<1x1x384xf32> to vector<1x384xf32>
    %34 = vector.broadcast %33 : vector<1x384xf32> to vector<8x384xf32>
    %35 = arith.addf %31, %34 : vector<8x384xf32>
    %36 = vector.shape_cast %35 : vector<8x384xf32> to vector<1x8x384xf32>
    %37 = vector.extract_strided_slice %36 {offsets = [0, 0, 0], sizes = [1, 8, 192], strides = [1, 1, 1]} : vector<1x8x384xf32> to vector<1x8x192xf32>
    %38 = vector.extract_strided_slice %36 {offsets = [0, 0, 192], sizes = [1, 8, 192], strides = [1, 1, 1]} : vector<1x8x384xf32> to vector<1x8x192xf32>
    %39 = tpu.concatenate %37, %38 in 0 : vector<1x8x192xf32>, vector<1x8x192xf32> -> vector<2x8x192xf32>
    %40 = vector.extract_strided_slice %39 {offsets = [0, 0, 0], sizes = [2, 8, 64], strides = [1, 1, 1]} : vector<2x8x192xf32> to vector<2x8x64xf32>
    %41 = vector.extract_strided_slice %39 {offsets = [0, 0, 64], sizes = [2, 8, 64], strides = [1, 1, 1]} : vector<2x8x192xf32> to vector<2x8x64xf32>
    %42 = vector.extract_strided_slice %39 {offsets = [0, 0, 128], sizes = [2, 8, 64], strides = [1, 1, 1]} : vector<2x8x192xf32> to vector<2x8x64xf32>
    "tpu.trace_start"() <{level = 10 : i32, message = "zqd,zkd->zqk"}> : () -> ()
    %cst_20 = arith.constant dense<0.000000e+00> : vector<2x8x8xf32>
    %43 = tpu.matmul %40, %41, %cst_20 {dimension_numbers = #tpu.dot_dimension_numbers<[2], [2], [1], [1], [0, 0, 0, 1, 1, 1], [0], [0]>} : vector<2x8x64xf32>, vector<2x8x64xf32>, vector<2x8x8xf32> -> vector<2x8x8xf32>
    "tpu.trace_stop"() : () -> ()
    %44 = tpu.iota {dimensions = array<i32: 2>} : vector<1x1x8xi32>
    %c5_i32 = arith.constant 5 : i32
    %45 = vector.broadcast %c5_i32 : i32 to vector<1x1x8xi32>
    %46 = arith.cmpi slt, %44, %45 : vector<1x1x8xi32>
    %cst_21 = arith.constant 0.000000e+00 : f32
    %cst_22 = arith.constant -1.000000e+30 : f32
    %47 = vector.broadcast %cst_21 : f32 to vector<1x1x8xf32>
    %48 = vector.broadcast %cst_22 : f32 to vector<1x1x8xf32>
    %49 = arith.select %46, %47, %48 : vector<1x1x8xi1>, vector<1x1x8xf32>
    %50 = vector.broadcast %49 : vector<1x1x8xf32> to vector<2x8x8xf32>
    %51 = arith.addf %43, %50 : vector<2x8x8xf32>
    %cst_23 = arith.constant dense<0xFF800000> : vector<2x8xf32>
    %52 = vector.multi_reduction <maximumf>, %51, %cst_23 [2] : vector<2x8x8xf32> to vector<2x8xf32>
    %53 = vector.shape_cast %52 : vector<2x8xf32> to vector<2x8x1xf32>
    %54 = vector.broadcast %53 : vector<2x8x1xf32> to vector<2x8x8xf32>
    %55 = arith.subf %51, %54 : vector<2x8x8xf32>
    %56 = math.exp %55 : vector<2x8x8xf32>
    %cst_24 = arith.constant dense<0.000000e+00> : vector<2x8xf32>
    %57 = vector.multi_reduction <add>, %56, %cst_24 [2] : vector<2x8x8xf32> to vector<2x8xf32>
    %58 = vector.shape_cast %57 : vector<2x8xf32> to vector<2x8x1xf32>
    "tpu.trace_start"() <{level = 10 : i32, message = "zqk,zkd->zqd"}> : () -> ()
    %cst_25 = arith.constant dense<0.000000e+00> : vector<2x8x64xf32>
    %59 = tpu.matmul %56, %42, %cst_25 {dimension_numbers = #tpu.dot_dimension_numbers<[2], [1], [1], [2], [0, 0, 0, 1, 1, 2], [0], [0]>} : vector<2x8x8xf32>, vector<2x8x64xf32>, vector<2x8x64xf32> -> vector<2x8x64xf32>
    "tpu.trace_stop"() : () -> ()
    %60 = tpu.reciprocal %58 {approx = true} : vector<2x8x1xf32> -> vector<2x8x1xf32>
    %61 = vector.broadcast %60 : vector<2x8x1xf32> to vector<2x8x64xf32>
    %62 = arith.mulf %59, %61 : vector<2x8x64xf32>
    %63 = vector.extract_strided_slice %62 {offsets = [0, 0, 0], sizes = [1, 8, 64], strides = [1, 1, 1]} : vector<2x8x64xf32> to vector<1x8x64xf32>
    %64 = vector.shape_cast %63 : vector<1x8x64xf32> to vector<8x64xf32>
    %65 = vector.extract_strided_slice %62 {offsets = [1, 0, 0], sizes = [1, 8, 64], strides = [1, 1, 1]} : vector<2x8x64xf32> to vector<1x8x64xf32>
    %66 = vector.shape_cast %65 : vector<1x8x64xf32> to vector<8x64xf32>
    %67 = tpu.concatenate %64, %66 in 1 : vector<8x64xf32>, vector<8x64xf32> -> vector<8x128xf32>
    %c0_26 = arith.constant 0 : index
    %c0_27 = arith.constant 0 : index
    %c0_28 = arith.constant 0 : index
    %68 = vector.load %arg9[%c0_26, %c0_27, %c0_28] : memref<1x128x128xf32, #tpu.memory_space<vmem>>, vector<1x128x128xf32>
    %69 = vector.shape_cast %68 : vector<1x128x128xf32> to vector<128x128xf32>
    %cst_29 = arith.constant dense<0.000000e+00> : vector<8x128xf32>
    %70 = tpu.matmul %67, %69, %cst_29 {dimension_numbers = #tpu.dot_dimension_numbers<[1], [0], [0], [1], [0, 0, 1, 1], [], []>} : vector<8x128xf32>, vector<128x128xf32>, vector<8x128xf32> -> vector<8x128xf32>
    %c0_30 = arith.constant 0 : index
    %c0_31 = arith.constant 0 : index
    %c0_32 = arith.constant 0 : index
    %71 = vector.load %arg10[%c0_30, %c0_31, %c0_32] : memref<1x1x128xf32, #tpu.memory_space<vmem>>, vector<1x1x128xf32>
    %72 = vector.shape_cast %71 : vector<1x1x128xf32> to vector<1x128xf32>
    %73 = vector.broadcast %72 : vector<1x128xf32> to vector<8x128xf32>
    %74 = arith.addf %70, %73 : vector<8x128xf32>
    %75 = arith.addf %4, %74 : vector<8x128xf32>
    %c0_33 = arith.constant 0 : index
    %c0_34 = arith.constant 0 : index
    %c0_35 = arith.constant 0 : index
    %76 = vector.load %arg11[%c0_33, %c0_34, %c0_35] : memref<1x1x128xf32, #tpu.memory_space<vmem>>, vector<1x1x128xf32>
    %77 = vector.shape_cast %76 : vector<1x1x128xf32> to vector<1x128xf32>
    %c0_36 = arith.constant 0 : index
    %c0_37 = arith.constant 0 : index
    %c0_38 = arith.constant 0 : index
    %78 = vector.load %arg12[%c0_36, %c0_37, %c0_38] : memref<1x1x128xf32, #tpu.memory_space<vmem>>, vector<1x1x128xf32>
    %79 = vector.shape_cast %78 : vector<1x1x128xf32> to vector<1x128xf32>
    %cst_39 = arith.constant dense<0.000000e+00> : vector<8xf32>
    %80 = vector.multi_reduction <add>, %75, %cst_39 [1] : vector<8x128xf32> to vector<8xf32>
    %81 = vector.shape_cast %80 : vector<8xf32> to vector<8x1xf32>
    %cst_40 = arith.constant 1.280000e+02 : f32
    %82 = vector.broadcast %cst_40 : f32 to vector<8x1xf32>
    %83 = arith.divf %81, %82 : vector<8x1xf32>
    %84 = vector.broadcast %83 : vector<8x1xf32> to vector<8x128xf32>
    %85 = arith.subf %75, %84 : vector<8x128xf32>
    %86 = arith.mulf %85, %85 : vector<8x128xf32>
    %cst_41 = arith.constant dense<0.000000e+00> : vector<8xf32>
    %87 = vector.multi_reduction <add>, %86, %cst_41 [1] : vector<8x128xf32> to vector<8xf32>
    %88 = vector.shape_cast %87 : vector<8xf32> to vector<8x1xf32>
    %cst_42 = arith.constant 1.280000e+02 : f32
    %89 = vector.broadcast %cst_42 : f32 to vector<8x1xf32>
    %90 = arith.divf %88, %89 : vector<8x1xf32>
    %cst_43 = arith.constant 9.99999997E-7 : f32
    %91 = vector.broadcast %cst_43 : f32 to vector<8x1xf32>
    %92 = arith.addf %90, %91 : vector<8x1xf32>
    %93 = math.rsqrt %92 : vector<8x1xf32>
    %94 = vector.broadcast %93 : vector<8x1xf32> to vector<8x128xf32>
    %95 = arith.mulf %85, %94 : vector<8x128xf32>
    %96 = vector.broadcast %77 : vector<1x128xf32> to vector<8x128xf32>
    %97 = arith.mulf %95, %96 : vector<8x128xf32>
    %98 = vector.broadcast %79 : vector<1x128xf32> to vector<8x128xf32>
    %99 = arith.addf %97, %98 : vector<8x128xf32>
    %c0_44 = arith.constant 0 : index
    %c0_45 = arith.constant 0 : index
    %c0_46 = arith.constant 0 : index
    %100 = vector.load %arg13[%c0_44, %c0_45, %c0_46] : memref<1x128x512xf32, #tpu.memory_space<vmem>>, vector<1x128x512xf32>
    %101 = vector.shape_cast %100 : vector<1x128x512xf32> to vector<128x512xf32>
    %cst_47 = arith.constant dense<0.000000e+00> : vector<8x512xf32>
    %102 = tpu.matmul %99, %101, %cst_47 {dimension_numbers = #tpu.dot_dimension_numbers<[1], [0], [0], [1], [0, 0, 1, 1], [], []>} : vector<8x128xf32>, vector<128x512xf32>, vector<8x512xf32> -> vector<8x512xf32>
    %c0_48 = arith.constant 0 : index
    %c0_49 = arith.constant 0 : index
    %c0_50 = arith.constant 0 : index
    %103 = vector.load %arg14[%c0_48, %c0_49, %c0_50] : memref<1x1x512xf32, #tpu.memory_space<vmem>>, vector<1x1x512xf32>
    %104 = vector.shape_cast %103 : vector<1x1x512xf32> to vector<1x512xf32>
    %105 = vector.broadcast %104 : vector<1x512xf32> to vector<8x512xf32>
    %106 = arith.addf %102, %105 : vector<8x512xf32>
    %107 = arith.mulf %106, %106 : vector<8x512xf32>
    %108 = arith.mulf %106, %107 : vector<8x512xf32>
    %cst_51 = arith.constant 4.471500e-02 : f32
    %109 = vector.broadcast %cst_51 : f32 to vector<8x512xf32>
    %110 = arith.mulf %109, %108 : vector<8x512xf32>
    %111 = arith.addf %106, %110 : vector<8x512xf32>
    %cst_52 = arith.constant 0.797884583 : f32
    %112 = vector.broadcast %cst_52 : f32 to vector<8x512xf32>
    %113 = arith.mulf %112, %111 : vector<8x512xf32>
    %114 = math.tanh %113 : vector<8x512xf32>
    %cst_53 = arith.constant 1.000000e+00 : f32
    %115 = vector.broadcast %cst_53 : f32 to vector<8x512xf32>
    %116 = arith.addf %115, %114 : vector<8x512xf32>
    %cst_54 = arith.constant 5.000000e-01 : f32
    %117 = vector.broadcast %cst_54 : f32 to vector<8x512xf32>
    %118 = arith.mulf %117, %116 : vector<8x512xf32>
    %119 = arith.mulf %106, %118 : vector<8x512xf32>
    %c0_55 = arith.constant 0 : index
    %c0_56 = arith.constant 0 : index
    %c0_57 = arith.constant 0 : index
    %120 = vector.load %arg15[%c0_55, %c0_56, %c0_57] : memref<1x512x128xf32, #tpu.memory_space<vmem>>, vector<1x512x128xf32>
    %121 = vector.shape_cast %120 : vector<1x512x128xf32> to vector<512x128xf32>
    %cst_58 = arith.constant dense<0.000000e+00> : vector<8x128xf32>
    %122 = tpu.matmul %119, %121, %cst_58 {dimension_numbers = #tpu.dot_dimension_numbers<[1], [0], [0], [1], [0, 0, 1, 1], [], []>} : vector<8x512xf32>, vector<512x128xf32>, vector<8x128xf32> -> vector<8x128xf32>
    %123 = arith.addf %75, %122 : vector<8x128xf32>
    %c0_59 = arith.constant 0 : index
    %c0_60 = arith.constant 0 : index
    %c0_61 = arith.constant 0 : index
    %124 = vector.load %arg16[%c0_59, %c0_60, %c0_61] : memref<1x1x128xf32, #tpu.memory_space<vmem>>, vector<1x1x128xf32>
    %125 = vector.shape_cast %124 : vector<1x1x128xf32> to vector<1x128xf32>
    %126 = vector.broadcast %125 : vector<1x128xf32> to vector<8x128xf32>
    %127 = arith.addf %123, %126 : vector<8x128xf32>
    %128 = vector.shape_cast %127 : vector<8x128xf32> to vector<1x8x128xf32>
    %c0_62 = arith.constant 0 : index
    %c0_63 = arith.constant 0 : index
    %c0_64 = arith.constant 0 : index
    %129 = vector.load %arg18[%c0_62, %c0_63, %c0_64] : memref<1x8x128xf32, #tpu.memory_space<vmem>>, vector<1x8x128xf32>
    tpu.vector_store %arg18[%c0_62, %c0_63, %c0_64], %128 {strides = array<i32>} : memref<1x8x128xf32, #tpu.memory_space<vmem>>, vector<1x8x128xf32>,
    %c1_i32 = arith.constant 1 : i32
    %130 = arith.cmpi eq, %arg1, %c1_i32 : i32
    %131 = arith.extui %130 : i1 to i32
    %c0_i32_65 = arith.constant 0 : i32
    %132 = arith.cmpi ne, %131, %c0_i32_65 : i32
    scf.if %132 {
      %133 = vector.extract_strided_slice %128 {offsets = [0, 0, 0], sizes = [1, 1, 128], strides = [1, 1, 1]} : vector<1x8x128xf32> to vector<1x1x128xf32>
      %c0_66 = arith.constant 0 : index
      %c0_67 = arith.constant 0 : index
      %c0_68 = arith.constant 0 : index
      %134 = vector.load %arg17[%c0_66, %c0_67, %c0_68] : memref<1x1x128xf32, #tpu.memory_space<vmem>>, vector<1x1x128xf32>
      tpu.vector_store %arg17[%c0_66, %c0_67, %c0_68], %133 {strides = array<i32>} : memref<1x1x128xf32, #tpu.memory_space<vmem>>, vector<1x1x128xf32>,
    } else {
    }
    return
  }
  func.func @transform_0(%arg0: i32, %arg1: i32) -> (i32, i32, i32) {
    %c0_i32 = arith.constant 0 : i32
    %c0_i32_0 = arith.constant 0 : i32
    %c0_i32_1 = arith.constant 0 : i32
    return %arg0, %c0_i32, %c0_i32_0 : i32, i32, i32
  }
  func.func @transform_1(%arg0: i32, %arg1: i32) -> (i32, i32) {
    %c0_i32 = arith.constant 0 : i32
    %c0_i32_0 = arith.constant 0 : i32
    %c0_i32_1 = arith.constant 0 : i32
    return %c0_i32, %c0_i32_0 : i32, i32
  }
  func.func @transform_2(%arg0: i32, %arg1: i32) -> (i32, i32) {
    %c0_i32 = arith.constant 0 : i32
    %c0_i32_0 = arith.constant 0 : i32
    %c0_i32_1 = arith.constant 0 : i32
    return %c0_i32, %c0_i32_0 : i32, i32
  }
  func.func @transform_3(%arg0: i32, %arg1: i32) -> (i32, i32, i32) {
    %c0_i32 = arith.constant 0 : i32
    %c0_i32_0 = arith.constant 0 : i32
    %c0_i32_1 = arith.constant 0 : i32
    return %arg1, %c0_i32, %c0_i32_0 : i32, i32, i32
  }
  func.func @transform_4(%arg0: i32, %arg1: i32) -> (i32, i32, i32) {
    %c0_i32 = arith.constant 0 : i32
    %c0_i32_0 = arith.constant 0 : i32
    %c0_i32_1 = arith.constant 0 : i32
    return %arg1, %c0_i32, %c0_i32_0 : i32, i32, i32
  }
  func.func @transform_5(%arg0: i32, %arg1: i32) -> (i32, i32, i32) {
    %c0_i32 = arith.constant 0 : i32
    %c0_i32_0 = arith.constant 0 : i32
    %c0_i32_1 = arith.constant 0 : i32
    return %arg1, %c0_i32, %c0_i32_0 : i32, i32, i32
  }
  func.func @transform_6(%arg0: i32, %arg1: i32) -> (i32, i32, i32) {
    %c0_i32 = arith.constant 0 : i32
    %c0_i32_0 = arith.constant 0 : i32
    %c0_i32_1 = arith.constant 0 : i32
    return %arg1, %c0_i32, %c0_i32_0 : i32, i32, i32
  }
  func.func @transform_7(%arg0: i32, %arg1: i32) -> (i32, i32, i32) {
    %c0_i32 = arith.constant 0 : i32
    %c0_i32_0 = arith.constant 0 : i32
    %c0_i32_1 = arith.constant 0 : i32
    return %arg1, %c0_i32, %c0_i32_0 : i32, i32, i32
  }
  func.func @transform_8(%arg0: i32, %arg1: i32) -> (i32, i32, i32) {
    %c0_i32 = arith.constant 0 : i32
    %c0_i32_0 = arith.constant 0 : i32
    %c0_i32_1 = arith.constant 0 : i32
    return %arg1, %c0_i32, %c0_i32_0 : i32, i32, i32
  }
  func.func @transform_9(%arg0: i32, %arg1: i32) -> (i32, i32, i32) {
    %c0_i32 = arith.constant 0 : i32
    %c0_i32_0 = arith.constant 0 : i32
    %c0_i32_1 = arith.constant 0 : i32
    return %arg1, %c0_i32, %c0_i32_0 : i32, i32, i32
  }
  func.func @transform_10(%arg0: i32, %arg1: i32) -> (i32, i32, i32) {
    %c0_i32 = arith.constant 0 : i32
    %c0_i32_0 = arith.constant 0 : i32
    %c0_i32_1 = arith.constant 0 : i32
    return %arg1, %c0_i32, %c0_i32_0 : i32, i32, i32
  }
  func.func @transform_11(%arg0: i32, %arg1: i32) -> (i32, i32, i32) {
    %c0_i32 = arith.constant 0 : i32
    %c0_i32_0 = arith.constant 0 : i32
    %c0_i32_1 = arith.constant 0 : i32
    return %arg1, %c0_i32, %c0_i32_0 : i32, i32, i32
  }
  func.func @transform_12(%arg0: i32, %arg1: i32) -> (i32, i32, i32) {
    %c0_i32 = arith.constant 0 : i32
    %c0_i32_0 = arith.constant 0 : i32
    %c0_i32_1 = arith.constant 0 : i32
    return %arg1, %c0_i32, %c0_i32_0 : i32, i32, i32
  }
  func.func @transform_13(%arg0: i32, %arg1: i32) -> (i32, i32, i32) {
    %c0_i32 = arith.constant 0 : i32
    %c0_i32_0 = arith.constant 0 : i32
    %c0_i32_1 = arith.constant 0 : i32
    return %arg1, %c0_i32, %c0_i32_0 : i32, i32, i32
  }
  func.func @transform_14(%arg0: i32, %arg1: i32) -> (i32, i32, i32) {
    %c0_i32 = arith.constant 0 : i32
    %c0_i32_0 = arith.constant 0 : i32
    %c0_i32_1 = arith.constant 0 : i32
    return %arg1, %c0_i32, %c0_i32_0 : i32, i32, i32
  }
  func.func @transform_15(%arg0: i32, %arg1: i32) -> (i32, i32, i32) {
    %c0_i32 = arith.constant 0 : i32
    %c0_i32_0 = arith.constant 0 : i32
    %c0_i32_1 = arith.constant 0 : i32
    return %arg0, %c0_i32, %c0_i32_0 : i32, i32, i32
  }
}

</mosaic_0001>

<bundles_post_ra>
// kernel: tpu_custom_call.1
= control target key start
LH: loop header
LB: loop body
LE: loop exit
PB: predicated region body
PF: predicated region fallthrough
CT: control target
= control target key end

     0   :  { %s5418_s0 = inlined_call_operand.hbm [shape: f32[2,8,768], index: 0, kind: input, shape index: {}]   ;;  %s5419_s1 = inlined_call_operand.hbm [shape: f32[768,128], index: 1, kind: input, shape index: {}]   ;;  %s5420_s2 = inlined_call_operand.hbm [shape: f32[8,128], index: 2, kind: input, shape index: {}]   ;;  %s5421_s3 = inlined_call_operand.hbm [shape: f32[2,1,128], index: 3, kind: input, shape index: {}]   ;;  %s5422_s4 = inlined_call_operand.hbm [shape: f32[2,1,128], index: 4, kind: input, shape index: {}]   ;;  %s5423_s5 = inlined_call_operand.hbm [shape: f32[2,128,384], index: 5, kind: input, shape index: {}]   ;;  %s5424_s6 = inlined_call_operand.hbm [shape: f32[2,1,384], index: 6, kind: input, shape index: {}]   ;;  %s5425_s7 = inlined_call_operand.hbm [shape: f32[2,128,128], index: 7, kind: input, shape index: {}]   ;;  %s5426_s8 = inlined_call_operand.hbm [shape: f32[2,1,128], index: 8, kind: input, shape index: {}]   ;;  %s5427_s9 = inlined_call_operand.hbm [shape: f32[2,1,128], index: 9, kind: input, shape index: {}]   ;;  %s5428_s10 = inlined_call_operand.hbm [shape: f32[2,1,128], index: 10, kind: input, shape index: {}]   ;;  %s5429_s11 = inlined_call_operand.hbm [shape: f32[2,128,512], index: 11, kind: input, shape index: {}]   ;;  %s5430_s12 = inlined_call_operand.hbm [shape: f32[2,1,512], index: 12, kind: input, shape index: {}]   ;;  %s5431_s13 = inlined_call_operand.hbm [shape: f32[2,512,128], index: 13, kind: input, shape index: {}]   ;;  %s5432_s14 = inlined_call_operand.hbm [shape: f32[2,1,128], index: 14, kind: input, shape index: {}]   ;;  %s5433_s15 = inlined_call_operand.hbm [shape: f32[2,1,128], index: 15, kind: output, shape index: {}]  }
   0x1   :  { %5485 = sst [smem:[#allocation50_spill]] %s5418_s0 }
   0x2   :  { %5486 = sst [smem:[#allocation51_spill]] %s5419_s1 }
   0x3   :  { %5487 = sst [smem:[#allocation52_spill]] %s5420_s2 }
   0x4   :  { %5488 = sst [smem:[#allocation53_spill]] %s5421_s3 }
   0x5   :  { %5489 = sst [smem:[#allocation54_spill]] %s5422_s4 }
   0x6   :  { %5490 = sst [smem:[#allocation55_spill]] %s5423_s5 }
   0x7   :  { %5491 = sst [smem:[#allocation56_spill]] %s5424_s6 }
   0x8   :  { %5492 = sst [smem:[#allocation57_spill]] %s5425_s7 }
   0x9   :  { %5493 = sst [smem:[#allocation58_spill]] %s5426_s8 }
   0xa   :  { %5494 = sst [smem:[#allocation59_spill]] %s5427_s9 }
   0xb   :  { %5495 = sst [smem:[#allocation60_spill]] %s5428_s10 }
   0xc   :  { %5496 = sst [smem:[#allocation61_spill]] %s5429_s11 }
   0xd   :  { %5497 = sst [smem:[#allocation62_spill]] %s5430_s12 }
   0xe   :  { %5498 = sst [smem:[#allocation63_spill]] %s5431_s13 }
   0xf   :  { %5499 = sst [smem:[#allocation64_spill]] %s5432_s14 }
  0x10   :  { %5500 = sst [smem:[#allocation65_spill]] %s5433_s15 }
  0x11   :  { %20 = vsyncpa [#allocation4], 0 }
  0x12   :  { %21 = vsyncpa [#allocation7], 0 }
  0x13   :  { %22 = vsyncpa [#allocation10], 0 }
  0x14   :  { %24 = vsyncpa [#allocation10 + $0x1], 0 }
  0x15   :  { %25 = vsyncpa [#allocation13], 0 }
  0x16   :  { %27 = vsyncpa [#allocation13 + $0x1], 0 }
  0x17   :  { %28 = vsyncpa [#allocation16], 0 }
  0x18   :  { %30 = vsyncpa [#allocation16 + $0x1], 0 }
  0x19   :  { %31 = vsyncpa [#allocation19], 0 }
  0x1a   :  { %33 = vsyncpa [#allocation19 + $0x1], 0 }
  0x1b   :  { %34 = vsyncpa [#allocation22], 0 }
  0x1c   :  { %36 = vsyncpa [#allocation22 + $0x1], 0 }
  0x1d   :  { %37 = vsyncpa [#allocation25], 0 }
  0x1e   :  { %39 = vsyncpa [#allocation25 + $0x1], 0 }
  0x1f   :  { %40 = vsyncpa [#allocation5], 0 }
  0x20   :  { %42 = vsyncpa [#allocation5 + $0x1], 0  ;;  %s4385_s18 = smov 0   ;;  %s4387_s19 = smov 0  }
  0x21   :  { %s4389_s20 = smov 0   ;;  %s4391_s21 = smov 0  }
  0x22   :  { %s4393_s22 = smov 0   ;;  %s4395_s23 = smov 0  }
  0x23   :  { %s4397_s24 = smov 0   ;;  %s4399_s25 = smov 0  }
  0x24   :  { %s4401_s26 = smov 0   ;;  %s4403_s27 = smov 0  }
  0x25   :  { %s4405_s28 = smov 0  }
  0x26 LB: > { %5501 = sst [smem:[#allocation37_spill]] %s4240_s19  ;;  %s4439_s29 = sadd.s32 4294967295, %s4276_s28   ;;  %s4276_s28 = sphi %s4405_s28, %s48_s28   ;;  %s4272_s27 = sphi %s4403_s27, %s5594_s27   ;;  %s4268_s26 = sphi %s4401_s26, %s5598_s26   ;;  %s4264_s25 = sphi %s4399_s25, %s5592_s25   ;;  %s4260_s24 = sphi %s4397_s24, %s5597_s24   ;;  %s4256_s23 = sphi %s4395_s23, %s5591_s23   ;;  %s4252_s22 = sphi %s4393_s22, %s5596_s22   ;;  %s4248_s21 = sphi %s4391_s21, %s5595_s21   ;;  %s4244_s20 = sphi %s4389_s20, %s5589_s20   ;;  %s4240_s19 = sphi %s4387_s19, %s5588_s19   ;;  %s4236_s18 = sphi %s4385_s18, %s5587_s18  }
  0x27   : > { %5502 = sst [smem:[#allocation38_spill]] %s4244_s20  ;;  %p5445_p0 = scmp.eq.s32.totalorder %s4439_s29, 0 }
  0x28   : > { %5503 = sst [smem:[#allocation39_spill]] %s4256_s23  ;;  %p142_p1 = scmp.ne.s32.totalorder %s4244_s20, %s4240_s19 }
  0x29   : > { %5504 = sst [smem:[#allocation40_spill]] %s4260_s24  ;;  %p143_p2 = scmp.eq.s32.totalorder %s4276_s28, 0 }
  0x2a   : > { %5505 = sst [smem:[#allocation41_spill]] %s4264_s25  ;;  %p148_p3 = scmp.ne.s32.totalorder %s4240_s19, %s4236_s18 }
  0x2b   : > { %5506 = sst [smem:[#allocation42_spill]] %s4272_s27  ;;  %p2794_p4 = scmp.ge.s32.totalorder %s4276_s28, 1 }
  0x2c   : > { %p471_p5 = scmp.lt.s32.totalorder %s4276_s28, 5  ;;  %p4449_p6 = por %p143_p2, %p142_p1 }
  0x2d   : > { %p4455_p7 = por %p148_p3, %p5445_p0  ;;  %s4278_s18 = smov [#allocation6]  }
  0x2e   : > { %s5507_s16 = scalar_select %p4449_p6, 1, 0 }
  0x2f   : > { %s5508_s17 = scalar_select %p4455_p7, 1, 0 }
  0x30   : > { %p4459_p8 = pnand %p2794_p4, %p471_p5  ;;  %s497_s30 = sshll.u32 %s4278_s18, 4  ;;  %s498_s30 = int_to_ptr.vmem [resolvable:$true] %s497_s30 }
  0x31   : > { %5509 = sst [smem:[#allocation43_spill]] %s5508_s17  ;;  %s4476_s17 = sand.u32 1, %s4244_s20  }
  0x32   : > { %s5510_s15 = scalar_select %p4459_p8, 1, 0 }
  0x33   : > { %p5444_p9 = pneg %p4459_p8  ;;  %s5514_s1 = sld [smem:[#allocation51_spill]] }
  0x34   : > { %5511 = sst [smem:[#allocation44_spill]] %s5510_s15 }
  0x35   : > { %p4470_p10 = pnand %p5444_p9, %p5445_p0 }
  0x37   : > { %s5512_s24 = scalar_select %p4470_p10, 1, 0 }
  0x38   : > { %p5457_p13 = pneg %p4470_p10 }
  0x39   : > { %5513 = sst [smem:[#allocation45_spill]] %s5512_s24  ;;  %s3680_s12 = scalar_lea.hbm %s5514_s1, 12288 }
  0x3a   : > { %p3681_p12 = scmp.ne.s32.totalorder %s5514_s1, %s3680_s12  ;;  %p3687_p3 = scmp.lt.u32.totalorder %s3680_s12, %s5514_s1 }
  0x3c   : > { %p3683_p1 = pnand %p5457_p13, %p3681_p12 }
  0x3e   : > { %p3684_p2 = pneg %p3683_p1 }
  0x40   : > { %p3689_p4 = pnand %p3687_p3, %p3684_p2 }
  0x42   : > { %3692 = shalt.err (!%p3689_p4)
}
  0x43   : > { %s3693_s2 = scalar_lea.vmem %s498_s30, 12288  ;;  %p3701_p11 = scmp.lt.s32.totalorder %s498_s30, %s498_s30 }
  0x44   : > { %p3694_p5 = scmp.ne.s32.totalorder %s498_s30, %s3693_s2  ;;  %p3702_p7 = scmp.lt.s32.totalorder %s3693_s2, %s3693_s2 }
  0x46   : > { %p3696_p9 = pnand %p3694_p5, %p5457_p13  ;;  %p3703_p8 = por %p3702_p7, %p3701_p11 }
  0x48   : > { %p3697_p0 = pneg %p3696_p9 }
  0x4a   : > { %p3704_p6 = pnand %p3703_p8, %p3697_p0 }
  0x4c   : > { %3707 = shalt.err (!%p3704_p6)
}
  0x4d   : > { %s5453_s8 = smov 128   ;;  %s5455_s6 = smov 8  }
  0x4e   : > { %3507 = dma.hbm_to_vmem [thread:$0]  (!%p4470_p10), %s5514_s1, 12288, %s498_s30, [#allocation7], %s5453_s8, %s5453_s8, %s5455_s6  }
  0x4f   : > { %p5515_p9 = scmp.ne.s32.totalorder %s5507_s16, 0  ;;  %p5516_p7 = scmp.lt.s32.totalorder %s4276_s28, 4 }
  0x50   : > { %s4512_s14 = sand.u32 1, %s4276_s28   ;;  %s4515_s19 = sshll.u32 %s4268_s26, 4 }
  0x51   : > { %p4507_p0 = pnand %p5516_p7, %p5515_p9  ;;  %s525_s18 = scalar_lea.vmem [#allocation9], %s4476_s17 }
  0x52   : > { %s532_s4 = sshll.u32 %s525_s18, 4  ;;  %s5518_s3 = sld [smem:[#allocation53_spill]]  ;;  %s4524_s4 = int_to_ptr.vmem [resolvable:$true] %s532_s4 }
  0x53   : > { %s5517_s2 = scalar_select %p4507_p0, 1, 0 }
  0x54   : > { %p4531_p8 = pneg %p4507_p0 }
  0x56   : > { %s5519_s12 = scalar_select %p4531_p8, 1, 0 }
  0x58   : > { %s4522_s10 = scalar_lea.hbm %s5518_s3, %s4515_s19  ;;  %s3713_s18 = scalar_lea.hbm %s5518_s3, 32 }
  0x59   : > { %s3708_s16 = scalar_lea.hbm %s4522_s10, 16  ;;  %p3714_p1 = scmp.lt.u32.totalorder %s4522_s10, %s5518_s3 }
  0x5a   : > { %p3709_p6 = scmp.ne.s32.totalorder %s4522_s10, %s3708_s16  ;;  %p3715_p2 = scmp.lt.u32.totalorder %s3713_s18, %s3708_s16 }
  0x5b   : > { %p3717_p4 = scmp.lt.u32.totalorder %s3708_s16, %s4522_s10 }
  0x5c   : > { %p3711_p11 = pnand %p4531_p8, %p3709_p6  ;;  %p3716_p3 = por %p3715_p2, %p3714_p1 }
  0x5e   : > { %p3712_p12 = pneg %p3711_p11  ;;  %p3718_p5 = por %p3717_p4, %p3716_p3 }
  0x60   : > { %p3719_p9 = pnand %p3718_p5, %p3712_p12 }
  0x62   : > { %3722 = shalt.err (!%p3719_p9)
}
  0x63   : > { %s3723_s30 = scalar_lea.vmem %s4524_s4, 16  ;;  %s4281_s0 = smov [#allocation9]  }
  0x64   : > { %p3724_p7 = scmp.ne.s32.totalorder %s4524_s4, %s3723_s30  ;;  %s3728_s24 = sshll.u32 %s4281_s0, 4  ;;  %s3729_s24 = int_to_ptr.vmem [resolvable:$false] %s3728_s24 }
  0x65   : > { %s3730_s8 = scalar_lea.vmem %s3729_s24, 32  ;;  %p3731_p13 = scmp.lt.s32.totalorder %s4524_s4, %s3729_s24 }
  0x66   : > { %p3726_p6 = pnand %p3724_p7, %p4531_p8  ;;  %p3732_p10 = scmp.lt.s32.totalorder %s3730_s8, %s3723_s30 }
  0x68   : > { %p3727_p11 = pneg %p3726_p6  ;;  %p3733_p1 = por %p3732_p10, %p3731_p13 }
  0x6a   : > { %p3734_p2 = pnand %p3733_p1, %p3727_p11 }
  0x6c   : > { %3737 = shalt.err (!%p3734_p2)
}
  0x6d   : > { %s5520_s6 = scalar_lea.sflag [#allocation10], %s4512_s14  ;;  %s3459_s16 = smul.u32 384, %s4476_s17 }
  0x6e   : > { %3514 = dma.hbm_to_vmem [thread:$0]  (!%p4507_p0), %s4522_s10, 16, %s4524_s4, %s5520_s6  }
  0x6f   : > { %s3460_s18 = smul.u32 6144, %s4268_s26  ;;  %s5521_s5 = sld [smem:[#allocation55_spill]] }
  0x70   : > { %s560_s24 = scalar_lea.vmem [#allocation12], %s3459_s16  ;;  %s5463_s3 = scalar_lea.sflag [#allocation13], %s4512_s14 }
  0x71   : > { %s567_s8 = sshll.u32 %s560_s24, 4  ;;  %s4563_s8 = int_to_ptr.vmem [resolvable:$true] %s567_s8 }
  0x75   : > { %s4561_s30 = scalar_lea.hbm %s5521_s5, %s3460_s18  ;;  %s3743_s1 = scalar_lea.hbm %s5521_s5, 12288 }
  0x76   : > { %s3738_s15 = scalar_lea.hbm %s4561_s30, 6144  ;;  %p3744_p3 = scmp.lt.u32.totalorder %s4561_s30, %s5521_s5 }
  0x77   : > { %p3739_p10 = scmp.ne.s32.totalorder %s4561_s30, %s3738_s15  ;;  %p3745_p4 = scmp.lt.u32.totalorder %s3743_s1, %s3738_s15 }
  0x78   : > { %p3747_p9 = scmp.lt.u32.totalorder %s3738_s15, %s4561_s30 }
  0x79   : > { %p3741_p13 = pnand %p3739_p10, %p4531_p8  ;;  %p3746_p5 = por %p3745_p4, %p3744_p3 }
  0x7b   : > { %p3742_p12 = pneg %p3741_p13  ;;  %p3748_p7 = por %p3747_p9, %p3746_p5 }
  0x7d   : > { %p3749_p6 = pnand %p3748_p7, %p3742_p12 }
  0x7f   : > { %3752 = shalt.err (!%p3749_p6)
}
  0x80   : > { %s3753_s16 = scalar_lea.vmem %s4563_s8, 6144  ;;  %s4282_s0 = smov [#allocation12]  }
  0x81   : > { %p3754_p11 = scmp.ne.s32.totalorder %s4563_s8, %s3753_s16  ;;  %s3758_s24 = sshll.u32 %s4282_s0, 4  ;;  %s3759_s24 = int_to_ptr.vmem [resolvable:$false] %s3758_s24 }
  0x82   : > { %s3760_s4 = scalar_lea.vmem %s3759_s24, 12288  ;;  %p3761_p10 = scmp.lt.s32.totalorder %s4563_s8, %s3759_s24 }
  0x83   : > { %p3756_p1 = pnand %p3754_p11, %p4531_p8  ;;  %p3762_p13 = scmp.lt.s32.totalorder %s3760_s4, %s3753_s16 }
  0x85   : > { %p3757_p2 = pneg %p3756_p1  ;;  %p3763_p3 = por %p3762_p13, %p3761_p10 }
  0x87   : > { %p3764_p4 = pnand %p3763_p3, %p3757_p2 }
  0x89   : > { %3767 = shalt.err (!%p3764_p4)
}
  0x8a   : > { %s4283_s15 = smov 384   ;;  %s4284_s10 = smov 24  }
  0x8b   : > { %3520 = dma.hbm_to_vmem [thread:$0]  (!%p4507_p0), %s4561_s30, 6144, %s4563_s8, %s5463_s3, %s4283_s15, %s4283_s15, %s4284_s10  }
  0x8c   : > { %s2803_s1 = sshll.u32 %s4476_s17, 7  ;;  %s2843_s6 = sshll.u32 %s4268_s26, 11 }
  0x8d   : > { %s5522_s7 = sld [smem:[#allocation57_spill]]  ;;  %s600_s24 = scalar_lea.vmem [#allocation15], %s2803_s1 }
  0x8e   : > { %s607_s4 = sshll.u32 %s600_s24, 4  ;;  %s5462_s5 = scalar_lea.sflag [#allocation16], %s4512_s14  ;;  %s4596_s4 = int_to_ptr.vmem [resolvable:$true] %s607_s4 }
  0x93   : > { %s4594_s0 = scalar_lea.hbm %s5522_s7, %s2843_s6  ;;  %s3773_s15 = scalar_lea.hbm %s5522_s7, 4096 }
  0x94   : > { %s3768_s25 = scalar_lea.hbm %s4594_s0, 2048  ;;  %p3774_p7 = scmp.lt.u32.totalorder %s4594_s0, %s5522_s7 }
  0x95   : > { %p3769_p12 = scmp.ne.s32.totalorder %s4594_s0, %s3768_s25  ;;  %p3775_p6 = scmp.lt.u32.totalorder %s3773_s15, %s3768_s25 }
  0x96   : > { %p3777_p1 = scmp.lt.u32.totalorder %s3768_s25, %s4594_s0 }
  0x97   : > { %p3771_p5 = pnand %p3769_p12, %p4531_p8  ;;  %p3776_p11 = por %p3775_p6, %p3774_p7 }
  0x99   : > { %p3772_p9 = pneg %p3771_p5  ;;  %p3778_p2 = por %p3777_p1, %p3776_p11 }
  0x9b   : > { %p3779_p10 = pnand %p3778_p2, %p3772_p9 }
  0x9d   : > { %3782 = shalt.err (!%p3779_p10)
}
  0x9e   : > { %s3783_s1 = scalar_lea.vmem %s4596_s4, 2048  ;;  %s4285_s18 = smov [#allocation15]  }
  0x9f   : > { %p3784_p13 = scmp.ne.s32.totalorder %s4596_s4, %s3783_s1  ;;  %s3788_s16 = sshll.u32 %s4285_s18, 4  ;;  %s3789_s16 = int_to_ptr.vmem [resolvable:$false] %s3788_s16 }
  0xa0   : > { %s3790_s24 = scalar_lea.vmem %s3789_s16, 4096  ;;  %p3791_p12 = scmp.lt.s32.totalorder %s4596_s4, %s3789_s16 }
  0xa1   : > { %p3786_p3 = pnand %p3784_p13, %p4531_p8  ;;  %p3792_p5 = scmp.lt.s32.totalorder %s3790_s24, %s3783_s1 }
  0xa3   : > { %p3787_p4 = pneg %p3786_p3  ;;  %p3793_p7 = por %p3792_p5, %p3791_p12 }
  0xa5   : > { %p3794_p6 = pnand %p3793_p7, %p3787_p4 }
  0xa7   : > { %3797 = shalt.err (!%p3794_p6)
}
  0xa8   : > { %s5523_s25 = smov 8   ;;  %s5524_s30 = smov 128  }
  0xa9   : > { %3526 = dma.hbm_to_vmem [thread:$0]  (!%p4507_p0), %s4594_s0, 2048, %s4596_s4, %s5462_s5, %s5524_s30, %s5524_s30, %s5523_s25  }
  0xaa   : > { %s5525_s9 = sld [smem:[#allocation59_spill]]  ;;  %s637_s6 = scalar_lea.vmem [#allocation18], %s4476_s17 }
  0xab   : > { %s644_s1 = sshll.u32 %s637_s6, 4  ;;  %s5466_s18 = scalar_lea.sflag [#allocation19], %s4512_s14  ;;  %s645_s1 = int_to_ptr.vmem [resolvable:$true] %s644_s1 }
  0xb0   : > { %s4629_s10 = scalar_lea.hbm %s5525_s9, %s4515_s19  ;;  %s3803_s4 = scalar_lea.hbm %s5525_s9, 32 }
  0xb1   : > { %s3798_s16 = scalar_lea.hbm %s4629_s10, 16  ;;  %p3804_p2 = scmp.lt.u32.totalorder %s4629_s10, %s5525_s9 }
  0xb2   : > { %p3799_p9 = scmp.ne.s32.totalorder %s4629_s10, %s3798_s16  ;;  %p3805_p10 = scmp.lt.u32.totalorder %s3803_s4, %s3798_s16 }
  0xb3   : > { %p3807_p3 = scmp.lt.u32.totalorder %s3798_s16, %s4629_s10 }
  0xb4   : > { %p3801_p11 = pnand %p3799_p9, %p4531_p8  ;;  %p3806_p13 = por %p3805_p10, %p3804_p2 }
  0xb6   : > { %p3802_p1 = pneg %p3801_p11  ;;  %p3808_p4 = por %p3807_p3, %p3806_p13 }
  0xb8   : > { %p3809_p12 = pnand %p3808_p4, %p3802_p1 }
  0xba   : > { %3812 = shalt.err (!%p3809_p12)
}
  0xbb   : > { %s3813_s6 = scalar_lea.vmem %s645_s1, 16  ;;  %s4286_s5 = smov [#allocation18]  }
  0xbc   : > { %p3814_p5 = scmp.ne.s32.totalorder %s645_s1, %s3813_s6  ;;  %s3818_s3 = sshll.u32 %s4286_s5, 4  ;;  %s3819_s3 = int_to_ptr.vmem [resolvable:$false] %s3818_s3 }
  0xbd   : > { %s3820_s24 = scalar_lea.vmem %s3819_s3, 32  ;;  %p3821_p9 = scmp.lt.s32.totalorder %s645_s1, %s3819_s3 }
  0xbe   : > { %p3816_p7 = pnand %p3814_p5, %p4531_p8  ;;  %p3822_p11 = scmp.lt.s32.totalorder %s3820_s24, %s3813_s6 }
  0xc0   : > { %p3817_p6 = pneg %p3816_p7  ;;  %p3823_p0 = por %p3822_p11, %p3821_p9 }
  0xc2   : > { %p3824_p2 = pnand %p3823_p0, %p3817_p6 }
  0xc4   : > { %3827 = shalt.err (!%p3824_p2)
}
  0xc5   : > { %p5526_p10 = scmp.ne.s32.totalorder %s5517_s2, 0  ;;  %s2809_s5 = sshll.u32 %s4476_s17, 9 }
  0xc6   : > { %s2844_s16 = sshll.u32 %s4268_s26, 13  ;;  %s5527_s11 = sld [smem:[#allocation61_spill]] }
  0xc7   : > { %3532 = dma.hbm_to_vmem [thread:$0]  (!%p5526_p10), %s4629_s10, 16, %s645_s1, %s5466_s18  }
  0xc8   : > { %s672_s8 = scalar_lea.vmem [#allocation21], %s2809_s5  ;;  %s5468_s6 = scalar_lea.sflag [#allocation22], %s4512_s14 }
  0xc9   : > { %s679_s15 = sshll.u32 %s672_s8, 4  ;;  %s4663_s15 = int_to_ptr.vmem [resolvable:$true] %s679_s15 }
  0xcc   : > { %s4659_s4 = scalar_lea.hbm %s5527_s11, %s2844_s16  ;;  %s3833_s3 = scalar_lea.hbm %s5527_s11, 16384 }
  0xcd   : > { %s3828_s24 = scalar_lea.hbm %s4659_s4, 8192  ;;  %p3834_p3 = scmp.lt.u32.totalorder %s4659_s4, %s5527_s11 }
  0xce   : > { %p3829_p0 = scmp.ne.s32.totalorder %s4659_s4, %s3828_s24  ;;  %p3835_p4 = scmp.lt.u32.totalorder %s3833_s3, %s3828_s24 }
  0xcf   : > { %p3837_p5 = scmp.lt.u32.totalorder %s3828_s24, %s4659_s4 }
  0xd0   : > { %p3831_p1 = pnand %p3829_p0, %p4531_p8  ;;  %p3836_p12 = por %p3835_p4, %p3834_p3 }
  0xd2   : > { %p3832_p13 = pneg %p3831_p1  ;;  %p3838_p7 = por %p3837_p5, %p3836_p12 }
  0xd4   : > { %p3839_p6 = pnand %p3838_p7, %p3832_p13 }
  0xd6   : > { %3842 = shalt.err (!%p3839_p6)
}
  0xd7   : > { %s3843_s8 = scalar_lea.vmem %s4663_s15, 8192  ;;  %s4287_s10 = smov [#allocation21]  }
  0xd8   : > { %p3844_p9 = scmp.ne.s32.totalorder %s4663_s15, %s3843_s8  ;;  %s3848_s1 = sshll.u32 %s4287_s10, 4  ;;  %s3849_s1 = int_to_ptr.vmem [resolvable:$false] %s3848_s1 }
  0xd9   : > { %s3850_s18 = scalar_lea.vmem %s3849_s1, 16384  ;;  %p3851_p0 = scmp.lt.s32.totalorder %s4663_s15, %s3849_s1 }
  0xda   : > { %p3846_p11 = pnand %p3844_p9, %p4531_p8  ;;  %p3852_p1 = scmp.lt.s32.totalorder %s3850_s18, %s3843_s8 }
  0xdc   : > { %p3847_p2 = pneg %p3846_p11  ;;  %p3853_p3 = por %p3852_p1, %p3851_p0 }
  0xde   : > { %p3854_p4 = pnand %p3853_p3, %p3847_p2 }
  0xe0   : > { %3857 = shalt.err (!%p3854_p4)
}
  0xe1   : > { %s4288_s24 = smov 512   ;;  %s4289_s3 = smov 32  }
  0xe2   : > { %3538 = dma.hbm_to_vmem [thread:$0]  (!%p5526_p10), %s4659_s4, 8192, %s4663_s15, %s5468_s6, %s4288_s24, %s4288_s24, %s4289_s3  }
  0xe3   : > { %s5528_s13 = sld [smem:[#allocation63_spill]]  ;;  %s712_s1 = scalar_lea.vmem [#allocation24], %s2809_s5 }
  0xe4   : > { %s719_s18 = sshll.u32 %s712_s1, 4  ;;  %s5467_s7 = scalar_lea.sflag [#allocation25], %s4512_s14  ;;  %s4698_s18 = int_to_ptr.vmem [resolvable:$true] %s719_s18 }
  0xe9   : > { %s4694_s8 = scalar_lea.hbm %s5528_s13, %s2844_s16  ;;  %s3863_s16 = scalar_lea.hbm %s5528_s13, 16384 }
  0xea   : > { %s3858_s9 = scalar_lea.hbm %s4694_s8, 8192  ;;  %p3864_p7 = scmp.lt.u32.totalorder %s4694_s8, %s5528_s13 }
  0xeb   : > { %p3859_p13 = scmp.ne.s32.totalorder %s4694_s8, %s3858_s9  ;;  %p3865_p6 = scmp.lt.u32.totalorder %s3863_s16, %s3858_s9 }
  0xec   : > { %p3867_p11 = scmp.lt.u32.totalorder %s3858_s9, %s4694_s8 }
  0xed   : > { %p3861_p12 = pnand %p3859_p13, %p4531_p8  ;;  %p3866_p9 = por %p3865_p6, %p3864_p7 }
  0xef   : > { %p3862_p5 = pneg %p3861_p12  ;;  %p3868_p2 = por %p3867_p11, %p3866_p9 }
  0xf1   : > { %p3869_p0 = pnand %p3868_p2, %p3862_p5 }
  0xf3   : > { %3872 = shalt.err (!%p3869_p0)
}
  0xf4   : > { %s3873_s5 = scalar_lea.vmem %s4698_s18, 8192  ;;  %s4290_s0 = smov [#allocation24]  }
  0xf5   : > { %p3874_p1 = scmp.ne.s32.totalorder %s4698_s18, %s3873_s5  ;;  %s3878_s10 = sshll.u32 %s4290_s0, 4  ;;  %s3879_s10 = int_to_ptr.vmem [resolvable:$false] %s3878_s10 }
  0xf6   : > { %s3880_s1 = scalar_lea.vmem %s3879_s10, 16384  ;;  %p3881_p13 = scmp.lt.s32.totalorder %s4698_s18, %s3879_s10 }
  0xf7   : > { %p3876_p3 = pnand %p3874_p1, %p4531_p8  ;;  %p3882_p12 = scmp.lt.s32.totalorder %s3880_s1, %s3873_s5 }
  0xf9   : > { %p3877_p4 = pneg %p3876_p3  ;;  %p3883_p7 = por %p3882_p12, %p3881_p13 }
  0xfb   : > { %p3884_p6 = pnand %p3883_p7, %p3877_p4 }
  0xfd   : > { %3887 = shalt.err (!%p3884_p6)
}
  0xfe   : > { %3544 = dma.hbm_to_vmem [thread:$0]  (!%p5526_p10), %s4694_s8, 8192, %s4698_s18, %s5467_s7, %s5524_s30, %s5524_s30, %s5523_s25  }
  0xff   : > { %s2793_s9 = sadd.s32 4294967294, %s4276_s28   ;;  %s57_s4 = sadd.s32 1, %s4268_s26 }
 0x100   : > { %s60_s15 = sadd.s32 1, %s4272_s27  ;;  %p58_p5 = scmp.ge.s32.totalorder %s57_s4, 2 }
 0x101   : > { %s67_s16 = sadd.s32 1, %s4256_s23  ;;  %p80_p9 = scmp.ne.s32.totalorder %s4252_s22, %s4248_s21 }
 0x102   : > { %s5529_s24 = sld [smem:[#allocation41_spill]]  ;;  %p457_p11 = scmp.ne.s32.totalorder %s4256_s23, %s4252_s22 }
 0x103   : > { %s5600_s4 = smov (%p58_p5, %s57_s4), 0  ;;  %s5602_s15 = smov (!%p58_p5, %s60_s15), %s4272_s27 }
 0x104   : > { %5530 = sst [smem:[#allocation46_spill]] %s5600_s4  ;;  %p5531_p2 = scmp.eq.s32.totalorder %s4439_s29, 0 }
 0x105   : > { %s132_s30 = ssub.s32 %s4268_s26, %s5600_s4  ;;  %p62_p1 = scmp.ge.s32.totalorder %s5602_s15, 2 }
 0x106   : > { %p4743_p0 = por %p5531_p2, %p80_p9  ;;  %s5533_s8 = sld [smem:[#allocation44_spill]] }
 0x107   : > { %p133_p3 = scmp.eq.s32.totalorder %s132_s30, 0  ;;  %p458_p4 = scmp.eq.s32.totalorder %s4439_s29, 3 }
 0x108   : > { %s5532_s25 = scalar_select %p4743_p0, 1, 0 }
 0x109   : > { %p464_p13 = scmp.eq.s32.totalorder %s2793_s9, 3  ;;  %s5604_s15 = smov (%p62_p1, %s5602_s15), 0 }
 0x10a   : > { %5534 = sst [smem:[#allocation47_spill]] %s5604_s15  ;;  %s5535_s18 = sadd.s32 1, %s4244_s20 }
 0x10b   : > { %s4755_s3 = scalar_select %p133_p3, %s4244_s20, %s5535_s18  }
 0x10c   : > { %s64_s5 = ssub.s32 %s4272_s27, %s5604_s15  ;;  %p4759_p12 = por %p458_p4, %p457_p11 }
 0x10d   : > { %5536 = sst [smem:[#allocation48_spill]] %s4755_s3  ;;  %p65_p7 = scmp.eq.s32.totalorder %s64_s5, 0 }
 0x10e   : > { %s5537_s0 = scalar_select %p4759_p12, 1, 0 }
 0x10f   : > { %p4766_p6 = por %p464_p13, %p80_p9  ;;  %s3458_s1 = smul.u32 768, %s5529_s24 }
 0x110   : > { %s4772_s30 = scalar_select %p65_p7, %s4256_s23, %s67_s16  }
 0x111   : > { %s5538_s10 = scalar_select %p4766_p6, 1, 0 }
 0x112   : > { %5540 = sst [smem:[#allocation49_spill]] %s4772_s30  ;;  %s5541_s6 = sld [smem:[#allocation50_spill]] }
 0x113   : > { %5539 = sst [smem:[#allocation44_spill]] %s5538_s10  ;;  %s4291_s18 = smov [#allocation3]  }
 0x114   : > { %s487_s13 = sshll.u32 %s4291_s18, 4  ;;  %p5542_p5 = scmp.ne.s32.totalorder %s5533_s8, 0  ;;  %s488_s13 = int_to_ptr.vmem [resolvable:$true] %s487_s13 }
 0x115   : > { %s4292_s16 = smov [#allocation8]  }
 0x116   : > { %p5543_p9 = pneg %p5542_p5  ;;  %s511_s7 = sshll.u32 %s4292_s16, 4  ;;  %s512_s7 = int_to_ptr.vmem [resolvable:$true] %s511_s7 }
 0x118   : > { %s4777_s11 = scalar_lea.hbm %s5541_s6, %s3458_s1  ;;  %p4784_p11 = pnand %p5543_p9, %p4743_p0 }
 0x119   : > { %s3888_s24 = scalar_lea.hbm %s4777_s11, 768  ;;  %s3893_s18 = scalar_lea.hbm %s5541_s6, 1536 }
 0x11a   : > { %p3889_p2 = scmp.ne.s32.totalorder %s4777_s11, %s3888_s24  ;;  %p3890_p1 = pneg %p4784_p11 }
 0x11b   : > { %p3894_p13 = scmp.lt.u32.totalorder %s4777_s11, %s5541_s6  ;;  %p3895_p7 = scmp.lt.u32.totalorder %s3893_s18, %s3888_s24 }
 0x11c   : > { %p3891_p3 = pnand %p3890_p1, %p3889_p2  ;;  %p3897_p6 = scmp.lt.u32.totalorder %s3888_s24, %s4777_s11 }
 0x11d   : > { %p3896_p9 = por %p3895_p7, %p3894_p13 }
 0x11e   : > { %p3892_p4 = pneg %p3891_p3 }
 0x11f   : > { %p3898_p12 = por %p3897_p6, %p3896_p9 }
 0x121   : > { %p3899_p0 = pnand %p3898_p12, %p3892_p4 }
 0x123   : > { %3902 = shalt.err (!%p3899_p0)
}
 0x124   : > { %s3903_s16 = scalar_lea.vmem %s488_s13, 768  ;;  %p3911_p10 = scmp.lt.s32.totalorder %s488_s13, %s488_s13 }
 0x125   : > { %p3904_p5 = scmp.ne.s32.totalorder %s488_s13, %s3903_s16  ;;  %p3912_p8 = scmp.lt.s32.totalorder %s3903_s16, %s3903_s16 }
 0x127   : > { %p3906_p2 = pnand %p3904_p5, %p3890_p1  ;;  %p3913_p7 = por %p3912_p8, %p3911_p10 }
 0x129   : > { %p3907_p3 = pneg %p3906_p2 }
 0x12b   : > { %p3914_p13 = pnand %p3913_p7, %p3907_p3 }
 0x12d   : > { %3917 = shalt.err (!%p3914_p13)
}
 0x12e   : > { %s5545_s4 = sld [smem:[#allocation45_spill]]  ;;  %s5547_s27 = sld [smem:[#allocation52_spill]] }
 0x12f   : > { %3504 = dma.hbm_to_vmem [thread:$0]  (!%p4784_p11), %s4777_s11, 768, %s488_s13, [#allocation4]  }
 0x130   : > { %s5546_s1 = sld [smem:[#allocation54_spill]] }
 0x134   : > { %s5548_s30 = smov %s5547_s27  ;;  %s3918_s23 = scalar_lea.hbm %s5547_s27, 128 }
 0x135   : > { %p3919_p8 = scmp.ne.s32.totalorder %s5548_s30, %s3918_s23  ;;  %p5549_p10 = scmp.ne.s32.totalorder %s5545_s4, 0 }
 0x136   : > { %s4813_s9 = scalar_lea.hbm %s5546_s1, %s4515_s19  ;;  %p3925_p5 = scmp.lt.u32.totalorder %s3918_s23, %s5548_s30 }
 0x137   : > { %p5550_p0 = pneg %p5549_p10 }
 0x139   : > { %p3921_p12 = pnand %p3919_p8, %p5550_p0 }
 0x13b   : > { %p3922_p6 = pneg %p3921_p12 }
 0x13d   : > { %p3927_p11 = pnand %p3925_p5, %p3922_p6 }
 0x13f   : > { %3930 = shalt.err (!%p3927_p11)
}
 0x140   : > { %s3931_s13 = scalar_lea.vmem %s512_s7, 128  ;;  %p5551_p4 = pmov %p5550_p0 }
 0x141   : > { %p3932_p1 = scmp.ne.s32.totalorder %s512_s7, %s3931_s13  ;;  %p3939_p3 = scmp.lt.s32.totalorder %s512_s7, %s512_s7 }
 0x142   : > { %p3940_p7 = scmp.lt.s32.totalorder %s3931_s13, %s3931_s13 }
 0x143   : > { %p3934_p9 = pnand %p3932_p1, %p5551_p4 }
 0x144   : > { %p3941_p13 = por %p3940_p7, %p3939_p3 }
 0x145   : > { %p3935_p2 = pneg %p3934_p9 }
 0x147   : > { %p3942_p0 = pnand %p3941_p13, %p3935_p2 }
 0x149   : > { %3945 = shalt.err (!%p3942_p0)
}
 0x14a   : > { %3510 = dma.hbm_to_vmem [thread:$0]  (!%p5549_p10), %s5548_s30, 128, %s512_s7, [#allocation7]  }
 0x14b   : > { %s542_s23 = scalar_lea.vmem [#allocation11], %s4476_s17  ;;  %s3461_s15 = smul.u32 3, %s4476_s17 }
 0x14c   : > { %s549_s3 = sshll.u32 %s542_s23, 4  ;;  %s3462_s24 = smul.u32 48, %s4268_s26  ;;  %s550_s3 = int_to_ptr.vmem [resolvable:$true] %s549_s3 }
 0x14d   : > { %s3946_s18 = scalar_lea.hbm %s4813_s9, 16  ;;  %p5552_p12 = scmp.ne.s32.totalorder %s5519_s12, 0 }
 0x14e   : > { %p3947_p8 = scmp.ne.s32.totalorder %s4813_s9, %s3946_s18  ;;  %s3951_s5 = scalar_lea.hbm %s5546_s1, 32 }
 0x14f   : > { %p3952_p11 = scmp.lt.u32.totalorder %s4813_s9, %s5546_s1  ;;  %p3953_p1 = scmp.lt.u32.totalorder %s3951_s5, %s3946_s18 }
 0x150   : > { %p3949_p6 = pnand %p3947_p8, %p5552_p12  ;;  %p3955_p4 = scmp.lt.u32.totalorder %s3946_s18, %s4813_s9 }
 0x151   : > { %p3954_p10 = por %p3953_p1, %p3952_p11 }
 0x152   : > { %p3950_p5 = pneg %p3949_p6 }
 0x153   : > { %p3956_p9 = por %p3955_p4, %p3954_p10 }
 0x155   : > { %p3957_p2 = pnand %p3956_p9, %p3950_p5 }
 0x157   : > { %3960 = shalt.err (!%p3957_p2)
}
 0x158   : > { %s3961_s7 = scalar_lea.vmem %s550_s3, 16  ;;  %s4293_s27 = smov [#allocation11]  }
 0x159   : > { %p3962_p3 = scmp.ne.s32.totalorder %s550_s3, %s3961_s7  ;;  %s3966_s6 = sshll.u32 %s4293_s27, 4  ;;  %s3967_s6 = int_to_ptr.vmem [resolvable:$false] %s3966_s6 }
 0x15a   : > { %s3968_s23 = scalar_lea.vmem %s3967_s6, 32  ;;  %p3969_p0 = scmp.lt.s32.totalorder %s550_s3, %s3967_s6 }
 0x15b   : > { %p3964_p7 = pnand %p3962_p3, %p5552_p12  ;;  %p3970_p8 = scmp.lt.s32.totalorder %s3968_s23, %s3961_s7 }
 0x15d   : > { %p3965_p13 = pneg %p3964_p7  ;;  %p3971_p6 = por %p3970_p8, %p3969_p0 }
 0x15f   : > { %p3972_p1 = pnand %p3971_p6, %p3965_p13 }
 0x161   : > { %3975 = shalt.err (!%p3972_p1)
}
 0x162   : > { %p5553_p11 = scmp.ne.s32.totalorder %s5517_s2, 0  ;;  %s5554_s18 = scalar_lea.sflag [#allocation10], %s4512_s14 }
 0x163   : > { %s5555_s5 = sld [smem:[#allocation56_spill]]  ;;  %s581_s13 = scalar_lea.vmem [#allocation14], %s3461_s15 }
 0x164   : > { %3517 = dma.hbm_to_vmem [thread:$0]  (!%p5553_p11), %s4813_s9, 16, %s550_s3, %s5554_s18  }
 0x165   : > { %s589_s7 = sshll.u32 %s581_s13, 4  ;;  %s5556_s23 = sld [smem:[#allocation58_spill]]  ;;  %s590_s7 = int_to_ptr.vmem [resolvable:$true] %s589_s7 }
 0x169   : > { %s4860_s11 = scalar_lea.hbm %s5555_s5, %s3462_s24  ;;  %s3981_s24 = scalar_lea.hbm %s5555_s5, 96 }
 0x16a   : > { %s3976_s20 = scalar_lea.hbm %s4860_s11, 48  ;;  %p3982_p9 = scmp.lt.u32.totalorder %s4860_s11, %s5555_s5 }
 0x16b   : > { %s5557_s1 = smov %s5556_s23  ;;  %s4868_s30 = scalar_lea.hbm %s5556_s23, %s4515_s19 }
 0x16c   : > { %p3977_p5 = scmp.ne.s32.totalorder %s4860_s11, %s3976_s20  ;;  %p3983_p2 = scmp.lt.u32.totalorder %s3981_s24, %s3976_s20 }
 0x16d   : > { %p3985_p7 = scmp.lt.u32.totalorder %s3976_s20, %s4860_s11 }
 0x16e   : > { %p3979_p10 = pnand %p3977_p5, %p5552_p12  ;;  %p3984_p3 = por %p3983_p2, %p3982_p9 }
 0x170   : > { %p3980_p4 = pneg %p3979_p10  ;;  %p3986_p13 = por %p3985_p7, %p3984_p3 }
 0x172   : > { %p3987_p0 = pnand %p3986_p13, %p3980_p4 }
 0x174   : > { %3990 = shalt.err (!%p3987_p0)
}
 0x175   : > { %s3991_s15 = scalar_lea.vmem %s590_s7, 48  ;;  %s4294_s16 = smov [#allocation14]  }
 0x176   : > { %p3992_p8 = scmp.ne.s32.totalorder %s590_s7, %s3991_s15  ;;  %s3996_s13 = sshll.u32 %s4294_s16, 4  ;;  %s3997_s13 = int_to_ptr.vmem [resolvable:$false] %s3996_s13 }
 0x177   : > { %s3998_s27 = scalar_lea.vmem %s3997_s13, 96  ;;  %p3999_p5 = scmp.lt.s32.totalorder %s590_s7, %s3997_s13 }
 0x178   : > { %p3994_p6 = pnand %p3992_p8, %p5552_p12  ;;  %p4000_p10 = scmp.lt.s32.totalorder %s3998_s27, %s3991_s15 }
 0x17a   : > { %p3995_p1 = pneg %p3994_p6  ;;  %p4001_p11 = por %p4000_p10, %p3999_p5 }
 0x17c   : > { %p4002_p2 = pnand %p4001_p11, %p3995_p1 }
 0x17e   : > { %4005 = shalt.err (!%p4002_p2)
}
 0x17f   : > { %p5558_p9 = scmp.ne.s32.totalorder %s5517_s2, 0  ;;  %s5559_s20 = scalar_lea.sflag [#allocation13], %s4512_s14 }
 0x180   : > { %s620_s6 = scalar_lea.vmem [#allocation17], %s4476_s17  ;;  %s5560_s24 = sld [smem:[#allocation60_spill]] }
 0x181   : > { %3523 = dma.hbm_to_vmem [thread:$0]  (!%p5558_p9), %s4860_s11, 48, %s590_s7, %s5559_s20  }
 0x182   : > { %s627_s23 = sshll.u32 %s620_s6, 4  ;;  %s4006_s15 = scalar_lea.hbm %s4868_s30, 16  ;;  %s628_s23 = int_to_ptr.vmem [resolvable:$true] %s627_s23 }
 0x183   : > { %p4007_p11 = scmp.ne.s32.totalorder %s4868_s30, %s4006_s15  ;;  %s4011_s27 = scalar_lea.hbm %s5557_s1, 32 }
 0x184   : > { %p4012_p7 = scmp.lt.u32.totalorder %s4868_s30, %s5557_s1  ;;  %p4013_p13 = scmp.lt.u32.totalorder %s4011_s27, %s4006_s15 }
 0x185   : > { %p4009_p4 = pnand %p4007_p11, %p5552_p12  ;;  %p4015_p8 = scmp.lt.u32.totalorder %s4006_s15, %s4868_s30 }
 0x186   : > { %s5561_s4 = smov %s5560_s24  ;;  %s4894_s18 = scalar_lea.hbm %s5560_s24, %s4515_s19 }
 0x187   : > { %p4010_p3 = pneg %p4009_p4  ;;  %p4014_p0 = por %p4013_p13, %p4012_p7 }
 0x189   : > { %p4016_p6 = por %p4015_p8, %p4014_p0 }
 0x18b   : > { %p4017_p1 = pnand %p4016_p6, %p4010_p3 }
 0x18d   : > { %4020 = shalt.err (!%p4017_p1)
}
 0x18e   : > { %s4021_s11 = scalar_lea.vmem %s628_s23, 16  ;;  %s4295_s7 = smov [#allocation17]  }
 0x18f   : > { %p4022_p5 = scmp.ne.s32.totalorder %s628_s23, %s4021_s11  ;;  %s4026_s20 = sshll.u32 %s4295_s7, 4  ;;  %s4027_s20 = int_to_ptr.vmem [resolvable:$false] %s4026_s20 }
 0x190   : > { %s4028_s6 = scalar_lea.vmem %s4027_s20, 32  ;;  %p4029_p11 = scmp.lt.s32.totalorder %s628_s23, %s4027_s20 }
 0x191   : > { %p4024_p10 = pnand %p4022_p5, %p5552_p12  ;;  %p4030_p4 = scmp.lt.s32.totalorder %s4028_s6, %s4021_s11 }
 0x193   : > { %p4025_p2 = pneg %p4024_p10  ;;  %p4031_p9 = por %p4030_p4, %p4029_p11 }
 0x195   : > { %p4032_p7 = pnand %p4031_p9, %p4025_p2 }
 0x197   : > { %4035 = shalt.err (!%p4032_p7)
}
 0x198   : > { %p5562_p13 = scmp.ne.s32.totalorder %s5517_s2, 0  ;;  %s5563_s10 = scalar_lea.sflag [#allocation16], %s4512_s14 }
 0x199   : > { %s654_s5 = scalar_lea.vmem [#allocation20], %s4476_s17  ;;  %s2812_s3 = sshll.u32 %s4476_s17, 2 }
 0x19a   : > { %3529 = dma.hbm_to_vmem [thread:$0]  (!%p5562_p13), %s4868_s30, 16, %s628_s23, %s5563_s10  }
 0x19b   : > { %s661_s9 = sshll.u32 %s654_s5, 4  ;;  %s4036_s24 = scalar_lea.hbm %s4894_s18, 16  ;;  %s662_s9 = int_to_ptr.vmem [resolvable:$true] %s661_s9 }
 0x19c   : > { %p4037_p9 = scmp.ne.s32.totalorder %s4894_s18, %s4036_s24  ;;  %s4041_s13 = scalar_lea.hbm %s5561_s4, 32 }
 0x19d   : > { %p4042_p8 = scmp.lt.u32.totalorder %s4894_s18, %s5561_s4  ;;  %p4043_p6 = scmp.lt.u32.totalorder %s4041_s13, %s4036_s24 }
 0x19e   : > { %p4039_p3 = pnand %p4037_p9, %p5552_p12  ;;  %p4045_p5 = scmp.lt.u32.totalorder %s4036_s24, %s4894_s18 }
 0x19f   : > { %p4044_p1 = por %p4043_p6, %p4042_p8 }
 0x1a0   : > { %p4040_p0 = pneg %p4039_p3 }
 0x1a1   : > { %p4046_p10 = por %p4045_p5, %p4044_p1 }
 0x1a3   : > { %p4047_p2 = pnand %p4046_p10, %p4040_p0 }
 0x1a5   : > { %4050 = shalt.err (!%p4047_p2)
}
 0x1a6   : > { %s4051_s30 = scalar_lea.vmem %s662_s9, 16  ;;  %s4296_s23 = smov [#allocation20]  }
 0x1a7   : > { %p4052_p11 = scmp.ne.s32.totalorder %s662_s9, %s4051_s30  ;;  %s4056_s7 = sshll.u32 %s4296_s23, 4  ;;  %s4057_s7 = int_to_ptr.vmem [resolvable:$false] %s4056_s7 }
 0x1a8   : > { %s4058_s20 = scalar_lea.vmem %s4057_s7, 32  ;;  %p4059_p9 = scmp.lt.s32.totalorder %s662_s9, %s4057_s7 }
 0x1a9   : > { %p4054_p4 = pnand %p4052_p11, %p5552_p12  ;;  %p4060_p3 = scmp.lt.s32.totalorder %s4058_s20, %s4051_s30 }
 0x1ab   : > { %p4055_p7 = pneg %p4054_p4  ;;  %p4061_p13 = por %p4060_p3, %p4059_p9 }
 0x1ad   : > { %p4062_p6 = pnand %p4061_p13, %p4055_p7 }
 0x1af   : > { %4065 = shalt.err (!%p4062_p6)
}
 0x1b0   : > { %p5564_p8 = scmp.ne.s32.totalorder %s5517_s2, 0  ;;  %s5565_s6 = scalar_lea.sflag [#allocation19], %s4512_s14 }
 0x1b1   : > { %s2845_s10 = sshll.u32 %s4268_s26, 6  ;;  %s693_s5 = scalar_lea.vmem [#allocation23], %s2812_s3 }
 0x1b2   : > { %3535 = dma.hbm_to_vmem [thread:$0]  (!%p5564_p8), %s4894_s18, 16, %s662_s9, %s5565_s6  }
 0x1b3   : > { %s701_s24 = sshll.u32 %s693_s5, 4  ;;  %s5566_s13 = sld [smem:[#allocation62_spill]]  ;;  %s702_s24 = int_to_ptr.vmem [resolvable:$true] %s701_s24 }
 0x1b9   : > { %s699_s27 = scalar_lea.hbm %s5566_s13, %s2845_s10  ;;  %s4071_s7 = scalar_lea.hbm %s5566_s13, 128 }
 0x1ba   : > { %s4066_s11 = scalar_lea.hbm %s699_s27, 64  ;;  %p4072_p5 = scmp.lt.u32.totalorder %s699_s27, %s5566_s13 }
 0x1bb   : > { %p4067_p13 = scmp.ne.s32.totalorder %s699_s27, %s4066_s11  ;;  %p4073_p10 = scmp.lt.u32.totalorder %s4071_s7, %s4066_s11 }
 0x1bc   : > { %p4075_p11 = scmp.lt.u32.totalorder %s4066_s11, %s699_s27 }
 0x1bd   : > { %p4069_p0 = pnand %p4067_p13, %p5552_p12  ;;  %p4074_p2 = por %p4073_p10, %p4072_p5 }
 0x1bf   : > { %p4070_p1 = pneg %p4069_p0  ;;  %p4076_p4 = por %p4075_p11, %p4074_p2 }
 0x1c1   : > { %p4077_p7 = pnand %p4076_p4, %p4070_p1 }
 0x1c3   : > { %4080 = shalt.err (!%p4077_p7)
}
 0x1c4   : > { %s4081_s9 = scalar_lea.vmem %s702_s24, 64  ;;  %s4297_s3 = smov [#allocation23]  }
 0x1c5   : > { %p4082_p9 = scmp.ne.s32.totalorder %s702_s24, %s4081_s9  ;;  %s4086_s6 = sshll.u32 %s4297_s3, 4  ;;  %s4087_s6 = int_to_ptr.vmem [resolvable:$false] %s4086_s6 }
 0x1c6   : > { %s4088_s10 = scalar_lea.vmem %s4087_s6, 128  ;;  %p4089_p13 = scmp.lt.s32.totalorder %s702_s24, %s4087_s6 }
 0x1c7   : > { %p4084_p3 = pnand %p4082_p9, %p5552_p12  ;;  %p4090_p0 = scmp.lt.s32.totalorder %s4088_s10, %s4081_s9 }
 0x1c9   : > { %p4085_p6 = pneg %p4084_p3  ;;  %p4091_p8 = por %p4090_p0, %p4089_p13 }
 0x1cb   : > { %p4092_p5 = pnand %p4091_p8, %p4085_p6 }
 0x1cd   : > { %4095 = shalt.err (!%p4092_p5)
}
 0x1ce   : > { %p5567_p10 = scmp.ne.s32.totalorder %s5517_s2, 0  ;;  %s5568_s5 = scalar_lea.sflag [#allocation22], %s4512_s14 }
 0x1cf   : > { %s5569_s11 = sld [smem:[#allocation64_spill]]  ;;  %s732_s23 = scalar_lea.vmem [#allocation26], %s4476_s17 }
 0x1d0   : > { %3541 = dma.hbm_to_vmem [thread:$0]  (!%p5567_p10), %s699_s27, 64, %s702_s24, %s5568_s5  }
 0x1d1   : > { %s739_s7 = sshll.u32 %s732_s23, 4  ;;  %s740_s7 = int_to_ptr.vmem [resolvable:$true] %s739_s7 }
 0x1d5   : > { %s4960_s30 = scalar_lea.hbm %s5569_s11, %s4515_s19  ;;  %s4101_s24 = scalar_lea.hbm %s5569_s11, 32 }
 0x1d6   : > { %s4096_s20 = scalar_lea.hbm %s4960_s30, 16  ;;  %p4102_p11 = scmp.lt.u32.totalorder %s4960_s30, %s5569_s11 }
 0x1d7   : > { %p4097_p8 = scmp.ne.s32.totalorder %s4960_s30, %s4096_s20  ;;  %p4103_p4 = scmp.lt.u32.totalorder %s4101_s24, %s4096_s20 }
 0x1d8   : > { %p4105_p9 = scmp.lt.u32.totalorder %s4096_s20, %s4960_s30 }
 0x1d9   : > { %p4099_p1 = pnand %p4097_p8, %p5552_p12  ;;  %p4104_p7 = por %p4103_p4, %p4102_p11 }
 0x1db   : > { %p4100_p2 = pneg %p4099_p1  ;;  %p4106_p3 = por %p4105_p9, %p4104_p7 }
 0x1dd   : > { %p4107_p6 = pnand %p4106_p3, %p4100_p2 }
 0x1df   : > { %4110 = shalt.err (!%p4107_p6)
}
 0x1e0   : > { %s4111_s17 = scalar_lea.vmem %s740_s7, 16  ;;  %s4298_s19 = smov [#allocation26]  }
 0x1e1   : > { %p4112_p13 = scmp.ne.s32.totalorder %s740_s7, %s4111_s17  ;;  %s4116_s6 = sshll.u32 %s4298_s19, 4  ;;  %s4117_s6 = int_to_ptr.vmem [resolvable:$false] %s4116_s6 }
 0x1e2   : > { %s4118_s10 = scalar_lea.vmem %s4117_s6, 32  ;;  %p4119_p8 = scmp.lt.s32.totalorder %s740_s7, %s4117_s6 }
 0x1e3   : > { %p4114_p0 = pnand %p4112_p13, %p5552_p12  ;;  %p4120_p1 = scmp.lt.s32.totalorder %s4118_s10, %s4111_s17 }
 0x1e5   : > { %p4115_p5 = pneg %p4114_p0  ;;  %p4121_p10 = por %p4120_p1, %p4119_p8 }
 0x1e7   : > { %p4122_p4 = pnand %p4121_p10, %p4115_p5 }
 0x1e9   : > { %4125 = shalt.err (!%p4122_p4)
}
 0x1ea   : > { %p5570_p11 = scmp.ne.s32.totalorder %s5517_s2, 0  ;;  %s5571_s5 = scalar_lea.sflag [#allocation25], %s4512_s14 }
 0x1eb   : > { %p5572_p2 = scmp.ne.s32.totalorder %s5533_s8, 0 }
 0x1ec   : > { %3547 = dma.hbm_to_vmem [thread:$0]  (!%p5570_p11), %s4960_s30, 16, %s740_s7, %s5571_s5  }
 0x1ed   : > { %748 = sbr.rel (%p5572_p2) target bundleno = 3320 (0xcf8), region = 80  ;;  %p5573_p12 = scmp.ne.s32.totalorder (!%p5572_p2), %s5532_s25, 0 }
 0x1f4   : > { %4199 = dma.done.wait (%p5573_p12), [#allocation4], 768  }
 0x1f5   : > { %4201 = vsyncadd (%p5573_p12), [#allocation4], 4294966528  ;;  %p5574_p7 = scmp.eq.s32.totalorder %s4439_s29, 0 }
 0x1f7   : > { %4203 = dma.done.wait (%p5574_p7), [#allocation7], 12416   ;;  %p5575_p10 = pmov %p5574_p7 }
 0x1f8   : > { %s5576_s2 = sld [smem:[#allocation37_spill]]  ;;  %s5577_s14 = sld [smem:[#allocation43_spill]] }
 0x1f9   : > { %4205 = vsyncadd (%p5575_p10), [#allocation7], 4294954880  ;;  %s4993_s12 = sand.u32 1, %s4439_s29  }
 0x1fa   : > { %s763_s15 = scalar_lea.sflag [#allocation10], %s4993_s12 }
 0x1fe   : > { %s4996_s8 = sand.u32 1, %s5576_s2   ;;  %p5578_p9 = scmp.ne.s32.totalorder %s5577_s14, 0 }
 0x1ff   : > { %s765_s16 = scalar_lea.vmem [#allocation9], %s4996_s8 }
 0x200   : > { %4207 = dma.done.wait (%p5578_p9), %s763_s15, 32  }
 0x201   : > { %4209 = vsyncadd (%p5578_p9), %s763_s15, 4294967264  ;;  %s3463_s25 = smul.u32 384, %s4996_s8  ;;  %s773_s30 = scalar_lea.vmem [#allocation11], %s4996_s8 }
 0x202   : > { %s779_s23 = scalar_lea.sflag [#allocation13], %s4993_s12 }
 0x203   : > { %s5007_s29 = scalar_lea.vmem [#allocation12], %s3463_s25 }
 0x204   : > { %4211 = dma.done.wait (%p5578_p9), %s779_s23, 6192  }
 0x205   : > { %4213 = vsyncadd (%p5578_p9), %s779_s23, 4294961104  ;;  %s3464_s7 = smul.u32 3, %s4996_s8  ;;  %s2822_s20 = sshll.u32 %s4996_s8, 7 }
 0x206   : > { %s797_s9 = scalar_lea.sflag [#allocation16], %s4993_s12  ;;  %s5018_s24 = scalar_lea.vmem [#allocation15], %s2822_s20 }
 0x207   : > { %s5015_s18 = scalar_lea.vmem [#allocation14], %s3464_s7 }
 0x208   : > { %4215 = dma.done.wait (%p5578_p9), %s797_s9, 2064  }
 0x209   : > { %4217 = vsyncadd (%p5578_p9), %s797_s9, 4294965232  ;;  %s808_s27 = scalar_lea.vmem [#allocation17], %s4996_s8  ;;  %s814_s3 = scalar_lea.sflag [#allocation19], %s4993_s12 }
 0x20a   : > { %s816_s17 = scalar_lea.vmem [#allocation18], %s4996_s8 }
 0x20b   : > { %4219 = dma.done.wait (%p5578_p9), %s814_s3, 32  }
 0x20c   : > { %4221 = vsyncadd (%p5578_p9), %s814_s3, 4294967264  ;;  %s2823_s19 = sshll.u32 %s4996_s8, 9  ;;  %s824_s6 = scalar_lea.vmem [#allocation20], %s4996_s8 }
 0x20d   : > { %s830_s10 = scalar_lea.sflag [#allocation22], %s4993_s12  ;;  %s5034_s5 = scalar_lea.vmem [#allocation21], %s2823_s19 }
 0x20e   : > { %4223 = dma.done.wait (%p5578_p9), %s830_s10, 8256  }
 0x20f   : > { %4225 = vsyncadd (%p5578_p9), %s830_s10, 4294959040  ;;  %s2824_s2 = sshll.u32 %s4996_s8, 2  ;;  %s848_s25 = scalar_lea.sflag [#allocation25], %s4993_s12 }
 0x210   : > { %s5041_s15 = scalar_lea.vmem [#allocation23], %s2824_s2  ;;  %s5044_s23 = scalar_lea.vmem [#allocation24], %s2823_s19 }
 0x211   : > { %4227 = dma.done.wait (%p5578_p9), %s848_s25, 8208  }
 0x212   : > { %4229 = vsyncadd (%p5578_p9), %s848_s25, 4294959088  ;;  %s952_s7 = sand.u32 1, %s4252_s22   ;;  %s859_s20 = scalar_lea.vmem [#allocation26], %s4996_s8 }
 0x213   : > { %s5054_s9 = scalar_lea.vmem [#allocation27], %s952_s7  ;;  %s5579_s3 = sld [smem:[#allocation40_spill]] }
 0x219   : > { %p2826_p3 = scmp.ne.s32.totalorder %s5579_s3, 0 }
 0x21a   : > { %v980_v0 = vld [vmem:[#allocation6 + $0x80] sm:$0xff] (!%p2826_p3)  ;;  %v981_v1 = vld [vmem:[#allocation6 + $0x88] sm:$0xff] (!%p2826_p3)  ;;  %v982_v11 = vld [vmem:[#allocation6 + $0x90] sm:$0xff] (!%p2826_p3) }
 0x21b   : > { %957 = sbr.rel (%p2826_p3) target bundleno = 826 (0x33a), region = 144  ;;  %v1012_v2 = vld [vmem:[#allocation6 + $0x180] sm:$0xff] (!%p2826_p3)  ;;  %v3154_v3 = vpack.c.bf16 (!%p2826_p3), %v981_v1, %v980_v0  ;;  %v1013_v4 = vld [vmem:[#allocation6 + $0x188] sm:$0xff] (!%p2826_p3)  ;;  %v983_v13 = vld [vmem:[#allocation6 + $0x98] sm:$0xff] (!%p2826_p3) }
 0x21c   : > { %v964_v5 = vld [vmem:[#allocation6] sm:$0xff] (!%p2826_p3)  ;;  %v965_v6 = vld [vmem:[#allocation6 + $0x8] sm:$0xff] (!%p2826_p3)  ;;  %v3186_v7 = vpack.c.bf16 (!%p2826_p3), %v1013_v4, %v1012_v2  ;;  %v1014_v14 = vld [vmem:[#allocation6 + $0x190] sm:$0xff] (!%p2826_p3)  ;;  %v3158_v16 = vpack.c.bf16 (!%p2826_p3), %v983_v13, %v982_v11 }
 0x21d   : > { %v3156_v8 = vpack.c.bf16 (!%p2826_p3), %v965_v6, %v964_v5  ;;  %v996_v9 = vld [vmem:[#allocation6 + $0x100] sm:$0xff] (!%p2826_p3)  ;;  %v997_v10 = vld [vmem:[#allocation6 + $0x108] sm:$0xff] (!%p2826_p3)  ;;  %3155 = vmatprep.subr.bf16.mxu0 (!%p2826_p3), %v3154_v3  ;;  %v1015_v15 = vld [vmem:[#allocation6 + $0x198] sm:$0xff] (!%p2826_p3) }
 0x21e   : > { %v3188_v12 = vpack.c.bf16 (!%p2826_p3), %v997_v10, %v996_v9  ;;  %3187 = vmatprep.subr.bf16.mxu1 (!%p2826_p3), %v3186_v7  ;;  %v3190_v17 = vpack.c.bf16 (!%p2826_p3), %v1015_v15, %v1014_v14  ;;  %v966_v18 = vld [vmem:[#allocation6 + $0x10] sm:$0xff] (!%p2826_p3)  ;;  %v967_v19 = vld [vmem:[#allocation6 + $0x18] sm:$0xff] (!%p2826_p3)  ;;  %v984_v23 = vld [vmem:[#allocation6 + $0xa0] sm:$0xff] (!%p2826_p3) }
 0x21f   : > { %3157 = vmatpush3.bf16.msra.mxu0 (!%p2826_p3), %v3156_v8  ;;  %v998_v20 = vld [vmem:[#allocation6 + $0x110] sm:$0xff] (!%p2826_p3)  ;;  %v3160_v21 = vpack.c.bf16 (!%p2826_p3), %v967_v19, %v966_v18  ;;  %v999_v22 = vld [vmem:[#allocation6 + $0x118] sm:$0xff] (!%p2826_p3)  ;;  %v985_v24 = vld [vmem:[#allocation6 + $0xa8] sm:$0xff] (!%p2826_p3) }
 0x220   : > { %3189 = vmatpush3.bf16.msra.mxu1 (!%p2826_p3), %v3188_v12  ;;  %3159 = vmatprep.subr.bf16.mxu0 (!%p2826_p3), %v3158_v16  ;;  %v3192_v25 = vpack.c.bf16 (!%p2826_p3), %v999_v22, %v998_v20  ;;  %v3162_v26 = vpack.c.bf16 (!%p2826_p3), %v985_v24, %v984_v23  ;;  %v1016_v27 = vld [vmem:[#allocation6 + $0x1a0] sm:$0xff] (!%p2826_p3)  ;;  %v1017_v28 = vld [vmem:[#allocation6 + $0x1a8] sm:$0xff] (!%p2826_p3)  ;;  %v986_v35 = vld [vmem:[#allocation6 + $0xb0] sm:$0xff] (!%p2826_p3) }
 0x221   : > { %3191 = vmatprep.subr.bf16.mxu1 (!%p2826_p3), %v3190_v17  ;;  %v968_v29 = vld [vmem:[#allocation6 + $0x20] sm:$0xff] (!%p2826_p3)  ;;  %v3194_v30 = vpack.c.bf16 (!%p2826_p3), %v1017_v28, %v1016_v27  ;;  %v969_v31 = vld [vmem:[#allocation6 + $0x28] sm:$0xff] (!%p2826_p3)  ;;  %v987_v36 = vld [vmem:[#allocation6 + $0xb8] sm:$0xff] (!%p2826_p3) }
 0x222   : > { %v1000_v32 = vld [vmem:[#allocation6 + $0x120] sm:$0xff]  ;;  %v1001_v33 = vld [vmem:[#allocation6 + $0x128] sm:$0xff]  ;;  %v3164_v34 = vpack.c.bf16 %v969_v31, %v968_v29  ;;  %v1018_v37 = vld [vmem:[#allocation6 + $0x1b0] sm:$0xff]  ;;  %v3166_v39 = vpack.c.bf16 %v987_v36, %v986_v35 }
 0x223   : > { %3161 = vmatpush3.bf16.msra.mxu0 %v3160_v21  ;;  %v3196_v38 = vpack.c.bf16 %v1001_v33, %v1000_v32  ;;  %v1019_v40 = vld [vmem:[#allocation6 + $0x1b8] sm:$0xff]  ;;  %v970_v41 = vld [vmem:[#allocation6 + $0x30] sm:$0xff]  ;;  %v988_v46 = vld [vmem:[#allocation6 + $0xc0] sm:$0xff] }
 0x224   : > { %3193 = vmatpush3.bf16.msra.mxu1 %v3192_v25  ;;  %3163 = vmatprep.subr.bf16.mxu0 %v3162_v26  ;;  %v971_v42 = vld [vmem:[#allocation6 + $0x38] sm:$0xff]  ;;  %v3198_v43 = vpack.c.bf16 %v1019_v40, %v1018_v37  ;;  %v1002_v44 = vld [vmem:[#allocation6 + $0x130] sm:$0xff]  ;;  %v989_v47 = vld [vmem:[#allocation6 + $0xc8] sm:$0xff] }
 0x225   : > { %3195 = vmatprep.subr.bf16.mxu1 %v3194_v30  ;;  %v1003_v45 = vld [vmem:[#allocation6 + $0x138] sm:$0xff]  ;;  %v1020_v48 = vld [vmem:[#allocation6 + $0x1c0] sm:$0xff]  ;;  %v1021_v49 = vld [vmem:[#allocation6 + $0x1c8] sm:$0xff]  ;;  %v3168_v50 = vpack.c.bf16 %v971_v42, %v970_v41  ;;  %v3170_v52 = vpack.c.bf16 %v989_v47, %v988_v46 }
 0x226   : > { %v3200_v51 = vpack.c.bf16 %v1003_v45, %v1002_v44  ;;  %v972_v53 = vld [vmem:[#allocation6 + $0x40] sm:$0xff]  ;;  %v973_v54 = vld [vmem:[#allocation6 + $0x48] sm:$0xff]  ;;  %v3202_v56 = vpack.c.bf16 %v1021_v49, %v1020_v48  ;;  %v990_v58 = vld [vmem:[#allocation6 + $0xd0] sm:$0xff] }
 0x227   : > { %3165 = vmatpush3.bf16.msra.mxu0 %v3164_v34  ;;  %v1004_v55 = vld [vmem:[#allocation6 + $0x140] sm:$0xff]  ;;  %v1005_v57 = vld [vmem:[#allocation6 + $0x148] sm:$0xff]  ;;  %v991_v59 = vld [vmem:[#allocation6 + $0xd8] sm:$0xff]  ;;  %v3172_v62 = vpack.c.bf16 %v973_v54, %v972_v53 }
 0x228   : > { %3197 = vmatpush3.bf16.msra.mxu1 %v3196_v38  ;;  %3167 = vmatprep.subr.bf16.mxu0 %v3166_v39  ;;  %v1022_v60 = vld [vmem:[#allocation6 + $0x1d0] sm:$0xff]  ;;  %v1023_v61 = vld [vmem:[#allocation6 + $0x1d8] sm:$0xff]  ;;  %v3204_v63 = vpack.c.bf16 %v1005_v57, %v1004_v55  ;;  %v3174_v0 = vpack.c.bf16 %v991_v59, %v990_v58  ;;  %v992_v6 = vld [vmem:[#allocation6 + $0xe0] sm:$0xff] }
 0x229   : > { %3199 = vmatprep.subr.bf16.mxu1 %v3198_v43  ;;  %v974_v1 = vld [vmem:[#allocation6 + $0x50] sm:$0xff]  ;;  %v975_v2 = vld [vmem:[#allocation6 + $0x58] sm:$0xff]  ;;  %v3206_v4 = vpack.c.bf16 %v1023_v61, %v1022_v60  ;;  %v993_v7 = vld [vmem:[#allocation6 + $0xe8] sm:$0xff] }
 0x22a   : > { %v1006_v3 = vld [vmem:[#allocation6 + $0x150] sm:$0xff]  ;;  %v1007_v5 = vld [vmem:[#allocation6 + $0x158] sm:$0xff]  ;;  %v1024_v8 = vld [vmem:[#allocation6 + $0x1e0] sm:$0xff]  ;;  %v3176_v10 = vpack.c.bf16 %v975_v2, %v974_v1  ;;  %v3178_v14 = vpack.c.bf16 %v993_v7, %v992_v6 }
 0x22b   : > { %3169 = vmatpush3.bf16.msra.mxu0 %v3168_v50  ;;  %v1025_v9 = vld [vmem:[#allocation6 + $0x1e8] sm:$0xff]  ;;  %v976_v11 = vld [vmem:[#allocation6 + $0x60] sm:$0xff]  ;;  %v3208_v13 = vpack.c.bf16 %v1007_v5, %v1006_v3  ;;  %v959_v16 = vld [vmem:[#allocation3 + $0x8] sm:$0xff] }
 0x22c   : > { %3201 = vmatpush3.bf16.msra.mxu1 %v3200_v51  ;;  %3171 = vmatprep.subr.bf16.mxu0 %v3170_v52  ;;  %v977_v12 = vld [vmem:[#allocation6 + $0x68] sm:$0xff]  ;;  %v1008_v15 = vld [vmem:[#allocation6 + $0x160] sm:$0xff]  ;;  %v3210_v18 = vpack.c.bf16 %v1025_v9, %v1024_v8  ;;  %v994_v20 = vld [vmem:[#allocation6 + $0xf0] sm:$0xff] }
 0x22d   : > { %3203 = vmatprep.subr.bf16.mxu1 %v3202_v56  ;;  %v961_v17 = vld [vmem:[#allocation3 + $0x18] sm:$0xff]  ;;  %v995_v21 = vld [vmem:[#allocation6 + $0xf8] sm:$0xff]  ;;  %1124 = vmatprep.mubr.f32.mxu0 %v959_v16  ;;  %v1026_v22 = vld [vmem:[#allocation6 + $0x1f0] sm:$0xff]  ;;  %v3180_v24 = vpack.c.bf16 %v977_v12, %v976_v11 }
 0x22e   : > { %v1009_v19 = vld [vmem:[#allocation6 + $0x168] sm:$0xff]  ;;  %v1027_v23 = vld [vmem:[#allocation6 + $0x1f8] sm:$0xff]  ;;  %1194 = vmatprep.mubr.f32.mxu1 %v961_v17  ;;  %v3182_v26 = vpack.c.bf16 %v995_v21, %v994_v20  ;;  %v978_v27 = vld [vmem:[#allocation6 + $0x70] sm:$0xff] }
 0x22f   : > { %3173 = vmatpush3.bf16.msra.mxu0 %v3172_v62  ;;  %v3212_v25 = vpack.c.bf16 %v1009_v19, %v1008_v15  ;;  %v979_v28 = vld [vmem:[#allocation6 + $0x78] sm:$0xff]  ;;  %v1010_v29 = vld [vmem:[#allocation6 + $0x170] sm:$0xff]  ;;  %v3214_v30 = vpack.c.bf16 %v1027_v23, %v1026_v22  ;;  %v1044_v32 = vld [vmem:[#allocation6 + $0x280] sm:$0xff] }
 0x230   : > { %3205 = vmatpush3.bf16.msra.mxu1 %v3204_v63  ;;  %3175 = vmatprep.subr.bf16.mxu0 %v3174_v0  ;;  %v1011_v31 = vld [vmem:[#allocation6 + $0x178] sm:$0xff]  ;;  %v1045_v33 = vld [vmem:[#allocation6 + $0x288] sm:$0xff]  ;;  %v3184_v34 = vpack.c.bf16 %v979_v28, %v978_v27  ;;  %v1028_v37 = vld [vmem:[#allocation6 + $0x200] sm:$0xff] }
 0x231   : > { %3207 = vmatprep.subr.bf16.mxu1 %v3206_v4  ;;  %v3216_v35 = vpack.c.bf16 %v1011_v31, %v1010_v29  ;;  %v3218_v36 = vpack.c.bf16 %v1045_v33, %v1044_v32  ;;  %v1029_v38 = vld [vmem:[#allocation6 + $0x208] sm:$0xff]  ;;  %v1046_v39 = vld [vmem:[#allocation6 + $0x290] sm:$0xff]  ;;  %v1047_v40 = vld [vmem:[#allocation6 + $0x298] sm:$0xff] }
 0x232   : > { %v958_v41 = vld [vmem:[#allocation3] sm:$0xff]  ;;  %v3220_v42 = vpack.c.bf16 %v1029_v38, %v1028_v37  ;;  %v960_v43 = vld [vmem:[#allocation3 + $0x10] sm:$0xff]  ;;  %v3222_v44 = vpack.c.bf16 %v1047_v40, %v1046_v39  ;;  %v1031_v46 = vld [vmem:[#allocation6 + $0x218] sm:$0xff] }
 0x233   : > { %3177 = vmatpush3.bf16.msra.mxu0 %v3176_v10  ;;  %v1030_v45 = vld [vmem:[#allocation6 + $0x210] sm:$0xff]  ;;  %v1048_v47 = vld [vmem:[#allocation6 + $0x2a0] sm:$0xff]  ;;  %v1049_v48 = vld [vmem:[#allocation6 + $0x2a8] sm:$0xff] }
 0x234   : > { %3209 = vmatpush3.bf16.msra.mxu1 %v3208_v13  ;;  %3179 = vmatprep.subr.bf16.mxu0 %v3178_v14  ;;  %v963_v49 = vld [vmem:[#allocation3 + $0x28] sm:$0xff]  ;;  %v3224_v50 = vpack.c.bf16 %v1031_v46, %v1030_v45  ;;  %v3226_v51 = vpack.c.bf16 %v1049_v48, %v1048_v47  ;;  %v1032_v52 = vld [vmem:[#allocation6 + $0x220] sm:$0xff]  ;;  %v1033_v53 = vld [vmem:[#allocation6 + $0x228] sm:$0xff] }
 0x235   : > { %3211 = vmatprep.subr.bf16.mxu1 %v3210_v18  ;;  %v1050_v54 = vld [vmem:[#allocation6 + $0x2b0] sm:$0xff]  ;;  %v1051_v55 = vld [vmem:[#allocation6 + $0x2b8] sm:$0xff]  ;;  %v3228_v56 = vpack.c.bf16 %v1033_v53, %v1032_v52  ;;  %v1052_v60 = vld [vmem:[#allocation6 + $0x2c0] sm:$0xff] }
 0x236   : > { %v3230_v57 = vpack.c.bf16 %v1051_v55, %v1050_v54  ;;  %v1034_v58 = vld [vmem:[#allocation6 + $0x230] sm:$0xff]  ;;  %v1035_v59 = vld [vmem:[#allocation6 + $0x238] sm:$0xff]  ;;  %v1053_v61 = vld [vmem:[#allocation6 + $0x2c8] sm:$0xff] }
 0x237   : > { %3181 = vmatpush3.bf16.msra.mxu0 %v3180_v24  ;;  %v3232_v62 = vpack.c.bf16 %v1035_v59, %v1034_v58  ;;  %v3234_v63 = vpack.c.bf16 %v1053_v61, %v1052_v60  ;;  %v1036_v0 = vld [vmem:[#allocation6 + $0x240] sm:$0xff]  ;;  %v1037_v1 = vld [vmem:[#allocation6 + $0x248] sm:$0xff]  ;;  %v1054_v2 = vld [vmem:[#allocation6 + $0x2d0] sm:$0xff] }
 0x238   : > { %3213 = vmatpush3.bf16.msra.mxu1 %v3212_v25  ;;  %3183 = vmatprep.subr.bf16.mxu0 %v3182_v26  ;;  %v1055_v3 = vld [vmem:[#allocation6 + $0x2d8] sm:$0xff]  ;;  %v3236_v4 = vpack.c.bf16 %v1037_v1, %v1036_v0  ;;  %v1038_v6 = vld [vmem:[#allocation6 + $0x250] sm:$0xff]  ;;  %v1056_v8 = vld [vmem:[#allocation6 + $0x2e0] sm:$0xff] }
 0x239   : > { %3215 = vmatprep.subr.bf16.mxu1 %v3214_v30  ;;  %v3238_v5 = vpack.c.bf16 %v1055_v3, %v1054_v2  ;;  %v1039_v7 = vld [vmem:[#allocation6 + $0x258] sm:$0xff]  ;;  %v1057_v9 = vld [vmem:[#allocation6 + $0x2e8] sm:$0xff]  ;;  %v1040_v12 = vld [vmem:[#allocation6 + $0x260] sm:$0xff] }
 0x23a   : > { %v3240_v10 = vpack.c.bf16 %v1039_v7, %v1038_v6  ;;  %v3242_v11 = vpack.c.bf16 %v1057_v9, %v1056_v8  ;;  %v1041_v13 = vld [vmem:[#allocation6 + $0x268] sm:$0xff]  ;;  %v1058_v14 = vld [vmem:[#allocation6 + $0x2f0] sm:$0xff]  ;;  %v1059_v15 = vld [vmem:[#allocation6 + $0x2f8] sm:$0xff] }
 0x23b   : > { %3185 = vmatpush3.bf16.msra.mxu0 %v3184_v34  ;;  %v3244_v16 = vpack.c.bf16 %v1041_v13, %v1040_v12  ;;  %v3246_v17 = vpack.c.bf16 %v1059_v15, %v1058_v14  ;;  %v1042_v18 = vld [vmem:[#allocation6 + $0x270] sm:$0xff]  ;;  %v1043_v19 = vld [vmem:[#allocation6 + $0x278] sm:$0xff]  ;;  %v1270_v32 = vld [vmem:[#allocation8] sm:$0xff] }
 0x23c   : > { %3217 = vmatpush3.bf16.msra.mxu1 %v3216_v35  ;;  %3219 = vmatprep.subr.bf16.mxu0 %v3218_v36  ;;  %v3248_v20 = vpack.c.bf16 %v1043_v19, %v1042_v18  ;;  %v962_v21 = vld [vmem:[#allocation3 + $0x20] sm:$0xff] }
 0x23e   : > { %1125 = vmatmul.mubr.f32.vlgmr.msra.gmra.mrb[0].mxu0 %v958_v41 }
 0x23f   : > { %1195 = vmatmul.mubr.f32.vlgmr.msra.gmra.mrb[0].mxu1 %v960_v43  ;;  %3221 = vmatpush3.bf16.msra.mxu0 %v3220_v42 }
 0x240   : > { %3223 = vmatprep.subr.bf16.mxu0 %v3222_v44  ;;  %1264 = vmatprep.mubr.f32.mxu0 %v963_v49 }
 0x243   : > { %3225 = vmatpush3.bf16.msra.mxu0 %v3224_v50 }
 0x244   : > { %3227 = vmatprep.subr.bf16.mxu0 %v3226_v51 }
 0x247   : > { %3229 = vmatpush3.bf16.msra.mxu0 %v3228_v56 }
 0x248   : > { %3231 = vmatprep.subr.bf16.mxu0 %v3230_v57 }
 0x24b   : > { %3233 = vmatpush3.bf16.msra.mxu0 %v3232_v62 }
 0x24c   : > { %3235 = vmatprep.subr.bf16.mxu0 %v3234_v63 }
 0x24f   : > { %3237 = vmatpush3.bf16.msra.mxu0 %v3236_v4 }
 0x250   : > { %3239 = vmatprep.subr.bf16.mxu0 %v3238_v5 }
 0x253   : > { %3241 = vmatpush3.bf16.msra.mxu0 %v3240_v10 }
 0x254   : > { %3243 = vmatprep.subr.bf16.mxu0 %v3242_v11 }
 0x257   : > { %3245 = vmatpush3.bf16.msra.mxu0 %v3244_v16 }
 0x258   : > { %3247 = vmatprep.subr.bf16.mxu0 %v3246_v17 }
 0x25b   : > { %3249 = vmatpush3.bf16.msra.mxu0 %v3248_v20 }
 0x25e   : > { %1265 = vmatmul.mubr.f32.vlgmr.msra.gmra.mrb[2].mxu0 %v962_v21 }
 0x311   : > { %v2879_v22 = vpop.f32.mrb[0].mxu0 }
 0x312   : > { %v2914_v23 = vpop.f32.mrb[0].mxu1  ;;  %v2880_v24 = vpop.f32.mrb[1].mxu0 }
 0x313   : > { %v2881_v25 = vadd.f32 %v2880_v24, %v2879_v22  ;;  %v2915_v26 = vpop.f32.mrb[1].mxu1 }
 0x314   : > { %v2916_v27 = vadd.f32 %v2915_v26, %v2914_v23 }
 0x316   : > { %v1197_v28 = vadd.f32 %v2916_v27, %v2881_v25 }
 0x331   : > { %v2949_v29 = vpop.f32.mrb[2].mxu0 }
 0x332   : > { %v2950_v30 = vpop.f32.mrb[3].mxu0 }
 0x333   : > { %v2951_v31 = vadd.f32 %v2950_v30, %v2949_v29 }
 0x335   : > { %v1267_v33 = vadd.f32 %v2951_v31, %v1197_v28 }
 0x337   : > { %v1271_v34 = vadd.f32 %v1270_v32, %v1267_v33 }
 0x339   : > { %1272 = vst [vmem:[#allocation2] sm:$0xff] %v1271_v34 }
 0x33a PF: > { %v1303_v36 = vld [vmem:[%s5007_s29 + $0x8] sm:$0xff]  ;;  %v1306_v37 = vld [vmem:[%s5007_s29 + $0x20] sm:$0xff]  ;;  %v4299_v40 = vmov 0.0|0.0   ;;  %v1305_v41 = vld [vmem:[%s5007_s29 + $0x18] sm:$0xff]  ;;  %v4300_v28 = vmov 0.0   ;;  %vm4301_vm0 = vmmov 0  }
 0x33b   : > { %v1302_v38 = vld [vmem:[%s5007_s29] sm:$0xff]  ;;  %v3250_v39 = vpack.c.bf16 %v1306_v37, %v1303_v36  ;;  %3282 = vmatprep.subr.bf16.mxu1 %v4299_v40  ;;  %v1304_v42 = vld [vmem:[%s5007_s29 + $0x10] sm:$0xff]  ;;  %v1307_v43 = vld [vmem:[%s5007_s29 + $0x28] sm:$0xff]  ;;  %1431 = vmatprep.mubr.f32.mxu0 %v4300_v28  ;;  %s4302_s14 = smov 64   ;;  %vm1514_vm1 = vcmask 523264   ;;  %vm1674_vm3 = vcmask 64512  }
 0x33c   : > { %v3252_v44 = vpack.c.bf16 %v1305_v41, %v1302_v38  ;;  %v3283_v45 = vpack.c.bf16 %v1307_v43, %v1304_v42  ;;  %v1309_v46 = vld [vmem:[%s5007_s29 + $0x38] sm:$0xff]  ;;  %v1312_v47 = vld [vmem:[%s5007_s29 + $0x50] sm:$0xff]  ;;  %v1311_v50 = vld [vmem:[%s5007_s29 + $0x48] sm:$0xff]  ;;  %3096 = vmatprep.mubr.msk.f32.mxu1 %vm4301_vm0, %v4300_v28  ;;  %s5580_s12 = sld [smem:[#allocation40_spill]] }
 0x33d   : > { %v1308_v48 = vld [vmem:[%s5007_s29 + $0x30] sm:$0xff]  ;;  %3251 = vmatprep.subr.bf16.mxu0 %v3250_v39  ;;  %v3254_v49 = vpack.c.bf16 %v1312_v47, %v1309_v46  ;;  %v1310_v51 = vld [vmem:[%s5007_s29 + $0x40] sm:$0xff]  ;;  %v1313_v52 = vld [vmem:[%s5007_s29 + $0x58] sm:$0xff] }
 0x33e   : > { %3253 = vmatpush1.bf16.msra.mxu0 %v3252_v44  ;;  %3284 = vmatpush3.bf16.msra.mxu1 %v3283_v45  ;;  %v3256_v53 = vpack.c.bf16 %v1311_v50, %v1308_v48  ;;  %v3286_v54 = vpack.c.bf16 %v1313_v52, %v1310_v51  ;;  %v1315_v55 = vld [vmem:[%s5007_s29 + $0x68] sm:$0xff]  ;;  %v1318_v56 = vld [vmem:[%s5007_s29 + $0x80] sm:$0xff]  ;;  %v1317_v59 = vld [vmem:[%s5007_s29 + $0x78] sm:$0xff] }
 0x33f   : > { %v1314_v57 = vld [vmem:[%s5007_s29 + $0x60] sm:$0xff]  ;;  %3255 = vmatprep.subr.bf16.mxu0 %v3254_v49  ;;  %3285 = vmatprep.subr.bf16.mxu1 %v4299_v40  ;;  %v3258_v58 = vpack.c.bf16 %v1318_v56, %v1315_v55  ;;  %v1316_v60 = vld [vmem:[%s5007_s29 + $0x70] sm:$0xff]  ;;  %v1319_v61 = vld [vmem:[%s5007_s29 + $0x88] sm:$0xff] }
 0x340   : > { %v5057_v35 = vld [vmem:[#allocation2] sm:$0xff]  ;;  %v3260_v62 = vpack.c.bf16 %v1317_v59, %v1314_v57  ;;  %v3289_v63 = vpack.c.bf16 %v1319_v61, %v1316_v60  ;;  %v1324_v5 = vld [vmem:[%s5007_s29 + $0xb0] sm:$0xff]  ;;  %v1323_v8 = vld [vmem:[%s5007_s29 + $0xa8] sm:$0xff]  ;;  %v1352_v61 = vlaneseq }
 0x341   : > { %1276 = vadd.xlane.f32.xlu0 %v5057_v35  ;;  %v1321_v4 = vld [vmem:[%s5007_s29 + $0x98] sm:$0xff]  ;;  %v1320_v7 = vld [vmem:[%s5007_s29 + $0x90] sm:$0xff]  ;;  %v1322_v9 = vld [vmem:[%s5007_s29 + $0xa0] sm:$0xff] }
 0x342   : > { %3257 = vmatpush1.bf16.msra.mxu0 %v3256_v53  ;;  %3287 = vmatpush3.bf16.msra.mxu1 %v3286_v54  ;;  %v3262_v6 = vpack.c.bf16 %v1324_v5, %v1321_v4  ;;  %v3264_v10 = vpack.c.bf16 %v1323_v8, %v1320_v7  ;;  %v1325_v11 = vld [vmem:[%s5007_s29 + $0xb8] sm:$0xff]  ;;  %v1327_v13 = vld [vmem:[%s5007_s29 + $0xc8] sm:$0xff]  ;;  %v1330_v14 = vld [vmem:[%s5007_s29 + $0xe0] sm:$0xff]  ;;  %p2839_p6 = scmp.ne.s32.totalorder %s5580_s12, 1 }
 0x343   : > { %3259 = vmatprep.subr.bf16.mxu0 %v3258_v58  ;;  %3288 = vmatprep.subr.bf16.mxu1 %v4299_v40  ;;  %v3292_v12 = vpack.c.bf16 %v1325_v11, %v1322_v9  ;;  %v3266_v15 = vpack.c.bf16 %v1330_v14, %v1327_v13  ;;  %v1326_v16 = vld [vmem:[%s5007_s29 + $0xc0] sm:$0xff]  ;;  %v1329_v17 = vld [vmem:[%s5007_s29 + $0xd8] sm:$0xff]  ;;  %v1328_v18 = vld [vmem:[%s5007_s29 + $0xd0] sm:$0xff] }
 0x344   : > { %v3268_v19 = vpack.c.bf16 %v1329_v17, %v1326_v16  ;;  %v1331_v20 = vld [vmem:[%s5007_s29 + $0xe8] sm:$0xff]  ;;  %v1333_v21 = vld [vmem:[%s5007_s29 + $0xf8] sm:$0xff]  ;;  %v1336_v22 = vld [vmem:[%s5007_s29 + $0x110] sm:$0xff] }
 0x345   : > { %v3295_v23 = vpack.c.bf16 %v1331_v20, %v1328_v18  ;;  %v3270_v24 = vpack.c.bf16 %v1336_v22, %v1333_v21  ;;  %v1332_v25 = vld [vmem:[%s5007_s29 + $0xf0] sm:$0xff]  ;;  %v1335_v26 = vld [vmem:[%s5007_s29 + $0x108] sm:$0xff]  ;;  %v1334_v27 = vld [vmem:[%s5007_s29 + $0x100] sm:$0xff]  ;;  %v1518_v18 = vand.u32 127, %v1352_v61 }
 0x346   : > { %3261 = vmatpush1.bf16.msra.mxu0 %v3260_v62  ;;  %3290 = vmatpush3.bf16.msra.mxu1 %v3289_v63  ;;  %v3272_v29 = vpack.c.bf16 %v1335_v26, %v1332_v25  ;;  %v1337_v30 = vld [vmem:[%s5007_s29 + $0x118] sm:$0xff]  ;;  %v1339_v31 = vld [vmem:[%s5007_s29 + $0x128] sm:$0xff]  ;;  %v1342_v32 = vld [vmem:[%s5007_s29 + $0x140] sm:$0xff]  ;;  %v5135_v62 = vshrl.u32 %v1352_v61, 7 }
 0x347   : > { %3291 = vmatprep.subr.bf16.mxu1 %v4299_v40  ;;  %3263 = vmatprep.subr.bf16.mxu0 %v3262_v6  ;;  %v3298_v33 = vpack.c.bf16 %v1337_v30, %v1334_v27  ;;  %v3274_v34 = vpack.c.bf16 %v1342_v32, %v1339_v31  ;;  %v1338_v36 = vld [vmem:[%s5007_s29 + $0x120] sm:$0xff]  ;;  %v1341_v37 = vld [vmem:[%s5007_s29 + $0x138] sm:$0xff]  ;;  %v1340_v38 = vld [vmem:[%s5007_s29 + $0x130] sm:$0xff]  ;;  %vm1519_vm2 = vcmp.lt.s32.totalorder %v1518_v18, 5 }
 0x348   : > { %v1343_v39 = vld [vmem:[%s5007_s29 + $0x148] sm:$0xff]  ;;  %v1345_v41 = vld [vmem:[%s5007_s29 + $0x158] sm:$0xff]  ;;  %v1348_v42 = vld [vmem:[%s5007_s29 + $0x170] sm:$0xff]  ;;  %v3276_v43 = vpack.c.bf16 %v1341_v37, %v1338_v36  ;;  %v1354_v63 = vsub.s32 0, %v5135_v62 }
 0x349   : > { %v3301_v44 = vpack.c.bf16 %v1343_v39, %v1340_v38  ;;  %v3278_v45 = vpack.c.bf16 %v1348_v42, %v1345_v41  ;;  %v1344_v46 = vld [vmem:[%s5007_s29 + $0x150] sm:$0xff]  ;;  %v1347_v47 = vld [vmem:[%s5007_s29 + $0x168] sm:$0xff]  ;;  %v1346_v48 = vld [vmem:[%s5007_s29 + $0x160] sm:$0xff] }
 0x34a   : > { %3265 = vmatpush1.bf16.msra.mxu0 %v3264_v10  ;;  %3293 = vmatpush3.bf16.msra.mxu1 %v3292_v12  ;;  %v1349_v49 = vld [vmem:[%s5007_s29 + $0x178] sm:$0xff]  ;;  %v3280_v50 = vpack.c.bf16 %v1347_v47, %v1344_v46  ;;  %v1848_v42 = vld [vmem:[%s5018_s24] sm:$0xff] }
 0x34b   : > { %3294 = vmatprep.subr.bf16.mxu1 %v4299_v40  ;;  %3267 = vmatprep.subr.bf16.mxu0 %v3266_v15  ;;  %v3304_v51 = vpack.c.bf16 %v1349_v49, %v1346_v48  ;;  %v2827_v56 = vld [vmem:[%s765_s16] ss:$0 sm:$0xff]  ;;  %v1851_v46 = vld [vmem:[%s5018_s24 + $0x18] sm:$0xff]  ;;  %v1852_v49 = vld [vmem:[%s5018_s24 + $0x20] sm:$0xff] }
 0x34c   : > { %v2828_v58 = vld [vmem:[%s773_s30] ss:$0 sm:$0xff] }
 0x34e   : > { %3269 = vmatpush1.bf16.msra.mxu0 %v3268_v19  ;;  %3296 = vmatpush3.bf16.msra.mxu1 %v3295_v23  ;;  %v4303_v19 = vmov -1e+30  }
 0x34f   : > { %3271 = vmatprep.subr.bf16.mxu0 %v3270_v24  ;;  %3297 = vmatprep.subr.bf16.mxu1 %v4299_v40  ;;  %v1520_v20 = vsel %vm1519_vm2, 0.0, %v4303_v19 }
 0x352   : > { %3273 = vmatpush1.bf16.msra.mxu0 %v3272_v29  ;;  %3299 = vmatpush3.bf16.msra.mxu1 %v3298_v33 }
 0x353   : > { %3275 = vmatprep.subr.bf16.mxu0 %v3274_v34  ;;  %3300 = vmatprep.subr.bf16.mxu1 %v4299_v40 }
 0x356   : > { %3277 = vmatpush1.bf16.msra.mxu0 %v3276_v43  ;;  %3302 = vmatpush3.bf16.msra.mxu1 %v3301_v44  ;;  %v1849_v43 = vld [vmem:[%s5018_s24 + $0x8] sm:$0xff]  ;;  %v1850_v44 = vld [vmem:[%s5018_s24 + $0x10] sm:$0xff] }
 0x357   : > { %3279 = vmatprep.subr.bf16.mxu0 %v3278_v45  ;;  %3303 = vmatprep.subr.bf16.mxu1 %v4299_v40  ;;  %v3307_v45 = vpack.c.bf16 %v1849_v43, %v1848_v42  ;;  %v3310_v47 = vpack.c.bf16 %v1851_v46, %v1850_v44  ;;  %v1981_v42 = vld [vmem:[%s5034_s5 + $0x60] sm:$0xff]  ;;  %v1979_v43 = vld [vmem:[%s5034_s5 + $0x50] sm:$0xff]  ;;  %v1986_v46 = vld [vmem:[%s5034_s5 + $0x88] sm:$0xff] }
 0x35a   : > { %3281 = vmatpush1.bf16.msra.mxu0 %v3280_v50  ;;  %3305 = vmatpush3.bf16.msra.mxu1 %v3304_v51  ;;  %v1853_v50 = vld [vmem:[%s5018_s24 + $0x28] sm:$0xff] }
 0x35b   : > { %3306 = vmatprep.subr.bf16.mxu0 %v4299_v40  ;;  %3099 = vmatprep.subr.mxu1 %v4300_v28 }
 0x3ce   : > { %v1277_v0 = vpop.xlane.xlu0 %1276 }
 0x3cf   : > { %v1279_v1 = vmul.f32 0.0078125, %v1277_v0  ;;  %v1350_v0 = vld [vmem:[%s5015_s18] sm:$0x7] }
 0x3d1   : > { %v5083_v2 = vsub.f32 %v5057_v35, %v1279_v1  ;;  %v1358_v1 = vsub.s32 1, %v5135_v62 }
 0x3d3   : > { %v1281_v3 = vmul.f32 %v5083_v2, %v5083_v2  ;;  %v1359_v4 = vrot.slane %v1350_v0, %v1358_v1 }
 0x3d5   : > { %1282 = vadd.xlane.f32.xlu0 %v1281_v3  ;;  %v1362_v3 = vsub.s32 2, %v5135_v62 }
 0x3d7   : > { %v1363_v10 = vrot.slane %v1350_v0, %v1362_v3 }
 0x462   : > { %v1283_v52 = vpop.xlane.xlu0 %1282 }
 0x463   : > { %v1284_v53 = vmul.f32 0.0078125, %v1283_v52  ;;  %v3313_v52 = vpack.c.bf16 %v1853_v50, %v1852_v49  ;;  %v1988_v50 = vld [vmem:[%s5034_s5 + $0x98] sm:$0xff] }
 0x465   : > { %v1285_v54 = vadd.f32 1e-06, %v1284_v53  ;;  %v1854_v53 = vld [vmem:[%s5018_s24 + $0x30] sm:$0xff] }
 0x467   : > { %3660 = vrsqrt.f32 %v1285_v54  ;;  %v1855_v54 = vld [vmem:[%s5018_s24 + $0x38] sm:$0xff] }
 0x471   : > { %v3661_v55 = vpop.eup %3660 }
 0x472   : > { %v1287_v57 = vmul.f32 %v3661_v55, %v5083_v2  ;;  %v1355_v2 = vrot.slane %v1350_v0, %v1354_v63  ;;  %v3316_v55 = vpack.c.bf16 %v1855_v54, %v1854_v53  ;;  %v1860_v0 = vld [vmem:[%s5018_s24 + $0x60] sm:$0xff] }
 0x473   : > { %v1989_v54 = vld [vmem:[%s5034_s5 + $0xa0] sm:$0xff] }
 0x474   : > { %v1294_v59 = vmul.f32 %v2827_v56, %v1287_v57  ;;  %v1856_v56 = vld [vmem:[%s5018_s24 + $0x40] sm:$0xff]  ;;  %v1857_v57 = vld [vmem:[%s5018_s24 + $0x48] sm:$0xff] }
 0x476   : > { %v1301_v60 = vadd.f32 %v2828_v58, %v1294_v59  ;;  %v3319_v58 = vpack.c.bf16 %v1857_v57, %v1856_v56  ;;  %v1858_v59 = vld [vmem:[%s5018_s24 + $0x50] sm:$0xff] }
 0x477   : > { %v1991_v56 = vld [vmem:[%s5034_s5 + $0xb0] sm:$0xff] }
 0x478   : > { %1432 = vmatmul.mubr.f32.vlgmr.msra.gmra.mrb[0].mxu0 %v1301_v60  ;;  %3097 = vmatmul.mubr.f32.vlgmr.msra.gmra.mrb[0].mxu1 %v1301_v60  ;;  %v1859_v60 = vld [vmem:[%s5018_s24 + $0x58] sm:$0xff] }
 0x479   : > { %3101 = vmatprep.mubr.msk.f32.mxu1 %vm4301_vm0, %v4300_v28  ;;  %3151 = vmatprep.mubr.msk.f32.mxu0 %vm4301_vm0, %v4300_v28  ;;  %v3322_v61 = vpack.c.bf16 %v1859_v60, %v1858_v59 }
 0x47a   : > { %3308 = vmatpush3.bf16.msra.mxu0 %v3307_v45  ;;  %v1983_v45 = vld [vmem:[%s5034_s5 + $0x70] sm:$0xff] }
 0x47b   : > { %3309 = vmatprep.subr.bf16.mxu0 %v4299_v40 }
 0x47e   : > { %3311 = vmatpush3.bf16.msra.mxu0 %v3310_v47  ;;  %v1990_v47 = vld [vmem:[%s5034_s5 + $0xa8] sm:$0xff] }
 0x47f   : > { %3312 = vmatprep.subr.bf16.mxu0 %v4299_v40  ;;  %v3338_v49 = vpack.c.bf16 %v1990_v47, %v1986_v46  ;;  %v2021_v47 = vld [vmem:[%s5034_s5 + $0x1a0] sm:$0xff] }
 0x482   : > { %3314 = vmatpush3.bf16.msra.mxu0 %v3313_v52  ;;  %v1985_v52 = vld [vmem:[%s5034_s5 + $0x80] sm:$0xff] }
 0x483   : > { %3315 = vmatprep.subr.bf16.mxu0 %v4299_v40  ;;  %v3340_v57 = vpack.c.bf16 %v1989_v54, %v1985_v52  ;;  %v2030_v52 = vld [vmem:[%s5034_s5 + $0x1e8] sm:$0xff] }
 0x486   : > { %3317 = vmatpush3.bf16.msra.mxu0 %v3316_v55  ;;  %v1987_v55 = vld [vmem:[%s5034_s5 + $0x90] sm:$0xff] }
 0x487   : > { %3318 = vmatprep.subr.bf16.mxu0 %v4299_v40 }
 0x48a   : > { %3320 = vmatpush3.bf16.msra.mxu0 %v3319_v58  ;;  %v3372_v58 = vpack.c.bf16 %v1991_v56, %v1987_v55  ;;  %v2032_v56 = vld [vmem:[%s5034_s5 + $0x1f8] sm:$0xff] }
 0x48b   : > { %3321 = vmatprep.subr.bf16.mxu0 %v4299_v40 }
 0x48e   : > { %3323 = vmatpush3.bf16.msra.mxu0 %v3322_v61 }
 0x48f   : > { %3324 = vmatprep.subr.bf16.mxu0 %v4299_v40 }
 0x54b   : > { %v1433_v5 = vpop.f32.mrb[0].mxu0  ;;  %v1504_v6 = vpop.f32.mrb[0].mxu1 }
 0x54c   : > { %v1434_v7 = vadd.f32 %v1433_v5, %v1355_v2  ;;  %v1435_v8 = vpop.f32.mrb[1].mxu0  ;;  %v3098_v9 = vpop.f32.mrb[1].mxu1  ;;  %v1505_v12 = vadd.f32 %v1504_v6, %v1363_v10  ;;  %v1861_v2 = vld [vmem:[%s5018_s24 + $0x68] sm:$0xff]  ;;  %v1862_v5 = vld [vmem:[%s5018_s24 + $0x70] sm:$0xff]  ;;  %v1863_v6 = vld [vmem:[%s5018_s24 + $0x78] sm:$0xff] }
 0x54d   : > { %v1436_v11 = vadd.f32 %v1435_v8, %v1359_v4  ;;  %v3325_v4 = vpack.c.bf16 %v1861_v2, %v1860_v0  ;;  %v1994_v2 = vld [vmem:[%s5034_s5 + $0xc8] sm:$0xff] }
 0x54e   : > { %1522 = vrot.lane.b32.xlu0 %v1434_v7, %s4302_s14 }
 0x54f   : > { %1510 = vrot.lane.b32.xlu1 %v1436_v11, %s4302_s14  ;;  %3326 = vmatpush3.bf16.msra.mxu0 %v3325_v4  ;;  %v1998_v4 = vld [vmem:[%s5034_s5 + $0xe8] sm:$0xff] }
 0x550   : > { %3327 = vmatprep.subr.bf16.mxu0 %v4299_v40 }
 0x553   : > { %1512 = vrot.lane.b32.xlu1 %v1505_v12, %s4302_s14 }
 0x5c0   : > { %v1523_v13 = vpop.permute.xlu0 %1522 }
 0x5c1   : > { %v1511_v14 = vpop.permute.xlu1 %1510  ;;  %3100 = vmatpush3.xpose.msk.msra.mxu1 %vm1514_vm1, %v1523_v13 }
 0x5c2   : > { %3104 = vmatprep.subr.mxu1 %v4300_v28 }
 0x5c4   : > { %3102 = vmatmul.mubr.msk.f32.vlgmr.msra.gmra.mrb[2].mxu1 %vm1514_vm1, %v1434_v7  ;;  %v3328_v7 = vpack.c.bf16 %v1863_v6, %v1862_v5  ;;  %v1996_v5 = vld [vmem:[%s5034_s5 + $0xd8] sm:$0xff]  ;;  %v3342_v6 = vpack.c.bf16 %v1998_v4, %v1994_v2 }
 0x5c5   : > { %v1513_v15 = vpop.permute.xlu1 %1512  ;;  %3106 = vmatprep.mubr.msk.f32.mxu1 %vm4301_vm0, %v4300_v28 }
 0x5c6   : > { %v1515_v16 = vsel %vm1514_vm1, %v1511_v14, %v1513_v15  ;;  %3329 = vmatpush3.bf16.msra.mxu0 %v3328_v7  ;;  %v2000_v7 = vld [vmem:[%s5034_s5 + $0xf8] sm:$0xff] }
 0x5c7   : > { %1598 = vrot.lane.b32.xlu1 %v1515_v16, %s4302_s14 }
 0x639   : > { %v1599_v17 = vpop.permute.xlu1 %1598 }
 0x63a   : > { %3105 = vmatpush3.xpose.msk.msra.mxu1 %vm1514_vm1, %v1599_v17  ;;  %v2835_v17 = vld [vmem:[%s808_s27] ss:$0 sm:$0xff] }
 0x63b   : > { %3109 = vmatprep.subr.mxu1 %v4300_v28 }
 0x63d   : > { %3107 = vmatmul.mubr.msk.f32.vlgmr.msra.gmra.mrb[4].mxu1 %vm1514_vm1, %v1515_v16 }
 0x63e   : > { %3110 = vmatpush3.msra.mxu1 %v1436_v11  ;;  %3111 = vmatprep.mubr.msk.f32.mxu1 %vm4301_vm0, %v4300_v28 }
 0x63f   : > { %3114 = vmatprep.subr.mxu1 %v4300_v28 }
 0x697   : > { %v1594_v21 = vpop.f32.mrb[2].mxu1 }
 0x698   : > { %v1595_v22 = vadd.f32 %v1594_v21, %v1520_v20  ;;  %v3103_v23 = vpop.f32.mrb[3].mxu1 }
 0x699   : > { %v1974_v23 = vld [vmem:[%s5034_s5 + $0x28] sm:$0xff] }
 0x69a   : > { %v1675_v24 = vsel %vm1674_vm3, %v1595_v22, -inf }
 0x69b   : > { %1676 = vmax.xlane.f32.xlu1 %v1675_v24  ;;  %v1972_v24 = vld [vmem:[%s5034_s5 + $0x18] sm:$0xff] }
 0x710   : > { %v1670_v25 = vpop.f32.mrb[4].mxu1 }
 0x711   : > { %v1671_v26 = vadd.f32 %v1670_v25, %v1520_v20  ;;  %v3108_v27 = vpop.f32.mrb[5].mxu1  ;;  %v1976_v25 = vld [vmem:[%s5034_s5 + $0x38] sm:$0xff] }
 0x712   : > { %v1973_v27 = vld [vmem:[%s5034_s5 + $0x20] sm:$0xff] }
 0x713   : > { %v1678_v29 = vsel %vm1674_vm3, %v1671_v26, -inf }
 0x714   : > { %1679 = vmax.xlane.f32.xlu0 %v1678_v29  ;;  %v3362_v29 = vpack.c.bf16 %v1976_v25, %v1972_v24  ;;  %v2003_v24 = vld [vmem:[%s5034_s5 + $0x110] sm:$0xff]  ;;  %v2010_v25 = vld [vmem:[%s5034_s5 + $0x148] sm:$0xff] }
 0x716   : > { %3363 = vmatprep.subr.bf16.mxu0 %v3362_v29  ;;  %v2012_v29 = vld [vmem:[%s5034_s5 + $0x158] sm:$0xff] }
 0x728   : > { %v1677_v30 = vpop.xlane.xlu1 %1676 }
 0x729   : > { %v1681_v31 = vsub.f32 %v1595_v22, %v1677_v30  ;;  %v1970_v22 = vld [vmem:[%s5034_s5 + $0x8] sm:$0xff] }
 0x72b   : > { %v1683_v32 = vmul.f32 1.442695, %v1681_v31  ;;  %v1971_v31 = vld [vmem:[%s5034_s5 + $0x10] sm:$0xff] }
 0x72d   : > { %3662 = vpow2.f32 %v1683_v32  ;;  %v1978_v32 = vld [vmem:[%s5034_s5 + $0x48] sm:$0xff] }
 0x737   : > { %v3663_v33 = vpop.eup %3662 }
 0x738   : > { %3112 = vmatmul.mubr.msk.f32.vlgmr.msra.gmra.mrb[6].mxu1 %vm1674_vm3, %v3663_v33  ;;  %v1687_v41 = vsel %vm1674_vm3, %v3663_v33, 0.0 }
 0x739   : > { %3115 = vmatpush3.msra.mxu1 %v1513_v15  ;;  %3116 = vmatprep.mubr.msk.f32.mxu1 %vm4301_vm0, %v4300_v28 }
 0x7a1   : > { %v1680_v34 = vpop.xlane.xlu0 %1679 }
 0x7a2   : > { %v1682_v36 = vsub.f32 %v1671_v26, %v1680_v34  ;;  %v1969_v26 = vld [vmem:[%s5034_s5] sm:$0xff]  ;;  %v1982_v34 = vld [vmem:[%s5034_s5 + $0x68] sm:$0xff] }
 0x7a3   : > { %v3332_v30 = vpack.c.bf16 %v1973_v27, %v1969_v26  ;;  %v2014_v27 = vld [vmem:[%s5034_s5 + $0x168] sm:$0xff] }
 0x7a4   : > { %v1685_v37 = vmul.f32 1.442695, %v1682_v36  ;;  %v1980_v36 = vld [vmem:[%s5034_s5 + $0x58] sm:$0xff] }
 0x7a6   : > { %3664 = vpow2.f32 %v1685_v37  ;;  %v1984_v37 = vld [vmem:[%s5034_s5 + $0x78] sm:$0xff] }
 0x7b0   : > { %v3665_v38 = vpop.eup %3664 }
 0x7b1   : > { %3117 = vmatmul.mubr.msk.f32.vlgmr.msra.gmra.mrb[8].mxu1 %vm1674_vm3, %v3665_v38  ;;  %v1690_v39 = vsel %vm1674_vm3, %v3665_v38, 0.0  ;;  %v3334_v38 = vpack.c.bf16 %v1982_v34, %v1978_v32  ;;  %v2009_v32 = vld [vmem:[%s5034_s5 + $0x140] sm:$0xff]  ;;  %v2011_v34 = vld [vmem:[%s5034_s5 + $0x150] sm:$0xff] }
 0x7b2   : > { %1691 = vadd.xlane.f32.xlu1 %v1690_v39  ;;  %2119 = vmatprep.mubr.f32.mxu1 %v4300_v28  ;;  %v3366_v39 = vpack.c.bf16 %v1984_v37, %v1980_v36  ;;  %v2015_v37 = vld [vmem:[%s5034_s5 + $0x170] sm:$0xff] }
 0x7b6   : > { %1688 = vadd.xlane.f32.xlu1 %v1687_v41  ;;  %v1977_v41 = vld [vmem:[%s5034_s5 + $0x40] sm:$0xff] }
 0x7b7   : > { %v3336_v44 = vpack.c.bf16 %v1981_v42, %v1977_v41  ;;  %v3384_v41 = vpack.c.bf16 %v2015_v37, %v2011_v34  ;;  %v2268_v34 = vld [vmem:[%s5044_s23 + $0x118] sm:$0xff]  ;;  %v2253_v37 = vld [vmem:[%s5044_s23 + $0xa0] sm:$0xff] }
 0x80b   : > { %v1762_v48 = vpop.f32.mrb[6].mxu1 }
 0x80c   : > { %v3113_v51 = vpop.f32.mrb[7].mxu1 }
 0x80d   : > { %v1992_v51 = vld [vmem:[%s5034_s5 + $0xb8] sm:$0xff] }
 0x80e   : > { %v3370_v53 = vpack.c.bf16 %v1992_v51, %v1988_v50  ;;  %v2026_v51 = vld [vmem:[%s5034_s5 + $0x1c8] sm:$0xff] }
 0x80f   : > { %v3358_v55 = vpack.c.bf16 %v2030_v52, %v2026_v51  ;;  %v2256_v51 = vld [vmem:[%s5044_s23 + $0xb8] sm:$0xff]  ;;  %v2287_v52 = vld [vmem:[%s5044_s23 + $0x1b0] sm:$0xff] }
 0x83f   : > { %v1692_v8 = vpop.xlane.xlu1 %1691 }
 0x840   : > { %3666 = vrcp.f32 %v1692_v8  ;;  %v1993_v8 = vld [vmem:[%s5034_s5 + $0xc0] sm:$0xff] }
 0x843   : > { %v1689_v13 = vpop.xlane.xlu1 %1688 }
 0x844   : > { %3668 = vrcp.f32 %v1689_v13  ;;  %v1999_v13 = vld [vmem:[%s5034_s5 + $0xf0] sm:$0xff] }
 0x84a   : > { %v3667_v9 = vpop.eup %3666 }
 0x84e   : > { %v3669_v14 = vpop.eup %3668 }
 0x84f   : > { %v1841_v15 = vmul.f32 %v3669_v14, %v1762_v48  ;;  %v3368_v48 = vpack.c.bf16 %v1983_v45, %v1979_v43  ;;  %v2020_v43 = vld [vmem:[%s5034_s5 + $0x198] sm:$0xff]  ;;  %v2017_v45 = vld [vmem:[%s5034_s5 + $0x180] sm:$0xff] }
 0x850   : > { %v3356_v50 = vpack.c.bf16 %v2021_v47, %v2017_v45  ;;  %v2269_v47 = vld [vmem:[%s5044_s23 + $0x120] sm:$0xff] }
 0x884   : > { %v1835_v10 = vpop.f32.mrb[8].mxu1 }
 0x885   : > { %v1842_v11 = vmul.f32 %v3667_v9, %v1835_v10  ;;  %v3118_v12 = vpop.f32.mrb[9].mxu1  ;;  %v1997_v9 = vld [vmem:[%s5034_s5 + $0xe0] sm:$0xff]  ;;  %v3374_v10 = vpack.c.bf16 %v2000_v7, %v1996_v5 }
 0x886   : > { %v1995_v12 = vld [vmem:[%s5034_s5 + $0xd0] sm:$0xff] }
 0x887   : > { %1844 = vrot.lane.b32.xlu1 %v1842_v11, %s4302_s14  ;;  %v3344_v11 = vpack.c.bf16 %v1997_v9, %v1993_v8  ;;  %v3376_v14 = vpack.c.bf16 %v1999_v13, %v1995_v12  ;;  %v2836_v9 = vld [vmem:[%s816_s17] ss:$0 sm:$0xff] }
 0x8f9   : > { %v1845_v40 = vpop.permute.xlu1 %1844 }
 0x8fa   : > { %v1847_v16 = vsel %vm1514_vm1, %v1841_v15, %v1845_v40  ;;  %v2002_v15 = vld [vmem:[%s5034_s5 + $0x108] sm:$0xff] }
 0x8fb   : > { %3152 = vmatmul.mubr.f32.vlgmr.msra.gmra.mrb[2].mxu0 %v1847_v16  ;;  %v2006_v40 = vld [vmem:[%s5034_s5 + $0x128] sm:$0xff]  ;;  %v2004_v16 = vld [vmem:[%s5034_s5 + $0x118] sm:$0xff] }
 0x8fc   : > { %2190 = vmatprep.mubr.f32.mxu0 %v4300_v28  ;;  %v3330_v28 = vpack.c.bf16 %v1974_v23, %v1970_v22 }
 0x8fe   : > { %3331 = vmatprep.subr.bf16.mxu1 %v3330_v28  ;;  %v2007_v28 = vld [vmem:[%s5034_s5 + $0x130] sm:$0xff] }
 0x8ff   : > { %3333 = vmatpush1.bf16.msra.mxu1 %v3332_v30  ;;  %v3380_v26 = vpack.c.bf16 %v2007_v28, %v2003_v24  ;;  %v2016_v30 = vld [vmem:[%s5034_s5 + $0x178] sm:$0xff] }
 0x900   : > { %3335 = vmatprep.subr.bf16.mxu1 %v3334_v38  ;;  %v2018_v38 = vld [vmem:[%s5034_s5 + $0x188] sm:$0xff]  ;;  %v2251_v28 = vld [vmem:[%s5044_s23 + $0x90] sm:$0xff] }
 0x903   : > { %3337 = vmatpush1.bf16.msra.mxu1 %v3336_v44  ;;  %v2024_v44 = vld [vmem:[%s5034_s5 + $0x1b8] sm:$0xff] }
 0x904   : > { %3339 = vmatprep.subr.bf16.mxu1 %v3338_v49  ;;  %v3386_v46 = vpack.c.bf16 %v2024_v44, %v2020_v43  ;;  %v2023_v49 = vld [vmem:[%s5034_s5 + $0x1b0] sm:$0xff]  ;;  %v2237_v43 = vld [vmem:[%s5044_s23 + $0x20] sm:$0xff] }
 0x905   : > { %v2238_v44 = vld [vmem:[%s5044_s23 + $0x28] sm:$0xff] }
 0x907   : > { %3341 = vmatpush1.bf16.msra.mxu1 %v3340_v57  ;;  %v2025_v57 = vld [vmem:[%s5034_s5 + $0x1c0] sm:$0xff] }
 0x908   : > { %3343 = vmatprep.subr.bf16.mxu1 %v3342_v6 }
 0x90b   : > { %3345 = vmatpush1.bf16.msra.mxu1 %v3344_v11  ;;  %v2837_v11 = vld [vmem:[%s824_s6] ss:$0 sm:$0xff] }
 0x9ce   : > { %v1937_v18 = vpop.f32.mrb[2].mxu0 }
 0x9cf   : > { %v1938_v19 = vadd.f32 %v2835_v17, %v1937_v18  ;;  %v3153_v20 = vpop.f32.mrb[3].mxu0  ;;  %v3346_v17 = vpack.c.bf16 %v2006_v40, %v2002_v15  ;;  %v2008_v18 = vld [vmem:[%s5034_s5 + $0x138] sm:$0xff]  ;;  %v2250_v15 = vld [vmem:[%s5044_s23 + $0x88] sm:$0xff]  ;;  %v2281_v40 = vld [vmem:[%s5044_s23 + $0x180] sm:$0xff] }
 0x9d0   : > { %v2005_v20 = vld [vmem:[%s5034_s5 + $0x120] sm:$0xff]  ;;  %v3378_v22 = vpack.c.bf16 %v2008_v18, %v2004_v16  ;;  %v2233_v18 = vld [vmem:[%s5044_s23] sm:$0xff] }
 0x9d1   : > { %v5201_v21 = vadd.f32 %v1938_v19, %v5057_v35  ;;  %v1975_v35 = vld [vmem:[%s5034_s5 + $0x30] sm:$0xff]  ;;  %v2001_v19 = vld [vmem:[%s5034_s5 + $0x100] sm:$0xff]  ;;  %3347 = vmatprep.subr.bf16.mxu1 %v3346_v17 }
 0x9d2   : > { %v3364_v33 = vpack.c.bf16 %v1975_v35, %v1971_v31  ;;  %v3348_v23 = vpack.c.bf16 %v2005_v20, %v2001_v19  ;;  %v3350_v31 = vpack.c.bf16 %v2014_v27, %v2010_v25  ;;  %v3382_v35 = vpack.c.bf16 %v2016_v30, %v2012_v29  ;;  %v2282_v17 = vld [vmem:[%s5044_s23 + $0x188] sm:$0xff]  ;;  %v2252_v25 = vld [vmem:[%s5044_s23 + $0x98] sm:$0xff]  ;;  %v2235_v30 = vld [vmem:[%s5044_s23 + $0x10] sm:$0xff] }
 0x9d3   : > { %1944 = vadd.xlane.f32.xlu0 %v5201_v21  ;;  %v2234_v19 = vld [vmem:[%s5044_s23 + $0x8] sm:$0xff]  ;;  %v3398_v27 = vpack.c.bf16 %v2252_v25, %v2251_v28  ;;  %v2284_v29 = vld [vmem:[%s5044_s23 + $0x198] sm:$0xff]  ;;  %v2261_v28 = vld [vmem:[%s5044_s23 + $0xe0] sm:$0xff] }
 0x9d4   : > { %3365 = vmatpush1.bf16.msra.mxu0 %v3364_v33  ;;  %3349 = vmatpush1.bf16.msra.mxu1 %v3348_v23  ;;  %v2013_v33 = vld [vmem:[%s5034_s5 + $0x160] sm:$0xff]  ;;  %v3396_v20 = vpack.c.bf16 %v2234_v19, %v2233_v18  ;;  %v2266_v23 = vld [vmem:[%s5044_s23 + $0x108] sm:$0xff] }
 0x9d5   : > { %3367 = vmatprep.subr.bf16.mxu0 %v3366_v39  ;;  %v3352_v36 = vpack.c.bf16 %v2013_v33, %v2009_v32  ;;  %v2022_v39 = vld [vmem:[%s5034_s5 + $0x1a8] sm:$0xff]  ;;  %3351 = vmatprep.subr.bf16.mxu1 %v3350_v31  ;;  %v2236_v31 = vld [vmem:[%s5044_s23 + $0x18] sm:$0xff]  ;;  %v2267_v33 = vld [vmem:[%s5044_s23 + $0x110] sm:$0xff] }
 0x9d6   : > { %v3354_v42 = vpack.c.bf16 %v2022_v39, %v2018_v38  ;;  %v3400_v32 = vpack.c.bf16 %v2236_v31, %v2235_v30  ;;  %v2254_v38 = vld [vmem:[%s5044_s23 + $0xa8] sm:$0xff]  ;;  %v2285_v39 = vld [vmem:[%s5044_s23 + $0x1a0] sm:$0xff] }
 0x9d7   : > { %v2262_v25 = vld [vmem:[%s5044_s23 + $0xe8] sm:$0xff]  ;;  %v2245_v31 = vld [vmem:[%s5044_s23 + $0x60] sm:$0xff] }
 0x9d8   : > { %3369 = vmatpush1.bf16.msra.mxu0 %v3368_v48  ;;  %v2019_v48 = vld [vmem:[%s5034_s5 + $0x190] sm:$0xff]  ;;  %3353 = vmatpush1.bf16.msra.mxu1 %v3352_v36  ;;  %v3432_v36 = vpack.c.bf16 %v2268_v34, %v2267_v33  ;;  %v2277_v33 = vld [vmem:[%s5044_s23 + $0x160] sm:$0xff] }
 0x9d9   : > { %3371 = vmatprep.subr.bf16.mxu0 %v3370_v53  ;;  %v2028_v53 = vld [vmem:[%s5034_s5 + $0x1d8] sm:$0xff]  ;;  %3355 = vmatprep.subr.bf16.mxu1 %v3354_v42  ;;  %v3388_v54 = vpack.c.bf16 %v2023_v49, %v2019_v48  ;;  %v2286_v42 = vld [vmem:[%s5044_s23 + $0x1a8] sm:$0xff] }
 0x9da   : > { %v3434_v45 = vpack.c.bf16 %v2286_v42, %v2285_v39  ;;  %v2270_v48 = vld [vmem:[%s5044_s23 + $0x128] sm:$0xff]  ;;  %v2295_v39 = vld [vmem:[%s5044_s23 + $0x1f0] sm:$0xff] }
 0x9db   : > { %v3436_v49 = vpack.c.bf16 %v2270_v48, %v2269_v47  ;;  %v2294_v30 = vld [vmem:[%s5044_s23 + $0x1e8] sm:$0xff]  ;;  %v2279_v47 = vld [vmem:[%s5044_s23 + $0x170] sm:$0xff]  ;;  %v2280_v48 = vld [vmem:[%s5044_s23 + $0x178] sm:$0xff] }
 0x9dc   : > { %3373 = vmatpush1.bf16.msra.mxu0 %v3372_v58  ;;  %v2029_v58 = vld [vmem:[%s5034_s5 + $0x1e0] sm:$0xff]  ;;  %3357 = vmatpush1.bf16.msra.mxu1 %v3356_v50  ;;  %v2255_v50 = vld [vmem:[%s5044_s23 + $0xb0] sm:$0xff]  ;;  %v2278_v34 = vld [vmem:[%s5044_s23 + $0x168] sm:$0xff] }
 0x9dd   : > { %3375 = vmatprep.subr.bf16.mxu0 %v3374_v10  ;;  %v3360_v2 = vpack.c.bf16 %v2029_v58, %v2025_v57  ;;  %3359 = vmatprep.subr.bf16.mxu1 %v3358_v55  ;;  %v2239_v55 = vld [vmem:[%s5044_s23 + $0x30] sm:$0xff] }
 0x9e0   : > { %3377 = vmatpush1.bf16.msra.mxu0 %v3376_v14  ;;  %3361 = vmatpush1.bf16.msra.mxu1 %v3360_v2  ;;  %v2249_v14 = vld [vmem:[%s5044_s23 + $0x80] sm:$0xff] }
 0x9e1   : > { %3379 = vmatprep.subr.bf16.mxu0 %v3378_v22  ;;  %v3394_v16 = vpack.c.bf16 %v2250_v15, %v2249_v14  ;;  %v2265_v22 = vld [vmem:[%s5044_s23 + $0x100] sm:$0xff]  ;;  %v2259_v14 = vld [vmem:[%s5044_s23 + $0xd0] sm:$0xff] }
 0x9e2   : > { %v3428_v24 = vpack.c.bf16 %v2266_v23, %v2265_v22  ;;  %v2257_v2 = vld [vmem:[%s5044_s23 + $0xc0] sm:$0xff]  ;;  %v2275_v22 = vld [vmem:[%s5044_s23 + $0x150] sm:$0xff] }
 0x9e3   : > { %3395 = vmatprep.subr.bf16.mxu1 %v3394_v16  ;;  %v2291_v16 = vld [vmem:[%s5044_s23 + $0x1d0] sm:$0xff] }
 0x9e4   : > { %3381 = vmatpush1.bf16.msra.mxu0 %v3380_v26  ;;  %v2283_v26 = vld [vmem:[%s5044_s23 + $0x190] sm:$0xff] }
 0x9e5   : > { %3383 = vmatprep.subr.bf16.mxu0 %v3382_v35  ;;  %v3430_v35 = vpack.c.bf16 %v2284_v29, %v2283_v26  ;;  %v2293_v29 = vld [vmem:[%s5044_s23 + $0x1e0] sm:$0xff] }
 0x9e8   : > { %3385 = vmatpush1.bf16.msra.mxu0 %v3384_v41  ;;  %v3402_v41 = vpack.c.bf16 %v2254_v38, %v2253_v37  ;;  %v2263_v37 = vld [vmem:[%s5044_s23 + $0xf0] sm:$0xff]  ;;  %v2264_v38 = vld [vmem:[%s5044_s23 + $0xf8] sm:$0xff] }
 0x9e9   : > { %3387 = vmatprep.subr.bf16.mxu0 %v3386_v46  ;;  %v3404_v46 = vpack.c.bf16 %v2238_v44, %v2237_v43  ;;  %v3422_v42 = vpack.c.bf16 %v2264_v38, %v2263_v37  ;;  %v2296_v43 = vld [vmem:[%s5044_s23 + $0x1f8] sm:$0xff]  ;;  %v2247_v44 = vld [vmem:[%s5044_s23 + $0x70] sm:$0xff] }
 0x9ec   : > { %3389 = vmatpush1.bf16.msra.mxu0 %v3388_v54  ;;  %v2288_v54 = vld [vmem:[%s5044_s23 + $0x1b8] sm:$0xff] }
 0x9ed   : > { %v3438_v57 = vpack.c.bf16 %v2288_v54, %v2287_v52  ;;  %v2049_v52 = vsub.s32 3, %v5135_v62 }
 0xa60   : > { %v1945_v59 = vpop.xlane.xlu0 %1944 }
 0xa61   : > { %v1946_v60 = vmul.f32 0.0078125, %v1945_v59  ;;  %v3390_v59 = vpack.c.bf16 %v2032_v56, %v2028_v53  ;;  %v3406_v53 = vpack.c.bf16 %v2256_v51, %v2255_v50  ;;  %v2240_v56 = vld [vmem:[%s5044_s23 + $0x38] sm:$0xff]  ;;  %v3456_v50 = vpack.c.bf16 %v2280_v48, %v2279_v47 }
 0xa62   : > { %v3408_v58 = vpack.c.bf16 %v2240_v56, %v2239_v55  ;;  %v2033_v51 = vld [vmem:[%s5041_s15] sm:$0xf] }
 0xa63   : > { %v5229_v61 = vsub.f32 %v5201_v21, %v1946_v60  ;;  %v2027_v60 = vld [vmem:[%s5034_s5 + $0x1d0] sm:$0xff]  ;;  %3391 = vmatprep.subr.bf16.mxu0 %v3390_v59  ;;  %v2271_v59 = vld [vmem:[%s5044_s23 + $0x130] sm:$0xff]  ;;  %v2046_v54 = vrot.slane %v2033_v51, %v1362_v3  ;;  %v2042_v55 = vrot.slane %v2033_v51, %v1358_v1  ;;  %v2050_v56 = vrot.slane %v2033_v51, %v2049_v52 }
 0xa65   : > { %v1948_v0 = vmul.f32 %v5229_v61, %v5229_v61 }
 0xa67   : > { %1949 = vadd.xlane.f32.xlu0 %v1948_v0  ;;  %v2031_v0 = vld [vmem:[%s5034_s5 + $0x1f0] sm:$0xff] }
 0xa68   : > { %v3392_v4 = vpack.c.bf16 %v2031_v0, %v2027_v60  ;;  %v2272_v60 = vld [vmem:[%s5044_s23 + $0x138] sm:$0xff] }
 0xa69   : > { %v3440_v0 = vpack.c.bf16 %v2272_v60, %v2271_v59 }
 0xa6a   : > { %3393 = vmatpush1.bf16.msra.mxu0 %v3392_v4  ;;  %v2258_v4 = vld [vmem:[%s5044_s23 + $0xc8] sm:$0xff] }
 0xaf4   : > { %v1950_v5 = vpop.xlane.xlu0 %1949 }
 0xaf5   : > { %v1951_v6 = vmul.f32 0.0078125, %v1950_v5  ;;  %v2289_v5 = vld [vmem:[%s5044_s23 + $0x1c0] sm:$0xff] }
 0xaf7   : > { %v1952_v7 = vadd.f32 1e-06, %v1951_v6  ;;  %v3410_v6 = vpack.c.bf16 %v2258_v4, %v2257_v2 }
 0xaf9   : > { %3670 = vrsqrt.f32 %v1952_v7  ;;  %v2290_v7 = vld [vmem:[%s5044_s23 + $0x1c8] sm:$0xff] }
 0xb03   : > { %v3671_v8 = vpop.eup %3670 }
 0xb04   : > { %v1954_v10 = vmul.f32 %v3671_v8, %v5229_v61  ;;  %v3426_v61 = vpack.c.bf16 %v2282_v17, %v2281_v40  ;;  %v2241_v8 = vld [vmem:[%s5044_s23 + $0x40] sm:$0xff]  ;;  %v2260_v40 = vld [vmem:[%s5044_s23 + $0xd8] sm:$0xff] }
 0xb05   : > { %v2292_v17 = vld [vmem:[%s5044_s23 + $0x1d8] sm:$0xff]  ;;  %v3414_v18 = vpack.c.bf16 %v2260_v40, %v2259_v14 }
 0xb06   : > { %v1961_v12 = vmul.f32 %v2836_v9, %v1954_v10  ;;  %3427 = vmatprep.subr.bf16.mxu0 %v3426_v61  ;;  %v2242_v9 = vld [vmem:[%s5044_s23 + $0x48] sm:$0xff]  ;;  %v3442_v10 = vpack.c.bf16 %v2290_v7, %v2289_v5  ;;  %v3446_v19 = vpack.c.bf16 %v2292_v17, %v2291_v16  ;;  %v2243_v61 = vld [vmem:[%s5044_s23 + $0x50] sm:$0xff] }
 0xb08   : > { %v1968_v13 = vadd.f32 %v2837_v11, %v1961_v12  ;;  %v3412_v11 = vpack.c.bf16 %v2242_v9, %v2241_v8  ;;  %v2273_v12 = vld [vmem:[%s5044_s23 + $0x140] sm:$0xff] }
 0xb0a   : > { %2120 = vmatmul.mubr.f32.vlgmr.msra.gmra.mrb[10].mxu1 %v1968_v13  ;;  %2191 = vmatmul.mubr.f32.vlgmr.msra.gmra.mrb[4].mxu0 %v1968_v13  ;;  %v2274_v13 = vld [vmem:[%s5044_s23 + $0x148] sm:$0xff] }
 0xb0b   : > { %3397 = vmatpush3.bf16.msra.mxu1 %v3396_v20  ;;  %3429 = vmatpush3.bf16.msra.mxu0 %v3428_v24  ;;  %v3444_v15 = vpack.c.bf16 %v2274_v13, %v2273_v12  ;;  %v2244_v20 = vld [vmem:[%s5044_s23 + $0x58] sm:$0xff] }
 0xb0c   : > { %3399 = vmatprep.subr.bf16.mxu1 %v3398_v27  ;;  %3431 = vmatprep.subr.bf16.mxu0 %v3430_v35  ;;  %v3416_v23 = vpack.c.bf16 %v2244_v20, %v2243_v61  ;;  %v2276_v24 = vld [vmem:[%s5044_s23 + $0x158] sm:$0xff]  ;;  %v3418_v27 = vpack.c.bf16 %v2262_v25, %v2261_v28  ;;  %v3450_v35 = vpack.c.bf16 %v2294_v30, %v2293_v29 }
 0xb0d   : > { %v3448_v26 = vpack.c.bf16 %v2276_v24, %v2275_v22 }
 0xb0f   : > { %3401 = vmatpush3.bf16.msra.mxu1 %v3400_v32  ;;  %3433 = vmatpush3.bf16.msra.mxu0 %v3432_v36  ;;  %v2246_v32 = vld [vmem:[%s5044_s23 + $0x68] sm:$0xff] }
 0xb10   : > { %3403 = vmatprep.subr.bf16.mxu1 %v3402_v41  ;;  %3435 = vmatprep.subr.bf16.mxu0 %v3434_v45  ;;  %v3420_v36 = vpack.c.bf16 %v2246_v32, %v2245_v31  ;;  %v3452_v41 = vpack.c.bf16 %v2278_v34, %v2277_v33  ;;  %v2248_v45 = vld [vmem:[%s5044_s23 + $0x78] sm:$0xff] }
 0xb13   : > { %3405 = vmatpush3.bf16.msra.mxu1 %v3404_v46  ;;  %3437 = vmatpush3.bf16.msra.mxu0 %v3436_v49  ;;  %v3454_v46 = vpack.c.bf16 %v2296_v43, %v2295_v39  ;;  %v3424_v49 = vpack.c.bf16 %v2248_v45, %v2247_v44  ;;  %v2838_v45 = vld [vmem:[%s859_s20] ss:$0 sm:$0xff] }
 0xb14   : > { %3407 = vmatprep.subr.bf16.mxu1 %v3406_v53  ;;  %3439 = vmatprep.subr.bf16.mxu0 %v3438_v57  ;;  %v2038_v53 = vrot.slane %v2033_v51, %v1354_v63 }
 0xb17   : > { %3409 = vmatpush3.bf16.msra.mxu1 %v3408_v58  ;;  %3441 = vmatpush3.bf16.msra.mxu0 %v3440_v0 }
 0xb18   : > { %3411 = vmatprep.subr.bf16.mxu1 %v3410_v6  ;;  %3443 = vmatprep.subr.bf16.mxu0 %v3442_v10 }
 0xb1b   : > { %3413 = vmatpush3.bf16.msra.mxu1 %v3412_v11  ;;  %3445 = vmatpush3.bf16.msra.mxu0 %v3444_v15 }
 0xb1c   : > { %3415 = vmatprep.subr.bf16.mxu1 %v3414_v18  ;;  %3447 = vmatprep.subr.bf16.mxu0 %v3446_v19 }
 0xb1f   : > { %3417 = vmatpush3.bf16.msra.mxu1 %v3416_v23  ;;  %3449 = vmatpush3.bf16.msra.mxu0 %v3448_v26 }
 0xb20   : > { %3419 = vmatprep.subr.bf16.mxu1 %v3418_v27  ;;  %3451 = vmatprep.subr.bf16.mxu0 %v3450_v35 }
 0xb23   : > { %3421 = vmatpush3.bf16.msra.mxu1 %v3420_v36  ;;  %3453 = vmatpush3.bf16.msra.mxu0 %v3452_v41 }
 0xb24   : > { %3423 = vmatprep.subr.bf16.mxu1 %v3422_v42  ;;  %3455 = vmatprep.subr.bf16.mxu0 %v3454_v46 }
 0xb27   : > { %3425 = vmatpush3.bf16.msra.mxu1 %v3424_v49  ;;  %3457 = vmatpush3.bf16.msra.mxu0 %v3456_v50 }
 0xbdd   : > { %v2121_v57 = vpop.f32.mrb[10].mxu1  ;;  %v2192_v58 = vpop.f32.mrb[4].mxu0 }
 0xbde   : > { %v2122_v59 = vadd.f32 %v2121_v57, %v2038_v53  ;;  %v2193_v60 = vadd.f32 %v2192_v58, %v2046_v54  ;;  %v2123_v0 = vpop.f32.mrb[11].mxu1  ;;  %v2194_v2 = vpop.f32.mrb[5].mxu0 }
 0xbdf   : > { %v2124_v4 = vadd.f32 %v2123_v0, %v2042_v55  ;;  %v2195_v5 = vadd.f32 %v2194_v2, %v2050_v56 }
 0xbe0   : > { %v2197_v6 = vmul.f32 %v2122_v59, %v2122_v59  ;;  %v2199_v7 = vmul.f32 %v2193_v60, %v2193_v60 }
 0xbe1   : > { %v2198_v8 = vmul.f32 %v2124_v4, %v2124_v4  ;;  %v2200_v9 = vmul.f32 %v2195_v5, %v2195_v5 }
 0xbe2   : > { %v2201_v63 = vmul.f32 %v2197_v6, %v2122_v59  ;;  %v2203_v10 = vmul.f32 %v2199_v7, %v2193_v60 }
 0xbe3   : > { %v2202_v11 = vmul.f32 %v2198_v8, %v2124_v4  ;;  %v2204_v3 = vmul.f32 %v2200_v9, %v2195_v5 }
 0xbe4   : > { %v2205_v12 = vmul.f32 0.044715, %v2201_v63  ;;  %v2207_v62 = vmul.f32 0.044715, %v2203_v10 }
 0xbe5   : > { %v2206_v1 = vmul.f32 0.044715, %v2202_v11  ;;  %v2208_v13 = vmul.f32 0.044715, %v2204_v3 }
 0xbe6   : > { %v2209_v14 = vadd.f32 %v2205_v12, %v2122_v59  ;;  %v2211_v15 = vadd.f32 %v2207_v62, %v2193_v60 }
 0xbe7   : > { %v2210_v40 = vadd.f32 %v2206_v1, %v2124_v4  ;;  %v2212_v16 = vadd.f32 %v2208_v13, %v2195_v5 }
 0xbe8   : > { %v2213_v17 = vmul.f32 0.7978846, %v2209_v14  ;;  %v2215_v18 = vmul.f32 0.7978846, %v2211_v15 }
 0xbe9   : > { %v2214_v19 = vmul.f32 0.7978846, %v2210_v40  ;;  %v2216_v61 = vmul.f32 0.7978846, %v2212_v16 }
 0xbea   : > { %3672 = vtanh.f32 %v2213_v17 }
 0xbeb   : > { %3674 = vtanh.f32 %v2215_v18 }
 0xbec   : > { %3676 = vtanh.f32 %v2214_v19 }
 0xbed   : > { %3678 = vtanh.f32 %v2216_v61 }
 0xbf4   : > { %v3673_v20 = vpop.eup %3672 }
 0xbf5   : > { %v3675_v22 = vpop.eup %3674  ;;  %v2221_v23 = vadd.f32 1.0, %v3673_v20 }
 0xbf6   : > { %v3677_v24 = vpop.eup %3676  ;;  %v2223_v28 = vadd.f32 1.0, %v3675_v22 }
 0xbf7   : > { %v3679_v25 = vpop.eup %3678  ;;  %v2222_v26 = vadd.f32 1.0, %v3677_v24  ;;  %v2225_v29 = vmul.f32 0.5, %v2221_v23 }
 0xbf8   : > { %v2224_v27 = vadd.f32 1.0, %v3679_v25  ;;  %v2227_v31 = vmul.f32 0.5, %v2223_v28 }
 0xbf9   : > { %v2226_v30 = vmul.f32 0.5, %v2222_v26  ;;  %v2229_v34 = vmul.f32 %v2225_v29, %v2122_v59 }
 0xbfa   : > { %v2228_v35 = vmul.f32 0.5, %v2224_v27  ;;  %v2231_v36 = vmul.f32 %v2227_v31, %v2193_v60 }
 0xbfb   : > { %v2230_v32 = vmul.f32 %v2226_v30, %v2124_v4 }
 0xbfc   : > { %v2232_v33 = vmul.f32 %v2228_v35, %v2195_v5 }
 0xbfd   : > { %2361 = vmatprep.mubr.f32.mxu1 %v2230_v32 }
 0xbfe   : > { %2431 = vmatprep.mubr.f32.mxu0 %v2232_v33  ;;  %2362 = vmatmul.mubr.f32.vlgmr.msra.gmra.mrb[12].mxu1 %v2229_v34 }
 0xbff   : > { %2432 = vmatmul.mubr.f32.vlgmr.msra.gmra.mrb[6].mxu0 %v2231_v36 }
 0xcd1   : > { %v3026_v37 = vpop.f32.mrb[12].mxu1 }
 0xcd2   : > { %v3061_v38 = vpop.f32.mrb[6].mxu0  ;;  %v3027_v39 = vpop.f32.mrb[13].mxu1 }
 0xcd3   : > { %v3028_v41 = vadd.f32 %v3027_v39, %v3026_v37  ;;  %v3062_v42 = vpop.f32.mrb[7].mxu0 }
 0xcd4   : > { %v3063_v43 = vadd.f32 %v3062_v42, %v3061_v38 }
 0xcd6   : > { %v2434_v44 = vadd.f32 %v3063_v43, %v3028_v41  ;;  %2450 = sbr.rel (%p2839_p6) target bundleno = 3293 (0xcdd), region = 148 }
 0xcd8   : > { %v2437_v46 = vadd.f32 %v2434_v44, %v5201_v21 }
 0xcda   : > { %v2445_v47 = vadd.f32 %v2838_v45, %v2437_v46 }
 0xcdc   : > { %2446 = vst [vmem:[#allocation2] sm:$0xff] %v2445_v47  ;;  %2451 = vst [vmem:[%s5054_s9] sm:$0x1] (!%p2839_p6), %v2445_v47 }
 0xcdd PF: > { %s5581_s16 = sld [smem:[#allocation41_spill]]  ;;  %s5582_s24 = sld [smem:[#allocation65_spill]] }
 0xcde   : > { %s2465_s27 = sshll.u32 %s5054_s9, 4  ;;  %s2453_s19 = scalar_lea.sflag [#allocation5], %s952_s7  ;;  %s2466_s27 = int_to_ptr.vmem [resolvable:$true] %s2465_s27 }
 0xcdf   : > { %s4126_s6 = scalar_lea.vmem %s2466_s27, 16  ;;  %p5584_p0 = scmp.ne.s32.totalorder %s5537_s0, 0 }
 0xce0   : > { %p4127_p13 = scmp.ne.s32.totalorder %s2466_s27, %s4126_s6  ;;  %s4304_s10 = smov [#allocation27]  }
 0xce1   : > { %s4130_s5 = sshll.u32 %s4304_s10, 4  ;;  %s4131_s5 = int_to_ptr.vmem [resolvable:$false] %s4130_s5 }
 0xce2   : > { %p4128_p5 = pnand %p4127_p13, %p5584_p0  ;;  %s4132_s2 = scalar_lea.vmem %s4131_s5, 32 }
 0xce3   : > { %s2840_s30 = sshll.u32 %s5581_s16, 4  ;;  %s5583_s17 = smov %s5582_s24 }
 0xce4   : > { %s5359_s8 = scalar_lea.hbm %s5582_s24, %s2840_s30  ;;  %p4129_p8 = pneg %p4128_p5 }
 0xce5   : > { %p4133_p1 = scmp.lt.s32.totalorder %s2466_s27, %s4131_s5  ;;  %p4134_p4 = scmp.lt.s32.totalorder %s4132_s2, %s4126_s6 }
 0xce7   : > { %p4135_p11 = por %p4134_p4, %p4133_p1 }
 0xce9   : > { %p4136_p2 = pnand %p4135_p11, %p4129_p8 }
 0xceb   : > { %4139 = shalt.err (!%p4136_p2)
}
 0xcec   : > { %s4140_s15 = scalar_lea.hbm %s5359_s8, 16  ;;  %s4144_s7 = scalar_lea.hbm %s5583_s17, 32 }
 0xced   : > { %p4141_p12 = scmp.ne.s32.totalorder %s5359_s8, %s4140_s15  ;;  %p4145_p9 = scmp.lt.u32.totalorder %s5359_s8, %s5583_s17 }
 0xcee   : > { %p4146_p3 = scmp.lt.u32.totalorder %s4144_s7, %s4140_s15  ;;  %p4148_p13 = scmp.lt.u32.totalorder %s4140_s15, %s5359_s8 }
 0xcef   : > { %p4142_p7 = pnand %p4141_p12, %p5584_p0 }
 0xcf0   : > { %p4147_p6 = por %p4146_p3, %p4145_p9 }
 0xcf1   : > { %p4143_p10 = pneg %p4142_p7 }
 0xcf2   : > { %p4149_p5 = por %p4148_p13, %p4147_p6 }
 0xcf4   : > { %p4150_p8 = pnand %p4149_p5, %p4143_p10 }
 0xcf6   : > { %4153 = shalt.err (!%p4150_p8)
}
 0xcf7   : > { %3499 = dma.vmem_to_hbm [thread:$0]  (%p5584_p0), %s2466_s27, 16, %s5359_s8, %s2453_s19  }
 0xcf8 PF: > { %s5585_s3 = sld [smem:[#allocation44_spill]]  ;;  %p3557_p1 = scmp.ge.s32.totalorder %s4276_s28, 2 }
 0xcf9   : > { %s2477_s14 = sand.u32 1, %s4248_s21  }
 0xcfa   : > { %s2478_s12 = scalar_lea.sflag [#allocation5], %s2477_s14 }
 0xcfe   : > { %p5586_p4 = scmp.ne.s32.totalorder %s5585_s3, 0 }
 0xd00   : > { %p3549_p11 = pnand %p3557_p1, %p5586_p4 }
 0xd02   : > { %4231 = dma.done.wait (!%p3549_p11), %s2478_s12, 16  }
 0xd03   : > { %4233 = vsyncadd (!%p3549_p11), %s2478_s12, 4294967280  ;;  %s48_s28 = sadd.s32 1, %s4276_s28   ;;  %s5587_s18 = sld [smem:[#allocation37_spill]] }
 0xd04   : > { %p45_p2 = scmp.ge.s32.totalorder %s48_s28, 6   ;;  %s5588_s19 = sld [smem:[#allocation38_spill]] }
 0xd05   : > { %s5589_s20 = sld [smem:[#allocation48_spill]]  ;;  %s5590_s0 = sld [smem:[#allocation39_spill]] }
 0xd06   : > { %s5591_s23 = sld [smem:[#allocation49_spill]]  ;;  %s5592_s25 = sld [smem:[#allocation42_spill]] }
 0xd07   : > { %s5593_s16 = sld [smem:[#allocation46_spill]]  ;;  %s5594_s27 = sld [smem:[#allocation47_spill]] }
 0xd08   : > { %s5595_s21 = smov %s4252_s22  ;;  %s5597_s24 = smov %s4268_s26 }
 0xd09   :  { %47 = sbr.rel (!%p45_p2) target bundleno = 38 (0x26), region = 278 }
 0xd0b   : > { %s5596_s22 = smov %s5590_s0 }
 0xd0d   : > { %s5598_s26 = smov %s5593_s16 }
 0xd10   :  { %2482 = vsyncpa [#allocation4], 1 }
 0xd11   :  { %2484 = vsyncpa [#allocation4 + $0x1], 1 }
 0xd12   :  { %2485 = vsyncpa [#allocation7], 1 }
 0xd13   :  { %2486 = vsyncpa [#allocation10], 1 }
 0xd14   :  { %2488 = vsyncpa [#allocation10 + $0x1], 1 }
 0xd15   :  { %2489 = vsyncpa [#allocation13], 1 }
 0xd16   :  { %2491 = vsyncpa [#allocation13 + $0x1], 1 }
 0xd17   :  { %2492 = vsyncpa [#allocation16], 1 }
 0xd18   :  { %2494 = vsyncpa [#allocation16 + $0x1], 1 }
 0xd19   :  { %2495 = vsyncpa [#allocation19], 1 }
 0xd1a   :  { %2497 = vsyncpa [#allocation19 + $0x1], 1 }
 0xd1b   :  { %2498 = vsyncpa [#allocation22], 1 }
 0xd1c   :  { %2500 = vsyncpa [#allocation22 + $0x1], 1 }
 0xd1d   :  { %2501 = vsyncpa [#allocation25], 1 }
 0xd1e   :  { %2503 = vsyncpa [#allocation25 + $0x1], 1 }
 0xd1f   :  { %2504 = vsyncpa [#allocation5], 1 }
 0xd20   :  { %2506 = vsyncpa [#allocation5 + $0x1], 1 }

// kernel: tpu_custom_call.1
= control target key start
LH: loop header
LB: loop body
LE: loop exit
PB: predicated region body
PF: predicated region fallthrough
CT: control target
= control target key end

     0   :  { %s5475_s0 = inlined_call_operand.hbm [shape: f32[2,8,768], index: 0, kind: input, shape index: {}]   ;;  %s5476_s1 = inlined_call_operand.hbm [shape: f32[768,128], index: 1, kind: input, shape index: {}]   ;;  %s5477_s2 = inlined_call_operand.hbm [shape: f32[8,128], index: 2, kind: input, shape index: {}]   ;;  %s5478_s3 = inlined_call_operand.hbm [shape: f32[2,1,128], index: 3, kind: input, shape index: {}]   ;;  %s5479_s4 = inlined_call_operand.hbm [shape: f32[2,1,128], index: 4, kind: input, shape index: {}]   ;;  %s5480_s5 = inlined_call_operand.hbm [shape: f32[2,128,384], index: 5, kind: input, shape index: {}]   ;;  %s5481_s6 = inlined_call_operand.hbm [shape: f32[2,1,384], index: 6, kind: input, shape index: {}]   ;;  %s5482_s7 = inlined_call_operand.hbm [shape: f32[2,128,128], index: 7, kind: input, shape index: {}]   ;;  %s5483_s8 = inlined_call_operand.hbm [shape: f32[2,1,128], index: 8, kind: input, shape index: {}]   ;;  %s5484_s9 = inlined_call_operand.hbm [shape: f32[2,1,128], index: 9, kind: input, shape index: {}]   ;;  %s5485_s10 = inlined_call_operand.hbm [shape: f32[2,1,128], index: 10, kind: input, shape index: {}]   ;;  %s5486_s11 = inlined_call_operand.hbm [shape: f32[2,128,512], index: 11, kind: input, shape index: {}]   ;;  %s5487_s12 = inlined_call_operand.hbm [shape: f32[2,1,512], index: 12, kind: input, shape index: {}]   ;;  %s5488_s13 = inlined_call_operand.hbm [shape: f32[2,512,128], index: 13, kind: input, shape index: {}]   ;;  %s5489_s14 = inlined_call_operand.hbm [shape: f32[2,1,128], index: 14, kind: input, shape index: {}]   ;;  %s5490_s15 = inlined_call_operand.hbm [shape: f32[2,1,128], index: 15, kind: output, shape index: {}]  }
   0x1   :  { %5538 = sst [smem:[#allocation48_spill]] %s5475_s0 }
   0x2   :  { %5539 = sst [smem:[#allocation49_spill]] %s5476_s1 }
   0x3   :  { %5540 = sst [smem:[#allocation50_spill]] %s5477_s2 }
   0x4   :  { %5541 = sst [smem:[#allocation51_spill]] %s5478_s3 }
   0x5   :  { %5542 = sst [smem:[#allocation52_spill]] %s5479_s4 }
   0x6   :  { %5543 = sst [smem:[#allocation53_spill]] %s5480_s5 }
   0x7   :  { %5544 = sst [smem:[#allocation54_spill]] %s5481_s6 }
   0x8   :  { %5545 = sst [smem:[#allocation55_spill]] %s5482_s7 }
   0x9   :  { %5546 = sst [smem:[#allocation56_spill]] %s5483_s8 }
   0xa   :  { %5547 = sst [smem:[#allocation57_spill]] %s5484_s9 }
   0xb   :  { %5548 = sst [smem:[#allocation58_spill]] %s5485_s10 }
   0xc   :  { %5549 = sst [smem:[#allocation59_spill]] %s5486_s11 }
   0xd   :  { %5550 = sst [smem:[#allocation60_spill]] %s5487_s12 }
   0xe   :  { %5551 = sst [smem:[#allocation61_spill]] %s5488_s13 }
   0xf   :  { %5552 = sst [smem:[#allocation62_spill]] %s5489_s14 }
  0x10   :  { %5553 = sst [smem:[#allocation63_spill]] %s5490_s15 }
  0x11   :  { %20 = vsyncpa [#allocation4], 0 }
  0x12   :  { %22 = vsyncpa [#allocation4 + $0x1], 0 }
  0x13   :  { %23 = vsyncpa [#allocation7], 0 }
  0x14   :  { %24 = vsyncpa [#allocation10], 0 }
  0x15   :  { %26 = vsyncpa [#allocation10 + $0x1], 0 }
  0x16   :  { %27 = vsyncpa [#allocation13], 0 }
  0x17   :  { %29 = vsyncpa [#allocation13 + $0x1], 0 }
  0x18   :  { %30 = vsyncpa [#allocation16], 0 }
  0x19   :  { %32 = vsyncpa [#allocation16 + $0x1], 0 }
  0x1a   :  { %33 = vsyncpa [#allocation19], 0 }
  0x1b   :  { %35 = vsyncpa [#allocation19 + $0x1], 0 }
  0x1c   :  { %36 = vsyncpa [#allocation22], 0 }
  0x1d   :  { %38 = vsyncpa [#allocation22 + $0x1], 0 }
  0x1e   :  { %39 = vsyncpa [#allocation25], 0 }
  0x1f   :  { %41 = vsyncpa [#allocation25 + $0x1], 0 }
  0x20   :  { %42 = vsyncpa [#allocation5], 0 }
  0x21   :  { %44 = vsyncpa [#allocation5 + $0x1], 0  ;;  %s4412_s18 = smov 0   ;;  %s4414_s19 = smov 0  }
  0x22   :  { %s4416_s20 = smov 0   ;;  %s4418_s21 = smov 0  }
  0x23   :  { %s4420_s22 = smov 0   ;;  %s4422_s23 = smov 0  }
  0x24   :  { %s4424_s24 = smov 0   ;;  %s4426_s25 = smov 0  }
  0x25   :  { %s4428_s26 = smov 0   ;;  %s4430_s27 = smov 0  }
  0x26   :  { %s4432_s28 = smov 0  }
  0x27 LB: > { %5554 = sst [smem:[#allocation37_spill]] %s4267_s19  ;;  %s4466_s29 = sadd.s32 4294967295, %s4303_s28   ;;  %s4303_s28 = sphi %s4432_s28, %s50_s28   ;;  %s4299_s27 = sphi %s4430_s27, %s5641_s27   ;;  %s4295_s26 = sphi %s4428_s26, %s5648_s26   ;;  %s4291_s25 = sphi %s4426_s25, %s5639_s25   ;;  %s4287_s24 = sphi %s4424_s24, %s5647_s24   ;;  %s4283_s23 = sphi %s4422_s23, %s5646_s23   ;;  %s4279_s22 = sphi %s4420_s22, %s5645_s22   ;;  %s4275_s21 = sphi %s4418_s21, %s5644_s21   ;;  %s4271_s20 = sphi %s4416_s20, %s5643_s20   ;;  %s4267_s19 = sphi %s4414_s19, %s5636_s19   ;;  %s4263_s18 = sphi %s4412_s18, %s5642_s18  }
  0x28   : > { %5555 = sst [smem:[#allocation38_spill]] %s4271_s20  ;;  %p5502_p0 = scmp.eq.s32.totalorder %s4303_s28, 0 }
  0x29   : > { %5556 = sst [smem:[#allocation39_spill]] %s4287_s24  ;;  %p5501_p1 = scmp.eq.s32.totalorder %s4466_s29, 0 }
  0x2a   : > { %5557 = sst [smem:[#allocation40_spill]] %s4291_s25  ;;  %p144_p2 = scmp.ne.s32.totalorder %s4271_s20, %s4267_s19 }
  0x2b   : > { %5558 = sst [smem:[#allocation41_spill]] %s4299_s27  ;;  %p150_p3 = scmp.ne.s32.totalorder %s4267_s19, %s4263_s18 }
  0x2c   : > { %5559 = sst [smem:[#allocation42_spill]] %s4466_s29  ;;  %p2820_p4 = scmp.ge.s32.totalorder %s4303_s28, 1 }
  0x2d   : > { %p146_p5 = por %p144_p2, %p5502_p0  ;;  %p473_p6 = scmp.lt.s32.totalorder %s4303_s28, 5 }
  0x2e   : > { %p4479_p7 = por %p150_p3, %p5501_p1  ;;  %s4305_s17 = smov [#allocation6]  }
  0x2f   : > { %p4483_p8 = pnand %p2820_p4, %p473_p6  ;;  %s485_s15 = sshll.u32 %s4305_s17, 4  ;;  %s486_s15 = int_to_ptr.vmem [resolvable:$true] %s485_s15 }
  0x30   : > { %s5560_s30 = scalar_select %p4479_p7, 1, 0 }
  0x31   : > { %s5562_s16 = scalar_select %p4483_p8, 1, 0 }
  0x32   : > { %5561 = sst [smem:[#allocation43_spill]] %s5560_s30  ;;  %p3529_p9 = pneg %p4483_p8 }
  0x33   : > { %5563 = sst [smem:[#allocation44_spill]] %s5562_s16  ;;  %p5500_p11 = scmp.lt.s32.totalorder %s4303_s28, 4 }
  0x34   : > { %p4491_p10 = pnand %p3529_p9, %p5501_p1  ;;  %s4497_s25 = sand.u32 1, %s4271_s20  }
  0x35   : > { %p4501_p12 = pnand %p5500_p11, %p146_p5  ;;  %s5566_s1 = sld [smem:[#allocation49_spill]] }
  0x36   : > { %s5564_s18 = scalar_select %p4491_p10, 1, 0 }
  0x37   : > { %s5565_s24 = scalar_select %p4501_p12, 1, 0 }
  0x38   : > { %p5513_p2 = pneg %p4491_p10 }
  0x3b   : > { %s3707_s19 = scalar_lea.hbm %s5566_s1, 12288 }
  0x3c   : > { %p3708_p13 = scmp.ne.s32.totalorder %s5566_s1, %s3707_s19  ;;  %p3714_p5 = scmp.lt.u32.totalorder %s3707_s19, %s5566_s1 }
  0x3e   : > { %p3710_p3 = pnand %p5513_p2, %p3708_p13 }
  0x40   : > { %p3711_p4 = pneg %p3710_p3 }
  0x42   : > { %p3716_p6 = pnand %p3714_p5, %p3711_p4 }
  0x44   : > { %3719 = shalt.err (!%p3716_p6)
}
  0x45   : > { %s3720_s8 = scalar_lea.vmem %s486_s15, 12288  ;;  %p3728_p0 = scmp.lt.s32.totalorder %s486_s15, %s486_s15 }
  0x46   : > { %p3721_p9 = scmp.ne.s32.totalorder %s486_s15, %s3720_s8  ;;  %p3729_p7 = scmp.lt.s32.totalorder %s3720_s8, %s3720_s8 }
  0x48   : > { %p3723_p11 = pnand %p3721_p9, %p5513_p2  ;;  %p3730_p8 = por %p3729_p7, %p3728_p0 }
  0x4a   : > { %p3724_p1 = pneg %p3723_p11 }
  0x4c   : > { %p3731_p12 = pnand %p3730_p8, %p3724_p1 }
  0x4e   : > { %3734 = shalt.err (!%p3731_p12)
}
  0x4f   : > { %s5509_s14 = smov 128   ;;  %s5511_s10 = smov 8  }
  0x50   : > { %3532 = dma.hbm_to_vmem [thread:$0]  (!%p4491_p10), %s5566_s1, 12288, %s486_s15, [#allocation7], %s5509_s14, %s5509_s14, %s5511_s10  }
  0x51   : > { %s4531_s30 = sand.u32 1, %s4303_s28   ;;  %s4534_s8 = sshll.u32 %s4295_s26, 4 }
  0x52   : > { %s5567_s3 = sld [smem:[#allocation51_spill]]  ;;  %s532_s4 = scalar_lea.vmem [#allocation9], %s4497_s25 }
  0x53   : > { %s539_s0 = sshll.u32 %s532_s4, 4  ;;  %p5568_p1 = scmp.ne.s32.totalorder %s5565_s24, 0  ;;  %s4543_s0 = int_to_ptr.vmem [resolvable:$true] %s539_s0 }
  0x55   : > { %p4550_p7 = pneg %p5568_p1 }
  0x57   : > { %s5569_s19 = scalar_select %p4550_p7, 1, 0 }
  0x58   : > { %s4540_s6 = scalar_lea.hbm %s5567_s3, %s4534_s8  ;;  %s3740_s14 = scalar_lea.hbm %s5567_s3, 32 }
  0x59   : > { %s3735_s12 = scalar_lea.hbm %s4540_s6, 16  ;;  %p3741_p12 = scmp.lt.u32.totalorder %s4540_s6, %s5567_s3 }
  0x5a   : > { %p3736_p0 = scmp.ne.s32.totalorder %s4540_s6, %s3735_s12  ;;  %p3742_p13 = scmp.lt.u32.totalorder %s3740_s14, %s3735_s12 }
  0x5b   : > { %p3744_p4 = scmp.lt.u32.totalorder %s3735_s12, %s4540_s6 }
  0x5c   : > { %p3738_p8 = pnand %p4550_p7, %p3736_p0  ;;  %p3743_p3 = por %p3742_p13, %p3741_p12 }
  0x5e   : > { %p3739_p11 = pneg %p3738_p8  ;;  %p3745_p5 = por %p3744_p4, %p3743_p3 }
  0x60   : > { %p3746_p6 = pnand %p3745_p5, %p3739_p11 }
  0x62   : > { %3749 = shalt.err (!%p3746_p6)
}
  0x63   : > { %s3750_s15 = scalar_lea.vmem %s4543_s0, 16  ;;  %s4308_s16 = smov [#allocation9]  }
  0x64   : > { %p3751_p9 = scmp.ne.s32.totalorder %s4543_s0, %s3750_s15  ;;  %s3755_s17 = sshll.u32 %s4308_s16, 4  ;;  %s3756_s17 = int_to_ptr.vmem [resolvable:$false] %s3755_s17 }
  0x65   : > { %s3757_s10 = scalar_lea.vmem %s3756_s17, 32  ;;  %p3758_p2 = scmp.lt.s32.totalorder %s4543_s0, %s3756_s17 }
  0x66   : > { %p3753_p0 = pnand %p3751_p9, %p4550_p7  ;;  %p3759_p10 = scmp.lt.s32.totalorder %s3757_s10, %s3750_s15 }
  0x68   : > { %p3754_p8 = pneg %p3753_p0  ;;  %p3760_p12 = por %p3759_p10, %p3758_p2 }
  0x6a   : > { %p3761_p13 = pnand %p3760_p12, %p3754_p8 }
  0x6c   : > { %3764 = shalt.err (!%p3761_p13)
}
  0x6d   : > { %s5570_s14 = scalar_lea.sflag [#allocation10], %s4531_s30  ;;  %s3486_s12 = smul.u32 384, %s4497_s25 }
  0x6e   : > { %3542 = dma.hbm_to_vmem [thread:$0]  (!%p5568_p1), %s4540_s6, 16, %s4543_s0, %s5570_s14  }
  0x6f   : > { %s3487_s4 = smul.u32 6144, %s4295_s26  ;;  %s5571_s5 = sld [smem:[#allocation53_spill]] }
  0x70   : > { %s567_s10 = scalar_lea.vmem [#allocation12], %s3486_s12  ;;  %s2829_s3 = sshll.u32 %s4497_s25, 7 }
  0x71   : > { %s574_s1 = sshll.u32 %s567_s10, 4  ;;  %s5522_s20 = scalar_lea.sflag [#allocation13], %s4531_s30  ;;  %s4582_s1 = int_to_ptr.vmem [resolvable:$true] %s574_s1 }
  0x75   : > { %s4580_s15 = scalar_lea.hbm %s5571_s5, %s3487_s4  ;;  %s3770_s14 = scalar_lea.hbm %s5571_s5, 12288 }
  0x76   : > { %s3765_s29 = scalar_lea.hbm %s4580_s15, 6144  ;;  %p3771_p3 = scmp.lt.u32.totalorder %s4580_s15, %s5571_s5 }
  0x77   : > { %p3766_p10 = scmp.ne.s32.totalorder %s4580_s15, %s3765_s29  ;;  %p3772_p4 = scmp.lt.u32.totalorder %s3770_s14, %s3765_s29 }
  0x78   : > { %p3774_p6 = scmp.lt.u32.totalorder %s3765_s29, %s4580_s15 }
  0x79   : > { %p3768_p2 = pnand %p3766_p10, %p4550_p7  ;;  %p3773_p5 = por %p3772_p4, %p3771_p3 }
  0x7b   : > { %p3769_p11 = pneg %p3768_p2  ;;  %p3775_p9 = por %p3774_p6, %p3773_p5 }
  0x7d   : > { %p3776_p0 = pnand %p3775_p9, %p3769_p11 }
  0x7f   : > { %3779 = shalt.err (!%p3776_p0)
}
  0x80   : > { %s3780_s12 = scalar_lea.vmem %s4582_s1, 6144  ;;  %s4309_s17 = smov [#allocation12]  }
  0x81   : > { %p3781_p8 = scmp.ne.s32.totalorder %s4582_s1, %s3780_s12  ;;  %s3785_s10 = sshll.u32 %s4309_s17, 4  ;;  %s3786_s10 = int_to_ptr.vmem [resolvable:$false] %s3785_s10 }
  0x82   : > { %s3787_s0 = scalar_lea.vmem %s3786_s10, 12288  ;;  %p3788_p10 = scmp.lt.s32.totalorder %s4582_s1, %s3786_s10 }
  0x83   : > { %p3783_p12 = pnand %p3781_p8, %p4550_p7  ;;  %p3789_p2 = scmp.lt.s32.totalorder %s3787_s0, %s3780_s12 }
  0x85   : > { %p3784_p13 = pneg %p3783_p12  ;;  %p3790_p3 = por %p3789_p2, %p3788_p10 }
  0x87   : > { %p3791_p4 = pnand %p3790_p3, %p3784_p13 }
  0x89   : > { %3794 = shalt.err (!%p3791_p4)
}
  0x8a   : > { %s4310_s29 = smov 384   ;;  %s4311_s6 = smov 24  }
  0x8b   : > { %3548 = dma.hbm_to_vmem [thread:$0]  (!%p5568_p1), %s4580_s15, 6144, %s4582_s1, %s5522_s20, %s4310_s29, %s4310_s29, %s4311_s6  }
  0x8c   : > { %s2869_s14 = sshll.u32 %s4295_s26, 11  ;;  %s5572_s7 = sld [smem:[#allocation55_spill]] }
  0x8d   : > { %s607_s17 = scalar_lea.vmem [#allocation15], %s2829_s3  ;;  %s5521_s0 = scalar_lea.sflag [#allocation16], %s4531_s30 }
  0x8e   : > { %s614_s10 = sshll.u32 %s607_s17, 4  ;;  %s4617_s10 = int_to_ptr.vmem [resolvable:$true] %s614_s10 }
  0x92   : > { %s4613_s12 = scalar_lea.hbm %s5572_s7, %s2869_s14  ;;  %s3800_s29 = scalar_lea.hbm %s5572_s7, 4096 }
  0x93   : > { %s3795_s5 = scalar_lea.hbm %s4613_s12, 2048  ;;  %p3801_p9 = scmp.lt.u32.totalorder %s4613_s12, %s5572_s7 }
  0x94   : > { %p3796_p11 = scmp.ne.s32.totalorder %s4613_s12, %s3795_s5  ;;  %p3802_p0 = scmp.lt.u32.totalorder %s3800_s29, %s3795_s5 }
  0x95   : > { %p3804_p12 = scmp.lt.u32.totalorder %s3795_s5, %s4613_s12 }
  0x96   : > { %p3798_p5 = pnand %p3796_p11, %p4550_p7  ;;  %p3803_p8 = por %p3802_p0, %p3801_p9 }
  0x98   : > { %p3799_p6 = pneg %p3798_p5  ;;  %p3805_p13 = por %p3804_p12, %p3803_p8 }
  0x9a   : > { %p3806_p10 = pnand %p3805_p13, %p3799_p6 }
  0x9c   : > { %3809 = shalt.err (!%p3806_p10)
}
  0x9d   : > { %s3810_s3 = scalar_lea.vmem %s4617_s10, 2048  ;;  %s4312_s4 = smov [#allocation15]  }
  0x9e   : > { %p3811_p2 = scmp.ne.s32.totalorder %s4617_s10, %s3810_s3  ;;  %s3815_s16 = sshll.u32 %s4312_s4, 4  ;;  %s3816_s16 = int_to_ptr.vmem [resolvable:$false] %s3815_s16 }
  0x9f   : > { %s3817_s17 = scalar_lea.vmem %s3816_s16, 4096  ;;  %p3818_p11 = scmp.lt.s32.totalorder %s4617_s10, %s3816_s16 }
  0xa0   : > { %p3813_p3 = pnand %p3811_p2, %p4550_p7  ;;  %p3819_p5 = scmp.lt.s32.totalorder %s3817_s17, %s3810_s3 }
  0xa2   : > { %p3814_p4 = pneg %p3813_p3  ;;  %p3820_p9 = por %p3819_p5, %p3818_p11 }
  0xa4   : > { %p3821_p0 = pnand %p3820_p9, %p3814_p4 }
  0xa6   : > { %3824 = shalt.err (!%p3821_p0)
}
  0xa7   : > { %s5573_s5 = smov 8   ;;  %s5574_s1 = smov 128  }
  0xa8   : > { %3554 = dma.hbm_to_vmem [thread:$0]  (!%p5568_p1), %s4613_s12, 2048, %s4617_s10, %s5521_s0, %s5574_s1, %s5574_s1, %s5573_s5  }
  0xa9   : > { %s5575_s9 = sld [smem:[#allocation57_spill]]  ;;  %s644_s14 = scalar_lea.vmem [#allocation18], %s4497_s25 }
  0xaa   : > { %s651_s3 = sshll.u32 %s644_s14, 4  ;;  %s2835_s4 = sshll.u32 %s4497_s25, 9  ;;  %s4653_s3 = int_to_ptr.vmem [resolvable:$true] %s651_s3 }
  0xab   : > { %s5523_s16 = scalar_lea.sflag [#allocation19], %s4531_s30 }
  0xaf   : > { %s4650_s6 = scalar_lea.hbm %s5575_s9, %s4534_s8  ;;  %s3830_s15 = scalar_lea.hbm %s5575_s9, 32 }
  0xb0   : > { %s3825_s17 = scalar_lea.hbm %s4650_s6, 16  ;;  %p3831_p13 = scmp.lt.u32.totalorder %s4650_s6, %s5575_s9 }
  0xb1   : > { %p3826_p6 = scmp.ne.s32.totalorder %s4650_s6, %s3825_s17  ;;  %p3832_p10 = scmp.lt.u32.totalorder %s3830_s15, %s3825_s17 }
  0xb2   : > { %p3834_p3 = scmp.lt.u32.totalorder %s3825_s17, %s4650_s6 }
  0xb3   : > { %p3828_p8 = pnand %p3826_p6, %p4550_p7  ;;  %p3833_p2 = por %p3832_p10, %p3831_p13 }
  0xb5   : > { %p3829_p12 = pneg %p3828_p8  ;;  %p3835_p4 = por %p3834_p3, %p3833_p2 }
  0xb7   : > { %p3836_p11 = pnand %p3835_p4, %p3829_p12 }
  0xb9   : > { %3839 = shalt.err (!%p3836_p11)
}
  0xba   : > { %s3840_s14 = scalar_lea.vmem %s4653_s3, 16  ;;  %s4313_s12 = smov [#allocation18]  }
  0xbb   : > { %p3841_p5 = scmp.ne.s32.totalorder %s4653_s3, %s3840_s14  ;;  %s3845_s10 = sshll.u32 %s4313_s12, 4  ;;  %s3846_s10 = int_to_ptr.vmem [resolvable:$false] %s3845_s10 }
  0xbc   : > { %s3847_s0 = scalar_lea.vmem %s3846_s10, 32  ;;  %p3848_p6 = scmp.lt.s32.totalorder %s4653_s3, %s3846_s10 }
  0xbd   : > { %p3843_p9 = pnand %p3841_p5, %p4550_p7  ;;  %p3849_p8 = scmp.lt.s32.totalorder %s3847_s0, %s3840_s14 }
  0xbf   : > { %p3844_p0 = pneg %p3843_p9  ;;  %p3850_p13 = por %p3849_p8, %p3848_p6 }
  0xc1   : > { %p3851_p10 = pnand %p3850_p13, %p3844_p0 }
  0xc3   : > { %3854 = shalt.err (!%p3851_p10)
}
  0xc4   : > { %3560 = dma.hbm_to_vmem [thread:$0]  (!%p5568_p1), %s4650_s6, 16, %s4653_s3, %s5523_s16  }
  0xc5   : > { %s2870_s17 = sshll.u32 %s4295_s26, 13  ;;  %s5576_s11 = sld [smem:[#allocation59_spill]] }
  0xc6   : > { %s679_s12 = scalar_lea.vmem [#allocation21], %s2835_s4  ;;  %s5528_s0 = scalar_lea.sflag [#allocation22], %s4531_s30 }
  0xc7   : > { %s686_s10 = sshll.u32 %s679_s12, 4  ;;  %s4690_s10 = int_to_ptr.vmem [resolvable:$true] %s686_s10 }
  0xcb   : > { %s4686_s14 = scalar_lea.hbm %s5576_s11, %s2870_s17  ;;  %s3860_s15 = scalar_lea.hbm %s5576_s11, 16384 }
  0xcc   : > { %s3855_s20 = scalar_lea.hbm %s4686_s14, 8192  ;;  %p3861_p4 = scmp.lt.u32.totalorder %s4686_s14, %s5576_s11 }
  0xcd   : > { %p3856_p12 = scmp.ne.s32.totalorder %s4686_s14, %s3855_s20  ;;  %p3862_p11 = scmp.lt.u32.totalorder %s3860_s15, %s3855_s20 }
  0xce   : > { %p3864_p9 = scmp.lt.u32.totalorder %s3855_s20, %s4686_s14 }
  0xcf   : > { %p3858_p2 = pnand %p3856_p12, %p4550_p7  ;;  %p3863_p5 = por %p3862_p11, %p3861_p4 }
  0xd1   : > { %p3859_p3 = pneg %p3858_p2  ;;  %p3865_p0 = por %p3864_p9, %p3863_p5 }
  0xd3   : > { %p3866_p6 = pnand %p3865_p0, %p3859_p3 }
  0xd5   : > { %3869 = shalt.err (!%p3866_p6)
}
  0xd6   : > { %s3870_s12 = scalar_lea.vmem %s4690_s10, 8192  ;;  %s4314_s6 = smov [#allocation21]  }
  0xd7   : > { %p3871_p8 = scmp.ne.s32.totalorder %s4690_s10, %s3870_s12  ;;  %s3875_s3 = sshll.u32 %s4314_s6, 4  ;;  %s3876_s3 = int_to_ptr.vmem [resolvable:$false] %s3875_s3 }
  0xd8   : > { %s3877_s16 = scalar_lea.vmem %s3876_s3, 16384  ;;  %p3878_p12 = scmp.lt.s32.totalorder %s4690_s10, %s3876_s3 }
  0xd9   : > { %p3873_p13 = pnand %p3871_p8, %p4550_p7  ;;  %p3879_p2 = scmp.lt.s32.totalorder %s3877_s16, %s3870_s12 }
  0xdb   : > { %p3874_p10 = pneg %p3873_p13  ;;  %p3880_p4 = por %p3879_p2, %p3878_p12 }
  0xdd   : > { %p3881_p11 = pnand %p3880_p4, %p3874_p10 }
  0xdf   : > { %3884 = shalt.err (!%p3881_p11)
}
  0xe0   : > { %s4315_s20 = smov 512   ;;  %s4316_s15 = smov 32  }
  0xe1   : > { %3566 = dma.hbm_to_vmem [thread:$0]  (!%p5568_p1), %s4686_s14, 8192, %s4690_s10, %s5528_s0, %s4315_s20, %s4315_s20, %s4316_s15  }
  0xe2   : > { %s5577_s13 = sld [smem:[#allocation61_spill]]  ;;  %s719_s3 = scalar_lea.vmem [#allocation24], %s2835_s4 }
  0xe3   : > { %s726_s16 = sshll.u32 %s719_s3, 4  ;;  %s4317_s7 = smov [#allocation8]   ;;  %s4725_s16 = int_to_ptr.vmem [resolvable:$true] %s726_s16 }
  0xe4   : > { %s4727_s9 = sshll.u32 %s4317_s7, 4  ;;  %s5527_s11 = scalar_lea.sflag [#allocation25], %s4531_s30  ;;  %s500_s9 = int_to_ptr.vmem [resolvable:$true] %s4727_s9 }
  0xe8   : > { %s4721_s12 = scalar_lea.hbm %s5577_s13, %s2870_s17  ;;  %s3890_s20 = scalar_lea.hbm %s5577_s13, 16384 }
  0xe9   : > { %s3885_s14 = scalar_lea.hbm %s4721_s12, 8192  ;;  %p3891_p0 = scmp.lt.u32.totalorder %s4721_s12, %s5577_s13 }
  0xea   : > { %p3886_p3 = scmp.ne.s32.totalorder %s4721_s12, %s3885_s14  ;;  %p3892_p6 = scmp.lt.u32.totalorder %s3890_s20, %s3885_s14 }
  0xeb   : > { %p3894_p13 = scmp.lt.u32.totalorder %s3885_s14, %s4721_s12 }
  0xec   : > { %p3888_p5 = pnand %p3886_p3, %p4550_p7  ;;  %p3893_p8 = por %p3892_p6, %p3891_p0 }
  0xee   : > { %p3889_p9 = pneg %p3888_p5  ;;  %p3895_p10 = por %p3894_p13, %p3893_p8 }
  0xf0   : > { %p3896_p12 = pnand %p3895_p10, %p3889_p9 }
  0xf2   : > { %3899 = shalt.err (!%p3896_p12)
}
  0xf3   : > { %s3900_s7 = scalar_lea.vmem %s4725_s16, 8192  ;;  %s4318_s4 = smov [#allocation24]  }
  0xf4   : > { %p3901_p2 = scmp.ne.s32.totalorder %s4725_s16, %s3900_s7  ;;  %s3905_s6 = sshll.u32 %s4318_s4, 4  ;;  %s3906_s6 = int_to_ptr.vmem [resolvable:$false] %s3905_s6 }
  0xf5   : > { %s3907_s3 = scalar_lea.vmem %s3906_s6, 16384  ;;  %p3908_p3 = scmp.lt.s32.totalorder %s4725_s16, %s3906_s6 }
  0xf6   : > { %p3903_p4 = pnand %p3901_p2, %p4550_p7  ;;  %p3909_p5 = scmp.lt.s32.totalorder %s3907_s3, %s3900_s7 }
  0xf8   : > { %p3904_p11 = pneg %p3903_p4  ;;  %p3910_p0 = por %p3909_p5, %p3908_p3 }
  0xfa   : > { %p3911_p6 = pnand %p3910_p0, %p3904_p11 }
  0xfc   : > { %3914 = shalt.err (!%p3911_p6)
}
  0xfd   : > { %3572 = dma.hbm_to_vmem [thread:$0]  (!%p5568_p1), %s4721_s12, 8192, %s4725_s16, %s5527_s11, %s5574_s1, %s5574_s1, %s5573_s5  }
  0xfe   : > { %s5578_s2 = sld [smem:[#allocation50_spill]]  ;;  %p5579_p8 = scmp.ne.s32.totalorder %s5564_s18, 0 }
 0x100   : > { %p5580_p13 = pneg %p5579_p8 }
 0x104   : > { %s3915_s10 = scalar_lea.hbm %s5578_s2, 128 }
 0x105   : > { %p3916_p9 = scmp.ne.s32.totalorder %s5578_s2, %s3915_s10  ;;  %p3922_p2 = scmp.lt.u32.totalorder %s3915_s10, %s5578_s2 }
 0x107   : > { %p3918_p10 = pnand %p3916_p9, %p5580_p13 }
 0x109   : > { %p3919_p12 = pneg %p3918_p10 }
 0x10b   : > { %p3924_p4 = pnand %p3922_p2, %p3919_p12 }
 0x10d   : > { %3927 = shalt.err (!%p3924_p4)
}
 0x10e   : > { %s3928_s5 = scalar_lea.vmem %s500_s9, 128  ;;  %p5581_p3 = pmov %p5580_p13 }
 0x10f   : > { %p3929_p11 = scmp.ne.s32.totalorder %s500_s9, %s3928_s5  ;;  %p3936_p6 = scmp.lt.s32.totalorder %s500_s9, %s500_s9 }
 0x110   : > { %p3937_p1 = scmp.lt.s32.totalorder %s3928_s5, %s3928_s5 }
 0x111   : > { %p3931_p5 = pnand %p3929_p11, %p5581_p3 }
 0x112   : > { %p3938_p7 = por %p3937_p1, %p3936_p6 }
 0x113   : > { %p3932_p0 = pneg %p3931_p5 }
 0x115   : > { %p3939_p9 = pnand %p3938_p7, %p3932_p0 }
 0x117   : > { %3942 = shalt.err (!%p3939_p9)
}
 0x118   : > { %s5582_s16 = sld [smem:[#allocation42_spill]]  ;;  %s5583_s18 = sld [smem:[#allocation38_spill]] }
 0x119   : > { %3535 = dma.hbm_to_vmem [thread:$0]  (!%p5579_p8), %s5578_s2, 128, %s500_s9, [#allocation7]  }
 0x11a   : > { %s2819_s4 = sadd.s32 4294967294, %s4303_s28   ;;  %s59_s6 = sadd.s32 1, %s4295_s26 }
 0x11b   : > { %s62_s3 = sadd.s32 1, %s4299_s27  ;;  %p60_p1 = scmp.ge.s32.totalorder %s59_s6, 2 }
 0x11c   : > { %s69_s14 = sadd.s32 1, %s4283_s23  ;;  %p76_p7 = scmp.ne.s32.totalorder %s4283_s23, %s4279_s22 }
 0x11d   : > { %p82_p13 = scmp.ne.s32.totalorder %s4279_s22, %s4275_s21  ;;  %s5650_s6 = smov (%p60_p1, %s59_s6), 0 }
 0x11e   : > { %5584 = sst [smem:[#allocation45_spill]] %s5650_s6  ;;  %s5652_s3 = smov (!%p60_p1, %s62_s3), %s4299_s27 }
 0x11f   : > { %p5585_p8 = scmp.eq.s32.totalorder %s4303_s28, 0  ;;  %p5587_p12 = scmp.eq.s32.totalorder %s5582_s16, 0 }
 0x120   : > { %p64_p4 = scmp.ge.s32.totalorder %s5652_s3, 2  ;;  %s134_s10 = ssub.s32 %s4295_s26, %s5650_s6 }
 0x121   : > { %p4793_p10 = por %p5585_p8, %p76_p7  ;;  %p4802_p2 = por %p5587_p12, %p82_p13 }
 0x122   : > { %p135_p11 = scmp.eq.s32.totalorder %s134_s10, 0  ;;  %s137_s20 = sadd.s32 1, %s5583_s18 }
 0x123   : > { %s5588_s17 = scalar_select %p4802_p2, 1, 0 }
 0x124   : > { %s5654_s3 = smov (%p64_p4, %s5652_s3), 0  ;;  %s5656_s18 = smov (!%p135_p11, %s5583_s18), %s137_s20 }
 0x125   : > { %5589 = sst [smem:[#allocation46_spill]] %s5654_s3  ;;  %s66_s15 = ssub.s32 %s4299_s27, %s5654_s3 }
 0x126   : > { %p460_p3 = scmp.eq.s32.totalorder %s5582_s16, 3  ;;  %p67_p5 = scmp.eq.s32.totalorder %s66_s15, 0 }
 0x127   : > { %p466_p0 = scmp.eq.s32.totalorder %s2819_s4, 3  ;;  %s510_s7 = sand.u32 1, %s4283_s23  }
 0x128   : > { %p4820_p6 = por %p460_p3, %p76_p7  ;;  %s3484_s12 = smul.u32 48, %s510_s7 }
 0x129   : > { %s4826_s5 = scalar_select %p67_p5, %s4283_s23, %s69_s14  }
 0x12a   : > { %s5590_s29 = scalar_select %p4820_p6, 1, 0 }
 0x12b   : > { %5591 = sst [smem:[#allocation47_spill]] %s4826_s5  ;;  %p4831_p9 = por %p466_p0, %p82_p13 }
 0x12c   : > { %p5593_p1 = scmp.lt.s32.totalorder %s4303_s28, 4  ;;  %s3485_s4 = smul.u32 768, %s4299_s27 }
 0x12d   : > { %s5592_s1 = scalar_select %p4831_p9, 1, 0 }
 0x12e   : > { %p4839_p8 = pnand %p5593_p1, %p4793_p10  ;;  %s5595_s15 = sld [smem:[#allocation48_spill]] }
 0x12f   : > { %s514_s11 = scalar_lea.vmem [#allocation3], %s3484_s12  ;;  %s5596_s13 = sld [smem:[#allocation52_spill]] }
 0x130   : > { %s522_s0 = sshll.u32 %s514_s11, 4  ;;  %s511_s6 = scalar_lea.sflag [#allocation4], %s510_s7  ;;  %s4849_s0 = int_to_ptr.vmem [resolvable:$true] %s522_s0 }
 0x131   : > { %p3945_p13 = pneg %p4839_p8 }
 0x134   : > { %s4847_s14 = scalar_lea.hbm %s5595_s15, %s3485_s4  ;;  %s3948_s11 = scalar_lea.hbm %s5595_s15, 1536 }
 0x135   : > { %s4855_s3 = scalar_lea.hbm %s5596_s13, %s4534_s8  ;;  %s3943_s27 = scalar_lea.hbm %s4847_s14, 768 }
 0x136   : > { %p3944_p7 = scmp.ne.s32.totalorder %s4847_s14, %s3943_s27  ;;  %p3949_p4 = scmp.lt.u32.totalorder %s4847_s14, %s5595_s15 }
 0x137   : > { %p3950_p11 = scmp.lt.u32.totalorder %s3948_s11, %s3943_s27  ;;  %p3952_p5 = scmp.lt.u32.totalorder %s3943_s27, %s4847_s14 }
 0x138   : > { %p3946_p10 = pnand %p3945_p13, %p3944_p7 }
 0x139   : > { %p3951_p3 = por %p3950_p11, %p3949_p4 }
 0x13a   : > { %p3947_p12 = pneg %p3946_p10 }
 0x13b   : > { %p3953_p0 = por %p3952_p5, %p3951_p3 }
 0x13d   : > { %p3954_p1 = pnand %p3953_p0, %p3947_p12 }
 0x13f   : > { %3957 = shalt.err (!%p3954_p1)
}
 0x140   : > { %s3958_s2 = scalar_lea.vmem %s4849_s0, 768  ;;  %s4319_s7 = smov [#allocation3]  }
 0x141   : > { %p3959_p7 = scmp.ne.s32.totalorder %s4849_s0, %s3958_s2  ;;  %s3963_s9 = sshll.u32 %s4319_s7, 4  ;;  %s3964_s9 = int_to_ptr.vmem [resolvable:$false] %s3963_s9 }
 0x142   : > { %s3965_s4 = scalar_lea.vmem %s3964_s9, 1536  ;;  %p3966_p6 = scmp.lt.s32.totalorder %s4849_s0, %s3964_s9 }
 0x143   : > { %p3961_p10 = pnand %p3959_p7, %p3945_p13  ;;  %p3967_p4 = scmp.lt.s32.totalorder %s3965_s4, %s3958_s2 }
 0x145   : > { %p3962_p9 = pneg %p3961_p10  ;;  %p3968_p11 = por %p3967_p4, %p3966_p6 }
 0x147   : > { %p3969_p3 = pnand %p3968_p11, %p3962_p9 }
 0x149   : > { %3972 = shalt.err (!%p3969_p3)
}
 0x14a   : > { %3539 = dma.hbm_to_vmem [thread:$0]  (!%p4839_p8), %s4847_s14, 768, %s4849_s0, %s511_s6  }
 0x14b   : > { %s549_s27 = scalar_lea.vmem [#allocation11], %s4497_s25  ;;  %s3488_s11 = smul.u32 3, %s4497_s25 }
 0x14c   : > { %s556_s10 = sshll.u32 %s549_s27, 4  ;;  %s3489_s12 = smul.u32 48, %s4295_s26  ;;  %s557_s10 = int_to_ptr.vmem [resolvable:$true] %s556_s10 }
 0x14d   : > { %s3973_s20 = scalar_lea.hbm %s4855_s3, 16  ;;  %p5597_p9 = scmp.ne.s32.totalorder %s5569_s19, 0 }
 0x14e   : > { %p3974_p6 = scmp.ne.s32.totalorder %s4855_s3, %s3973_s20  ;;  %s3978_s7 = scalar_lea.hbm %s5596_s13, 32 }
 0x14f   : > { %p3979_p5 = scmp.lt.u32.totalorder %s4855_s3, %s5596_s13  ;;  %p3980_p0 = scmp.lt.u32.totalorder %s3978_s7, %s3973_s20 }
 0x150   : > { %p3976_p13 = pnand %p3974_p6, %p5597_p9  ;;  %p3982_p1 = scmp.lt.u32.totalorder %s3973_s20, %s4855_s3 }
 0x151   : > { %p3981_p8 = por %p3980_p0, %p3979_p5 }
 0x152   : > { %p3977_p12 = pneg %p3976_p13 }
 0x153   : > { %p3983_p7 = por %p3982_p1, %p3981_p8 }
 0x155   : > { %p3984_p10 = pnand %p3983_p7, %p3977_p12 }
 0x157   : > { %3987 = shalt.err (!%p3984_p10)
}
 0x158   : > { %s3988_s0 = scalar_lea.vmem %s557_s10, 16  ;;  %s4320_s6 = smov [#allocation11]  }
 0x159   : > { %p3989_p4 = scmp.ne.s32.totalorder %s557_s10, %s3988_s0  ;;  %s3993_s14 = sshll.u32 %s4320_s6, 4  ;;  %s3994_s14 = int_to_ptr.vmem [resolvable:$false] %s3993_s14 }
 0x15a   : > { %s3995_s27 = scalar_lea.vmem %s3994_s14, 32  ;;  %p3996_p6 = scmp.lt.s32.totalorder %s557_s10, %s3994_s14 }
 0x15b   : > { %p3991_p11 = pnand %p3989_p4, %p5597_p9  ;;  %p3997_p13 = scmp.lt.s32.totalorder %s3995_s27, %s3988_s0 }
 0x15d   : > { %p3992_p3 = pneg %p3991_p11  ;;  %p3998_p2 = por %p3997_p13, %p3996_p6 }
 0x15f   : > { %p3999_p0 = pnand %p3998_p2, %p3992_p3 }
 0x161   : > { %4002 = shalt.err (!%p3999_p0)
}
 0x162   : > { %p5598_p5 = scmp.ne.s32.totalorder %s5565_s24, 0  ;;  %s5599_s20 = scalar_lea.sflag [#allocation10], %s4531_s30 }
 0x163   : > { %s5600_s7 = sld [smem:[#allocation54_spill]]  ;;  %s588_s4 = scalar_lea.vmem [#allocation14], %s3488_s11 }
 0x164   : > { %3545 = dma.hbm_to_vmem [thread:$0]  (!%p5598_p5), %s4855_s3, 16, %s557_s10, %s5599_s20  }
 0x165   : > { %s596_s0 = sshll.u32 %s588_s4, 4  ;;  %s5601_s27 = sld [smem:[#allocation56_spill]]  ;;  %s597_s0 = int_to_ptr.vmem [resolvable:$true] %s596_s0 }
 0x169   : > { %s4907_s9 = scalar_lea.hbm %s5600_s7, %s3489_s12  ;;  %s4008_s12 = scalar_lea.hbm %s5600_s7, 96 }
 0x16a   : > { %s4003_s5 = scalar_lea.hbm %s4907_s9, 48  ;;  %p4009_p1 = scmp.lt.u32.totalorder %s4907_s9, %s5600_s7 }
 0x16b   : > { %s5602_s13 = smov %s5601_s27  ;;  %s4915_s15 = scalar_lea.hbm %s5601_s27, %s4534_s8 }
 0x16c   : > { %p4004_p2 = scmp.ne.s32.totalorder %s4907_s9, %s4003_s5  ;;  %p4010_p7 = scmp.lt.u32.totalorder %s4008_s12, %s4003_s5 }
 0x16d   : > { %p4012_p4 = scmp.lt.u32.totalorder %s4003_s5, %s4907_s9 }
 0x16e   : > { %p4006_p12 = pnand %p4004_p2, %p5597_p9  ;;  %p4011_p10 = por %p4010_p7, %p4009_p1 }
 0x170   : > { %p4007_p8 = pneg %p4006_p12  ;;  %p4013_p11 = por %p4012_p4, %p4011_p10 }
 0x172   : > { %p4014_p3 = pnand %p4013_p11, %p4007_p8 }
 0x174   : > { %4017 = shalt.err (!%p4014_p3)
}
 0x175   : > { %s4018_s11 = scalar_lea.vmem %s597_s0, 48  ;;  %s4321_s2 = smov [#allocation14]  }
 0x176   : > { %p4019_p6 = scmp.ne.s32.totalorder %s597_s0, %s4018_s11  ;;  %s4023_s4 = sshll.u32 %s4321_s2, 4  ;;  %s4024_s4 = int_to_ptr.vmem [resolvable:$false] %s4023_s4 }
 0x177   : > { %s4025_s6 = scalar_lea.vmem %s4024_s4, 96  ;;  %p4026_p2 = scmp.lt.s32.totalorder %s597_s0, %s4024_s4 }
 0x178   : > { %p4021_p13 = pnand %p4019_p6, %p5597_p9  ;;  %p4027_p12 = scmp.lt.s32.totalorder %s4025_s6, %s4018_s11 }
 0x17a   : > { %p4022_p0 = pneg %p4021_p13  ;;  %p4028_p5 = por %p4027_p12, %p4026_p2 }
 0x17c   : > { %p4029_p1 = pnand %p4028_p5, %p4022_p0 }
 0x17e   : > { %4032 = shalt.err (!%p4029_p1)
}
 0x17f   : > { %p5603_p7 = scmp.ne.s32.totalorder %s5565_s24, 0  ;;  %s5604_s5 = scalar_lea.sflag [#allocation13], %s4531_s30 }
 0x180   : > { %s627_s14 = scalar_lea.vmem [#allocation17], %s4497_s25  ;;  %s5605_s12 = sld [smem:[#allocation58_spill]] }
 0x181   : > { %3551 = dma.hbm_to_vmem [thread:$0]  (!%p5603_p7), %s4907_s9, 48, %s597_s0, %s5604_s5  }
 0x182   : > { %s634_s27 = sshll.u32 %s627_s14, 4  ;;  %s4033_s16 = scalar_lea.hbm %s4915_s15, 16  ;;  %s635_s27 = int_to_ptr.vmem [resolvable:$true] %s634_s27 }
 0x183   : > { %p4034_p5 = scmp.ne.s32.totalorder %s4915_s15, %s4033_s16  ;;  %s4038_s4 = scalar_lea.hbm %s5602_s13, 32 }
 0x184   : > { %p4039_p4 = scmp.lt.u32.totalorder %s4915_s15, %s5602_s13  ;;  %p4040_p11 = scmp.lt.u32.totalorder %s4038_s4, %s4033_s16 }
 0x185   : > { %p4036_p8 = pnand %p4034_p5, %p5597_p9  ;;  %p4042_p6 = scmp.lt.u32.totalorder %s4033_s16, %s4915_s15 }
 0x186   : > { %s4941_s20 = scalar_lea.hbm %s5605_s12, %s4534_s8  ;;  %p4041_p3 = por %p4040_p11, %p4039_p4 }
 0x187   : > { %p4037_p10 = pneg %p4036_p8 }
 0x188   : > { %p4043_p13 = por %p4042_p6, %p4041_p3 }
 0x18a   : > { %p4044_p0 = pnand %p4043_p13, %p4037_p10 }
 0x18c   : > { %4047 = shalt.err (!%p4044_p0)
}
 0x18d   : > { %s4048_s9 = scalar_lea.vmem %s635_s27, 16  ;;  %s4322_s0 = smov [#allocation17]  }
 0x18e   : > { %p4049_p2 = scmp.ne.s32.totalorder %s635_s27, %s4048_s9  ;;  %s4053_s5 = sshll.u32 %s4322_s0, 4  ;;  %s4054_s5 = int_to_ptr.vmem [resolvable:$false] %s4053_s5 }
 0x18f   : > { %s4055_s14 = scalar_lea.vmem %s4054_s5, 32  ;;  %p4056_p5 = scmp.lt.s32.totalorder %s635_s27, %s4054_s5 }
 0x190   : > { %p4051_p12 = pnand %p4049_p2, %p5597_p9  ;;  %p4057_p8 = scmp.lt.s32.totalorder %s4055_s14, %s4048_s9 }
 0x192   : > { %p4052_p1 = pneg %p4051_p12  ;;  %p4058_p7 = por %p4057_p8, %p4056_p5 }
 0x194   : > { %p4059_p4 = pnand %p4058_p7, %p4052_p1 }
 0x196   : > { %4062 = shalt.err (!%p4059_p4)
}
 0x197   : > { %p5606_p11 = scmp.ne.s32.totalorder %s5565_s24, 0  ;;  %s5607_s7 = scalar_lea.sflag [#allocation16], %s4531_s30 }
 0x198   : > { %s661_s3 = scalar_lea.vmem [#allocation20], %s4497_s25  ;;  %s2838_s16 = sshll.u32 %s4497_s25, 2 }
 0x199   : > { %3557 = dma.hbm_to_vmem [thread:$0]  (!%p5606_p11), %s4915_s15, 16, %s635_s27, %s5607_s7  }
 0x19a   : > { %s668_s10 = sshll.u32 %s661_s3, 4  ;;  %s4063_s11 = scalar_lea.hbm %s4941_s20, 16  ;;  %s669_s10 = int_to_ptr.vmem [resolvable:$true] %s668_s10 }
 0x19b   : > { %p4064_p7 = scmp.ne.s32.totalorder %s4941_s20, %s4063_s11  ;;  %s4068_s6 = scalar_lea.hbm %s5605_s12, 32 }
 0x19c   : > { %p4069_p6 = scmp.lt.u32.totalorder %s4941_s20, %s5605_s12  ;;  %p4070_p13 = scmp.lt.u32.totalorder %s4068_s6, %s4063_s11 }
 0x19d   : > { %p4066_p10 = pnand %p4064_p7, %p5597_p9  ;;  %p4072_p2 = scmp.lt.u32.totalorder %s4063_s11, %s4941_s20 }
 0x19e   : > { %p4071_p0 = por %p4070_p13, %p4069_p6 }
 0x19f   : > { %p4067_p3 = pneg %p4066_p10 }
 0x1a0   : > { %p4073_p12 = por %p4072_p2, %p4071_p0 }
 0x1a2   : > { %p4074_p1 = pnand %p4073_p12, %p4067_p3 }
 0x1a4   : > { %4077 = shalt.err (!%p4074_p1)
}
 0x1a5   : > { %s4078_s15 = scalar_lea.vmem %s669_s10, 16  ;;  %s4323_s27 = smov [#allocation20]  }
 0x1a6   : > { %p4079_p5 = scmp.ne.s32.totalorder %s669_s10, %s4078_s15  ;;  %s4083_s5 = sshll.u32 %s4323_s27, 4  ;;  %s4084_s5 = int_to_ptr.vmem [resolvable:$false] %s4083_s5 }
 0x1a7   : > { %s4085_s14 = scalar_lea.vmem %s4084_s5, 32  ;;  %p4086_p7 = scmp.lt.s32.totalorder %s669_s10, %s4084_s5 }
 0x1a8   : > { %p4081_p8 = pnand %p4079_p5, %p5597_p9  ;;  %p4087_p10 = scmp.lt.s32.totalorder %s4085_s14, %s4078_s15 }
 0x1aa   : > { %p4082_p4 = pneg %p4081_p8  ;;  %p4088_p11 = por %p4087_p10, %p4086_p7 }
 0x1ac   : > { %p4089_p6 = pnand %p4088_p11, %p4082_p4 }
 0x1ae   : > { %4092 = shalt.err (!%p4089_p6)
}
 0x1af   : > { %p5608_p13 = scmp.ne.s32.totalorder %s5565_s24, 0  ;;  %s5609_s7 = scalar_lea.sflag [#allocation19], %s4531_s30 }
 0x1b0   : > { %s2871_s3 = sshll.u32 %s4295_s26, 6  ;;  %s700_s11 = scalar_lea.vmem [#allocation23], %s2838_s16 }
 0x1b1   : > { %3563 = dma.hbm_to_vmem [thread:$0]  (!%p5608_p13), %s4941_s20, 16, %s669_s10, %s5609_s7  }
 0x1b2   : > { %s708_s2 = sshll.u32 %s700_s11, 4  ;;  %s5610_s9 = sld [smem:[#allocation60_spill]]  ;;  %s709_s2 = int_to_ptr.vmem [resolvable:$true] %s708_s2 }
 0x1b8   : > { %s706_s0 = scalar_lea.hbm %s5610_s9, %s2871_s3  ;;  %s4098_s14 = scalar_lea.hbm %s5610_s9, 128 }
 0x1b9   : > { %s4093_s15 = scalar_lea.hbm %s706_s0, 64  ;;  %p4099_p2 = scmp.lt.u32.totalorder %s706_s0, %s5610_s9 }
 0x1ba   : > { %p4094_p11 = scmp.ne.s32.totalorder %s706_s0, %s4093_s15  ;;  %p4100_p12 = scmp.lt.u32.totalorder %s4098_s14, %s4093_s15 }
 0x1bb   : > { %p4102_p5 = scmp.lt.u32.totalorder %s4093_s15, %s706_s0 }
 0x1bc   : > { %p4096_p3 = pnand %p4094_p11, %p5597_p9  ;;  %p4101_p1 = por %p4100_p12, %p4099_p2 }
 0x1be   : > { %p4097_p0 = pneg %p4096_p3  ;;  %p4103_p8 = por %p4102_p5, %p4101_p1 }
 0x1c0   : > { %p4104_p4 = pnand %p4103_p8, %p4097_p0 }
 0x1c2   : > { %4107 = shalt.err (!%p4104_p4)
}
 0x1c3   : > { %s4108_s10 = scalar_lea.vmem %s709_s2, 64  ;;  %s4324_s16 = smov [#allocation23]  }
 0x1c4   : > { %p4109_p7 = scmp.ne.s32.totalorder %s709_s2, %s4108_s10  ;;  %s4113_s7 = sshll.u32 %s4324_s16, 4  ;;  %s4114_s7 = int_to_ptr.vmem [resolvable:$false] %s4113_s7 }
 0x1c5   : > { %s4115_s3 = scalar_lea.vmem %s4114_s7, 128  ;;  %p4116_p11 = scmp.lt.s32.totalorder %s709_s2, %s4114_s7 }
 0x1c6   : > { %p4111_p10 = pnand %p4109_p7, %p5597_p9  ;;  %p4117_p3 = scmp.lt.s32.totalorder %s4115_s3, %s4108_s10 }
 0x1c8   : > { %p4112_p6 = pneg %p4111_p10  ;;  %p4118_p13 = por %p4117_p3, %p4116_p11 }
 0x1ca   : > { %p4119_p2 = pnand %p4118_p13, %p4112_p6 }
 0x1cc   : > { %4122 = shalt.err (!%p4119_p2)
}
 0x1cd   : > { %p5611_p12 = scmp.ne.s32.totalorder %s5565_s24, 0  ;;  %s5612_s12 = scalar_lea.sflag [#allocation22], %s4531_s30 }
 0x1ce   : > { %s5613_s6 = sld [smem:[#allocation62_spill]]  ;;  %s739_s27 = scalar_lea.vmem [#allocation26], %s4497_s25 }
 0x1cf   : > { %3569 = dma.hbm_to_vmem [thread:$0]  (!%p5611_p12), %s706_s0, 64, %s709_s2, %s5612_s12  }
 0x1d0   : > { %s746_s5 = sshll.u32 %s739_s27, 4  ;;  %s747_s5 = int_to_ptr.vmem [resolvable:$true] %s746_s5 }
 0x1d4   : > { %s5007_s15 = scalar_lea.hbm %s5613_s6, %s4534_s8  ;;  %s4128_s2 = scalar_lea.hbm %s5613_s6, 32 }
 0x1d5   : > { %s4123_s14 = scalar_lea.hbm %s5007_s15, 16  ;;  %p4129_p5 = scmp.lt.u32.totalorder %s5007_s15, %s5613_s6 }
 0x1d6   : > { %p4124_p13 = scmp.ne.s32.totalorder %s5007_s15, %s4123_s14  ;;  %p4130_p8 = scmp.lt.u32.totalorder %s4128_s2, %s4123_s14 }
 0x1d7   : > { %p4132_p7 = scmp.lt.u32.totalorder %s4123_s14, %s5007_s15 }
 0x1d8   : > { %p4126_p0 = pnand %p4124_p13, %p5597_p9  ;;  %p4131_p4 = por %p4130_p8, %p4129_p5 }
 0x1da   : > { %p4127_p1 = pneg %p4126_p0  ;;  %p4133_p10 = por %p4132_p7, %p4131_p4 }
 0x1dc   : > { %p4134_p6 = pnand %p4133_p10, %p4127_p1 }
 0x1de   : > { %4137 = shalt.err (!%p4134_p6)
}
 0x1df   : > { %s4138_s25 = scalar_lea.vmem %s747_s5, 16  ;;  %s4325_s8 = smov [#allocation26]  }
 0x1e0   : > { %p4139_p11 = scmp.ne.s32.totalorder %s747_s5, %s4138_s25  ;;  %s4143_s7 = sshll.u32 %s4325_s8, 4  ;;  %s4144_s7 = int_to_ptr.vmem [resolvable:$false] %s4143_s7 }
 0x1e1   : > { %s4145_s3 = scalar_lea.vmem %s4144_s7, 32  ;;  %p4146_p13 = scmp.lt.s32.totalorder %s747_s5, %s4144_s7 }
 0x1e2   : > { %p4141_p3 = pnand %p4139_p11, %p5597_p9  ;;  %p4147_p0 = scmp.lt.s32.totalorder %s4145_s3, %s4138_s25 }
 0x1e4   : > { %p4142_p2 = pneg %p4141_p3  ;;  %p4148_p12 = por %p4147_p0, %p4146_p13 }
 0x1e6   : > { %p4149_p5 = pnand %p4148_p12, %p4142_p2 }
 0x1e8   : > { %4152 = shalt.err (!%p4149_p5)
}
 0x1e9   : > { %p5614_p8 = scmp.ne.s32.totalorder %s5565_s24, 0  ;;  %s5615_s12 = scalar_lea.sflag [#allocation25], %s4531_s30 }
 0x1ea   : > { %s5616_s11 = sld [smem:[#allocation44_spill]] }
 0x1eb   : > { %3575 = dma.hbm_to_vmem [thread:$0]  (!%p5614_p8), %s5007_s15, 16, %s747_s5, %s5615_s12  }
 0x1f0   : > { %p5617_p1 = scmp.ne.s32.totalorder %s5616_s11, 0 }
 0x1f1   : > { %s5032_s19 = sand.u32 (!%p5617_p1), 1, %s4279_s22   ;;  %p5618_p9 = scmp.ne.s32.totalorder (!%p5617_p1), %s5588_s17, 0 }
 0x1f2   : > { %755 = sbr.rel (%p5617_p1) target bundleno = 3330 (0xd02), region = 80  ;;  %s758_s27 = scalar_lea.sflag (!%p5617_p1), [#allocation4], %s5032_s19 }
 0x1f3   : > { %s3490_s4 = smul.u32 (!%p5617_p1), 48, %s5032_s19 }
 0x1f5   : > { %s5036_s14 = scalar_lea.vmem (!%p5617_p1), [#allocation3], %s3490_s4 }
 0x1f9   : > { %4226 = dma.done.wait (%p5618_p9), %s758_s27, 768  }
 0x1fa   : > { %4228 = vsyncadd (%p5618_p9), %s758_s27, 4294966528  ;;  %s5619_s24 = sld [smem:[#allocation42_spill]] }
 0x200   : > { %p5620_p12 = scmp.eq.s32.totalorder %s5619_s24, 0 }
 0x202   : > { %4230 = dma.done.wait (%p5620_p12), [#allocation7], 12416   ;;  %p5621_p4 = pmov %p5620_p12 }
 0x203   : > { %s5622_s30 = sld [smem:[#allocation37_spill]]  ;;  %s5623_s15 = sld [smem:[#allocation43_spill]] }
 0x204   : > { %4232 = vsyncadd (%p5621_p4), [#allocation7], 4294954880  ;;  %s5047_s5 = sand.u32 1, %s5619_s24  }
 0x205   : > { %s775_s10 = scalar_lea.sflag [#allocation10], %s5047_s5 }
 0x209   : > { %s5050_s20 = sand.u32 1, %s5622_s30   ;;  %p5624_p7 = scmp.ne.s32.totalorder %s5623_s15, 0 }
 0x20a   : > { %s777_s2 = scalar_lea.vmem [#allocation9], %s5050_s20 }
 0x20b   : > { %4234 = dma.done.wait (%p5624_p7), %s775_s10, 32  }
 0x20c   : > { %4236 = vsyncadd (%p5624_p7), %s775_s10, 4294967264  ;;  %s3491_s17 = smul.u32 384, %s5050_s20  ;;  %s785_s0 = scalar_lea.vmem [#allocation11], %s5050_s20 }
 0x20d   : > { %s791_s16 = scalar_lea.sflag [#allocation13], %s5047_s5 }
 0x20e   : > { %s5061_s25 = scalar_lea.vmem [#allocation12], %s3491_s17 }
 0x20f   : > { %4238 = dma.done.wait (%p5624_p7), %s791_s16, 6192  }
 0x210   : > { %4240 = vsyncadd (%p5624_p7), %s791_s16, 4294961104  ;;  %s3492_s8 = smul.u32 3, %s5050_s20  ;;  %s2848_s7 = sshll.u32 %s5050_s20, 7 }
 0x211   : > { %s809_s12 = scalar_lea.sflag [#allocation16], %s5047_s5  ;;  %s5072_s11 = scalar_lea.vmem [#allocation15], %s2848_s7 }
 0x212   : > { %s5069_s3 = scalar_lea.vmem [#allocation14], %s3492_s8 }
 0x213   : > { %4242 = dma.done.wait (%p5624_p7), %s809_s12, 2064  }
 0x214   : > { %4244 = vsyncadd (%p5624_p7), %s809_s12, 4294965232  ;;  %s826_s27 = scalar_lea.sflag [#allocation19], %s5047_s5 }
 0x215   : > { %4246 = dma.done.wait (%p5624_p7), %s826_s27, 32  }
 0x216   : > { %4248 = vsyncadd (%p5624_p7), %s826_s27, 4294967264  ;;  %s2849_s30 = sshll.u32 %s5050_s20, 9  ;;  %s842_s17 = scalar_lea.sflag [#allocation22], %s5047_s5 }
 0x217   : > { %s5088_s16 = scalar_lea.vmem [#allocation21], %s2849_s30 }
 0x218   : > { %4250 = dma.done.wait (%p5624_p7), %s842_s17, 8256  }
 0x219   : > { %4252 = vsyncadd (%p5624_p7), %s842_s17, 4294959040  ;;  %s2850_s8 = sshll.u32 %s5050_s20, 2  ;;  %s860_s12 = scalar_lea.sflag [#allocation25], %s5047_s5 }
 0x21a   : > { %s5095_s7 = scalar_lea.vmem [#allocation23], %s2850_s8  ;;  %s5098_s27 = scalar_lea.vmem [#allocation24], %s2849_s30 }
 0x21b   : > { %4254 = dma.done.wait (%p5624_p7), %s860_s12, 8208  }
 0x21c   : > { %4256 = vsyncadd (%p5624_p7), %s860_s12, 4294959088  ;;  %s871_s10 = scalar_lea.vmem [#allocation26], %s5050_s20  ;;  %s970_s24 = scalar_lea.vmem [#allocation27], %s5032_s19 }
 0x21d   : > { %s5625_s4 = sld [smem:[#allocation39_spill]] }
 0x223   : > { %p2852_p10 = scmp.ne.s32.totalorder %s5625_s4, 0 }
 0x224   : > { %v997_v0 = vld [vmem:[#allocation6 + $0x80] sm:$0xff] (!%p2852_p10)  ;;  %v998_v1 = vld [vmem:[#allocation6 + $0x88] sm:$0xff] (!%p2852_p10)  ;;  %v999_v11 = vld [vmem:[#allocation6 + $0x90] sm:$0xff] (!%p2852_p10) }
 0x225   : > { %974 = sbr.rel (%p2852_p10) target bundleno = 836 (0x344), region = 144  ;;  %v1029_v2 = vld [vmem:[#allocation6 + $0x180] sm:$0xff] (!%p2852_p10)  ;;  %v3180_v3 = vpack.c.bf16 (!%p2852_p10), %v998_v1, %v997_v0  ;;  %v1030_v4 = vld [vmem:[#allocation6 + $0x188] sm:$0xff] (!%p2852_p10)  ;;  %v1000_v13 = vld [vmem:[#allocation6 + $0x98] sm:$0xff] (!%p2852_p10) }
 0x226   : > { %v981_v5 = vld [vmem:[#allocation6] sm:$0xff] (!%p2852_p10)  ;;  %v982_v6 = vld [vmem:[#allocation6 + $0x8] sm:$0xff] (!%p2852_p10)  ;;  %v3212_v7 = vpack.c.bf16 (!%p2852_p10), %v1030_v4, %v1029_v2  ;;  %v1031_v14 = vld [vmem:[#allocation6 + $0x190] sm:$0xff] (!%p2852_p10)  ;;  %v3184_v16 = vpack.c.bf16 (!%p2852_p10), %v1000_v13, %v999_v11 }
 0x227   : > { %v3182_v8 = vpack.c.bf16 (!%p2852_p10), %v982_v6, %v981_v5  ;;  %v1013_v9 = vld [vmem:[#allocation6 + $0x100] sm:$0xff] (!%p2852_p10)  ;;  %v1014_v10 = vld [vmem:[#allocation6 + $0x108] sm:$0xff] (!%p2852_p10)  ;;  %3181 = vmatprep.subr.bf16.mxu0 (!%p2852_p10), %v3180_v3  ;;  %v1032_v15 = vld [vmem:[#allocation6 + $0x198] sm:$0xff] (!%p2852_p10) }
 0x228   : > { %v3214_v12 = vpack.c.bf16 (!%p2852_p10), %v1014_v10, %v1013_v9  ;;  %3213 = vmatprep.subr.bf16.mxu1 (!%p2852_p10), %v3212_v7  ;;  %v3216_v17 = vpack.c.bf16 (!%p2852_p10), %v1032_v15, %v1031_v14  ;;  %v983_v18 = vld [vmem:[#allocation6 + $0x10] sm:$0xff] (!%p2852_p10)  ;;  %v984_v19 = vld [vmem:[#allocation6 + $0x18] sm:$0xff] (!%p2852_p10)  ;;  %v1001_v23 = vld [vmem:[#allocation6 + $0xa0] sm:$0xff] (!%p2852_p10) }
 0x229   : > { %3183 = vmatpush3.bf16.msra.mxu0 (!%p2852_p10), %v3182_v8  ;;  %v1015_v20 = vld [vmem:[#allocation6 + $0x110] sm:$0xff] (!%p2852_p10)  ;;  %v3186_v21 = vpack.c.bf16 (!%p2852_p10), %v984_v19, %v983_v18  ;;  %v1016_v22 = vld [vmem:[#allocation6 + $0x118] sm:$0xff] (!%p2852_p10)  ;;  %v1002_v24 = vld [vmem:[#allocation6 + $0xa8] sm:$0xff] (!%p2852_p10) }
 0x22a   : > { %3215 = vmatpush3.bf16.msra.mxu1 (!%p2852_p10), %v3214_v12  ;;  %3185 = vmatprep.subr.bf16.mxu0 (!%p2852_p10), %v3184_v16  ;;  %v3218_v25 = vpack.c.bf16 (!%p2852_p10), %v1016_v22, %v1015_v20  ;;  %v3188_v26 = vpack.c.bf16 (!%p2852_p10), %v1002_v24, %v1001_v23  ;;  %v1033_v27 = vld [vmem:[#allocation6 + $0x1a0] sm:$0xff] (!%p2852_p10)  ;;  %v1034_v28 = vld [vmem:[#allocation6 + $0x1a8] sm:$0xff] (!%p2852_p10)  ;;  %v1003_v35 = vld [vmem:[#allocation6 + $0xb0] sm:$0xff] (!%p2852_p10) }
 0x22b   : > { %3217 = vmatprep.subr.bf16.mxu1 (!%p2852_p10), %v3216_v17  ;;  %v985_v29 = vld [vmem:[#allocation6 + $0x20] sm:$0xff] (!%p2852_p10)  ;;  %v3220_v30 = vpack.c.bf16 (!%p2852_p10), %v1034_v28, %v1033_v27  ;;  %v986_v31 = vld [vmem:[#allocation6 + $0x28] sm:$0xff] (!%p2852_p10)  ;;  %v1004_v36 = vld [vmem:[#allocation6 + $0xb8] sm:$0xff] (!%p2852_p10) }
 0x22c   : > { %v1017_v32 = vld [vmem:[#allocation6 + $0x120] sm:$0xff]  ;;  %v1018_v33 = vld [vmem:[#allocation6 + $0x128] sm:$0xff]  ;;  %v3190_v34 = vpack.c.bf16 %v986_v31, %v985_v29  ;;  %v1035_v37 = vld [vmem:[#allocation6 + $0x1b0] sm:$0xff]  ;;  %v3192_v39 = vpack.c.bf16 %v1004_v36, %v1003_v35 }
 0x22d   : > { %3187 = vmatpush3.bf16.msra.mxu0 %v3186_v21  ;;  %v3222_v38 = vpack.c.bf16 %v1018_v33, %v1017_v32  ;;  %v1036_v40 = vld [vmem:[#allocation6 + $0x1b8] sm:$0xff]  ;;  %v987_v41 = vld [vmem:[#allocation6 + $0x30] sm:$0xff]  ;;  %v1005_v46 = vld [vmem:[#allocation6 + $0xc0] sm:$0xff] }
 0x22e   : > { %3219 = vmatpush3.bf16.msra.mxu1 %v3218_v25  ;;  %3189 = vmatprep.subr.bf16.mxu0 %v3188_v26  ;;  %v988_v42 = vld [vmem:[#allocation6 + $0x38] sm:$0xff]  ;;  %v3224_v43 = vpack.c.bf16 %v1036_v40, %v1035_v37  ;;  %v1019_v44 = vld [vmem:[#allocation6 + $0x130] sm:$0xff]  ;;  %v1006_v47 = vld [vmem:[#allocation6 + $0xc8] sm:$0xff] }
 0x22f   : > { %3221 = vmatprep.subr.bf16.mxu1 %v3220_v30  ;;  %v1020_v45 = vld [vmem:[#allocation6 + $0x138] sm:$0xff]  ;;  %v1037_v48 = vld [vmem:[#allocation6 + $0x1c0] sm:$0xff]  ;;  %v1038_v49 = vld [vmem:[#allocation6 + $0x1c8] sm:$0xff]  ;;  %v3194_v50 = vpack.c.bf16 %v988_v42, %v987_v41  ;;  %v3196_v52 = vpack.c.bf16 %v1006_v47, %v1005_v46 }
 0x230   : > { %v3226_v51 = vpack.c.bf16 %v1020_v45, %v1019_v44  ;;  %v989_v53 = vld [vmem:[#allocation6 + $0x40] sm:$0xff]  ;;  %v990_v54 = vld [vmem:[#allocation6 + $0x48] sm:$0xff]  ;;  %v3228_v56 = vpack.c.bf16 %v1038_v49, %v1037_v48  ;;  %v1007_v58 = vld [vmem:[#allocation6 + $0xd0] sm:$0xff] }
 0x231   : > { %3191 = vmatpush3.bf16.msra.mxu0 %v3190_v34  ;;  %v1021_v55 = vld [vmem:[#allocation6 + $0x140] sm:$0xff]  ;;  %v1022_v57 = vld [vmem:[#allocation6 + $0x148] sm:$0xff]  ;;  %v1008_v59 = vld [vmem:[#allocation6 + $0xd8] sm:$0xff]  ;;  %v3198_v62 = vpack.c.bf16 %v990_v54, %v989_v53 }
 0x232   : > { %3223 = vmatpush3.bf16.msra.mxu1 %v3222_v38  ;;  %3193 = vmatprep.subr.bf16.mxu0 %v3192_v39  ;;  %v1039_v60 = vld [vmem:[#allocation6 + $0x1d0] sm:$0xff]  ;;  %v1040_v61 = vld [vmem:[#allocation6 + $0x1d8] sm:$0xff]  ;;  %v3230_v63 = vpack.c.bf16 %v1022_v57, %v1021_v55  ;;  %v3200_v0 = vpack.c.bf16 %v1008_v59, %v1007_v58  ;;  %v1009_v6 = vld [vmem:[#allocation6 + $0xe0] sm:$0xff] }
 0x233   : > { %3225 = vmatprep.subr.bf16.mxu1 %v3224_v43  ;;  %v991_v1 = vld [vmem:[#allocation6 + $0x50] sm:$0xff]  ;;  %v992_v2 = vld [vmem:[#allocation6 + $0x58] sm:$0xff]  ;;  %v3232_v4 = vpack.c.bf16 %v1040_v61, %v1039_v60  ;;  %v1010_v7 = vld [vmem:[#allocation6 + $0xe8] sm:$0xff] }
 0x234   : > { %v1023_v3 = vld [vmem:[#allocation6 + $0x150] sm:$0xff]  ;;  %v1024_v5 = vld [vmem:[#allocation6 + $0x158] sm:$0xff]  ;;  %v1041_v8 = vld [vmem:[#allocation6 + $0x1e0] sm:$0xff]  ;;  %v3202_v10 = vpack.c.bf16 %v992_v2, %v991_v1  ;;  %v3204_v14 = vpack.c.bf16 %v1010_v7, %v1009_v6 }
 0x235   : > { %3195 = vmatpush3.bf16.msra.mxu0 %v3194_v50  ;;  %v1042_v9 = vld [vmem:[#allocation6 + $0x1e8] sm:$0xff]  ;;  %v993_v11 = vld [vmem:[#allocation6 + $0x60] sm:$0xff]  ;;  %v3234_v13 = vpack.c.bf16 %v1024_v5, %v1023_v3  ;;  %v1011_v20 = vld [vmem:[#allocation6 + $0xf0] sm:$0xff] }
 0x236   : > { %3227 = vmatpush3.bf16.msra.mxu1 %v3226_v51  ;;  %3197 = vmatprep.subr.bf16.mxu0 %v3196_v52  ;;  %v994_v12 = vld [vmem:[#allocation6 + $0x68] sm:$0xff]  ;;  %v1025_v15 = vld [vmem:[#allocation6 + $0x160] sm:$0xff]  ;;  %v3236_v18 = vpack.c.bf16 %v1042_v9, %v1041_v8  ;;  %v1012_v21 = vld [vmem:[#allocation6 + $0xf8] sm:$0xff] }
 0x237   : > { %3229 = vmatprep.subr.bf16.mxu1 %v3228_v56  ;;  %v976_v16 = vld [vmem:[%s5036_s14 + $0x8] sm:$0xff]  ;;  %v978_v17 = vld [vmem:[%s5036_s14 + $0x18] sm:$0xff]  ;;  %v1043_v22 = vld [vmem:[#allocation6 + $0x1f0] sm:$0xff]  ;;  %v3206_v24 = vpack.c.bf16 %v994_v12, %v993_v11  ;;  %v3208_v26 = vpack.c.bf16 %v1012_v21, %v1011_v20 }
 0x238   : > { %v1026_v19 = vld [vmem:[#allocation6 + $0x168] sm:$0xff]  ;;  %1141 = vmatprep.mubr.f32.mxu0 %v976_v16  ;;  %v1044_v23 = vld [vmem:[#allocation6 + $0x1f8] sm:$0xff]  ;;  %1211 = vmatprep.mubr.f32.mxu1 %v978_v17  ;;  %v995_v27 = vld [vmem:[#allocation6 + $0x70] sm:$0xff] }
 0x239   : > { %3199 = vmatpush3.bf16.msra.mxu0 %v3198_v62  ;;  %v3238_v25 = vpack.c.bf16 %v1026_v19, %v1025_v15  ;;  %v996_v28 = vld [vmem:[#allocation6 + $0x78] sm:$0xff]  ;;  %v1027_v29 = vld [vmem:[#allocation6 + $0x170] sm:$0xff]  ;;  %v3240_v30 = vpack.c.bf16 %v1044_v23, %v1043_v22  ;;  %v1061_v32 = vld [vmem:[#allocation6 + $0x280] sm:$0xff] }
 0x23a   : > { %3231 = vmatpush3.bf16.msra.mxu1 %v3230_v63  ;;  %3201 = vmatprep.subr.bf16.mxu0 %v3200_v0  ;;  %v1028_v31 = vld [vmem:[#allocation6 + $0x178] sm:$0xff]  ;;  %v1062_v33 = vld [vmem:[#allocation6 + $0x288] sm:$0xff]  ;;  %v3210_v34 = vpack.c.bf16 %v996_v28, %v995_v27  ;;  %v1045_v37 = vld [vmem:[#allocation6 + $0x200] sm:$0xff] }
 0x23b   : > { %3233 = vmatprep.subr.bf16.mxu1 %v3232_v4  ;;  %v3242_v35 = vpack.c.bf16 %v1028_v31, %v1027_v29  ;;  %v3244_v36 = vpack.c.bf16 %v1062_v33, %v1061_v32  ;;  %v1046_v38 = vld [vmem:[#allocation6 + $0x208] sm:$0xff]  ;;  %v1063_v39 = vld [vmem:[#allocation6 + $0x290] sm:$0xff]  ;;  %v1064_v40 = vld [vmem:[#allocation6 + $0x298] sm:$0xff] }
 0x23c   : > { %v975_v41 = vld [vmem:[%s5036_s14] sm:$0xff]  ;;  %v3246_v42 = vpack.c.bf16 %v1046_v38, %v1045_v37  ;;  %v977_v43 = vld [vmem:[%s5036_s14 + $0x10] sm:$0xff]  ;;  %v3248_v44 = vpack.c.bf16 %v1064_v40, %v1063_v39  ;;  %v1048_v46 = vld [vmem:[#allocation6 + $0x218] sm:$0xff] }
 0x23d   : > { %3203 = vmatpush3.bf16.msra.mxu0 %v3202_v10  ;;  %v1047_v45 = vld [vmem:[#allocation6 + $0x210] sm:$0xff]  ;;  %v1065_v47 = vld [vmem:[#allocation6 + $0x2a0] sm:$0xff]  ;;  %v1066_v48 = vld [vmem:[#allocation6 + $0x2a8] sm:$0xff] }
 0x23e   : > { %3235 = vmatpush3.bf16.msra.mxu1 %v3234_v13  ;;  %3205 = vmatprep.subr.bf16.mxu0 %v3204_v14  ;;  %v980_v49 = vld [vmem:[%s5036_s14 + $0x28] sm:$0xff]  ;;  %v3250_v50 = vpack.c.bf16 %v1048_v46, %v1047_v45  ;;  %v3252_v51 = vpack.c.bf16 %v1066_v48, %v1065_v47  ;;  %v1049_v52 = vld [vmem:[#allocation6 + $0x220] sm:$0xff]  ;;  %v1067_v54 = vld [vmem:[#allocation6 + $0x2b0] sm:$0xff] }
 0x23f   : > { %3237 = vmatprep.subr.bf16.mxu1 %v3236_v18  ;;  %v1050_v53 = vld [vmem:[#allocation6 + $0x228] sm:$0xff]  ;;  %v1068_v55 = vld [vmem:[#allocation6 + $0x2b8] sm:$0xff]  ;;  %v1051_v58 = vld [vmem:[#allocation6 + $0x230] sm:$0xff] }
 0x240   : > { %v3254_v56 = vpack.c.bf16 %v1050_v53, %v1049_v52  ;;  %v3256_v57 = vpack.c.bf16 %v1068_v55, %v1067_v54  ;;  %v1052_v59 = vld [vmem:[#allocation6 + $0x238] sm:$0xff]  ;;  %v1069_v60 = vld [vmem:[#allocation6 + $0x2c0] sm:$0xff]  ;;  %v1070_v61 = vld [vmem:[#allocation6 + $0x2c8] sm:$0xff] }
 0x241   : > { %3207 = vmatpush3.bf16.msra.mxu0 %v3206_v24  ;;  %v3258_v62 = vpack.c.bf16 %v1052_v59, %v1051_v58  ;;  %v3260_v63 = vpack.c.bf16 %v1070_v61, %v1069_v60  ;;  %v1053_v0 = vld [vmem:[#allocation6 + $0x240] sm:$0xff]  ;;  %v1054_v1 = vld [vmem:[#allocation6 + $0x248] sm:$0xff]  ;;  %v1071_v2 = vld [vmem:[#allocation6 + $0x2d0] sm:$0xff] }
 0x242   : > { %3239 = vmatpush3.bf16.msra.mxu1 %v3238_v25  ;;  %3209 = vmatprep.subr.bf16.mxu0 %v3208_v26  ;;  %v1072_v3 = vld [vmem:[#allocation6 + $0x2d8] sm:$0xff]  ;;  %v3262_v4 = vpack.c.bf16 %v1054_v1, %v1053_v0  ;;  %v1055_v6 = vld [vmem:[#allocation6 + $0x250] sm:$0xff]  ;;  %v1073_v8 = vld [vmem:[#allocation6 + $0x2e0] sm:$0xff] }
 0x243   : > { %3241 = vmatprep.subr.bf16.mxu1 %v3240_v30  ;;  %v3264_v5 = vpack.c.bf16 %v1072_v3, %v1071_v2  ;;  %v1056_v7 = vld [vmem:[#allocation6 + $0x258] sm:$0xff]  ;;  %v1074_v9 = vld [vmem:[#allocation6 + $0x2e8] sm:$0xff]  ;;  %v1057_v12 = vld [vmem:[#allocation6 + $0x260] sm:$0xff] }
 0x244   : > { %v3266_v10 = vpack.c.bf16 %v1056_v7, %v1055_v6  ;;  %v3268_v11 = vpack.c.bf16 %v1074_v9, %v1073_v8  ;;  %v1058_v13 = vld [vmem:[#allocation6 + $0x268] sm:$0xff]  ;;  %v1075_v14 = vld [vmem:[#allocation6 + $0x2f0] sm:$0xff]  ;;  %v1076_v15 = vld [vmem:[#allocation6 + $0x2f8] sm:$0xff] }
 0x245   : > { %3211 = vmatpush3.bf16.msra.mxu0 %v3210_v34  ;;  %v3270_v16 = vpack.c.bf16 %v1058_v13, %v1057_v12  ;;  %v3272_v17 = vpack.c.bf16 %v1076_v15, %v1075_v14  ;;  %v1059_v18 = vld [vmem:[#allocation6 + $0x270] sm:$0xff]  ;;  %v1060_v19 = vld [vmem:[#allocation6 + $0x278] sm:$0xff]  ;;  %v1287_v32 = vld [vmem:[#allocation8] sm:$0xff] }
 0x246   : > { %3243 = vmatpush3.bf16.msra.mxu1 %v3242_v35  ;;  %3245 = vmatprep.subr.bf16.mxu0 %v3244_v36  ;;  %v3274_v20 = vpack.c.bf16 %v1060_v19, %v1059_v18  ;;  %v979_v21 = vld [vmem:[%s5036_s14 + $0x20] sm:$0xff] }
 0x248   : > { %1142 = vmatmul.mubr.f32.vlgmr.msra.gmra.mrb[0].mxu0 %v975_v41 }
 0x249   : > { %1212 = vmatmul.mubr.f32.vlgmr.msra.gmra.mrb[0].mxu1 %v977_v43  ;;  %3247 = vmatpush3.bf16.msra.mxu0 %v3246_v42 }
 0x24a   : > { %3249 = vmatprep.subr.bf16.mxu0 %v3248_v44  ;;  %1281 = vmatprep.mubr.f32.mxu0 %v980_v49 }
 0x24d   : > { %3251 = vmatpush3.bf16.msra.mxu0 %v3250_v50 }
 0x24e   : > { %3253 = vmatprep.subr.bf16.mxu0 %v3252_v51 }
 0x251   : > { %3255 = vmatpush3.bf16.msra.mxu0 %v3254_v56 }
 0x252   : > { %3257 = vmatprep.subr.bf16.mxu0 %v3256_v57 }
 0x255   : > { %3259 = vmatpush3.bf16.msra.mxu0 %v3258_v62 }
 0x256   : > { %3261 = vmatprep.subr.bf16.mxu0 %v3260_v63 }
 0x259   : > { %3263 = vmatpush3.bf16.msra.mxu0 %v3262_v4 }
 0x25a   : > { %3265 = vmatprep.subr.bf16.mxu0 %v3264_v5 }
 0x25d   : > { %3267 = vmatpush3.bf16.msra.mxu0 %v3266_v10 }
 0x25e   : > { %3269 = vmatprep.subr.bf16.mxu0 %v3268_v11 }
 0x261   : > { %3271 = vmatpush3.bf16.msra.mxu0 %v3270_v16 }
 0x262   : > { %3273 = vmatprep.subr.bf16.mxu0 %v3272_v17 }
 0x265   : > { %3275 = vmatpush3.bf16.msra.mxu0 %v3274_v20 }
 0x268   : > { %1282 = vmatmul.mubr.f32.vlgmr.msra.gmra.mrb[2].mxu0 %v979_v21 }
 0x31b   : > { %v2905_v22 = vpop.f32.mrb[0].mxu0 }
 0x31c   : > { %v2940_v23 = vpop.f32.mrb[0].mxu1  ;;  %v2906_v24 = vpop.f32.mrb[1].mxu0 }
 0x31d   : > { %v2907_v25 = vadd.f32 %v2906_v24, %v2905_v22  ;;  %v2941_v26 = vpop.f32.mrb[1].mxu1 }
 0x31e   : > { %v2942_v27 = vadd.f32 %v2941_v26, %v2940_v23 }
 0x320   : > { %v1214_v28 = vadd.f32 %v2942_v27, %v2907_v25 }
 0x33b   : > { %v2975_v29 = vpop.f32.mrb[2].mxu0 }
 0x33c   : > { %v2976_v30 = vpop.f32.mrb[3].mxu0 }
 0x33d   : > { %v2977_v31 = vadd.f32 %v2976_v30, %v2975_v29 }
 0x33f   : > { %v1284_v33 = vadd.f32 %v2977_v31, %v1214_v28 }
 0x341   : > { %v1288_v34 = vadd.f32 %v1287_v32, %v1284_v33 }
 0x343   : > { %1289 = vst [vmem:[#allocation2] sm:$0xff] %v1288_v34 }
 0x344 PF: > { %v1320_v36 = vld [vmem:[%s5061_s25 + $0x8] sm:$0xff]  ;;  %v1323_v37 = vld [vmem:[%s5061_s25 + $0x20] sm:$0xff]  ;;  %v4326_v40 = vmov 0.0|0.0   ;;  %v1322_v41 = vld [vmem:[%s5061_s25 + $0x18] sm:$0xff]  ;;  %v4327_v28 = vmov 0.0   ;;  %vm4328_vm0 = vmmov 0  }
 0x345   : > { %v1319_v38 = vld [vmem:[%s5061_s25] sm:$0xff]  ;;  %v3276_v39 = vpack.c.bf16 %v1323_v37, %v1320_v36  ;;  %3308 = vmatprep.subr.bf16.mxu1 %v4326_v40  ;;  %v1321_v42 = vld [vmem:[%s5061_s25 + $0x10] sm:$0xff]  ;;  %v1324_v43 = vld [vmem:[%s5061_s25 + $0x28] sm:$0xff]  ;;  %1448 = vmatprep.mubr.f32.mxu0 %v4327_v28  ;;  %s4329_s14 = smov 64   ;;  %vm1531_vm1 = vcmask 523264   ;;  %vm1691_vm3 = vcmask 64512  }
 0x346   : > { %v3278_v44 = vpack.c.bf16 %v1322_v41, %v1319_v38  ;;  %v3309_v45 = vpack.c.bf16 %v1324_v43, %v1321_v42  ;;  %v1326_v46 = vld [vmem:[%s5061_s25 + $0x38] sm:$0xff]  ;;  %v1329_v47 = vld [vmem:[%s5061_s25 + $0x50] sm:$0xff]  ;;  %v1328_v50 = vld [vmem:[%s5061_s25 + $0x48] sm:$0xff]  ;;  %3122 = vmatprep.mubr.msk.f32.mxu1 %vm4328_vm0, %v4327_v28  ;;  %s5626_s15 = scalar_lea.vmem [#allocation17], %s5050_s20  ;;  %s5627_s5 = scalar_lea.vmem [#allocation18], %s5050_s20 }
 0x347   : > { %v1325_v48 = vld [vmem:[%s5061_s25 + $0x30] sm:$0xff]  ;;  %3277 = vmatprep.subr.bf16.mxu0 %v3276_v39  ;;  %v3280_v49 = vpack.c.bf16 %v1329_v47, %v1326_v46  ;;  %v1327_v51 = vld [vmem:[%s5061_s25 + $0x40] sm:$0xff]  ;;  %v1330_v52 = vld [vmem:[%s5061_s25 + $0x58] sm:$0xff] }
 0x348   : > { %3279 = vmatpush1.bf16.msra.mxu0 %v3278_v44  ;;  %3310 = vmatpush3.bf16.msra.mxu1 %v3309_v45  ;;  %v3282_v53 = vpack.c.bf16 %v1328_v50, %v1325_v48  ;;  %v3312_v54 = vpack.c.bf16 %v1330_v52, %v1327_v51  ;;  %v1332_v55 = vld [vmem:[%s5061_s25 + $0x68] sm:$0xff]  ;;  %v1335_v56 = vld [vmem:[%s5061_s25 + $0x80] sm:$0xff]  ;;  %v1334_v59 = vld [vmem:[%s5061_s25 + $0x78] sm:$0xff] }
 0x349   : > { %v1331_v57 = vld [vmem:[%s5061_s25 + $0x60] sm:$0xff]  ;;  %3281 = vmatprep.subr.bf16.mxu0 %v3280_v49  ;;  %3311 = vmatprep.subr.bf16.mxu1 %v4326_v40  ;;  %v3284_v58 = vpack.c.bf16 %v1335_v56, %v1332_v55  ;;  %v1333_v60 = vld [vmem:[%s5061_s25 + $0x70] sm:$0xff]  ;;  %v1336_v61 = vld [vmem:[%s5061_s25 + $0x88] sm:$0xff] }
 0x34a   : > { %v5113_v35 = vld [vmem:[#allocation2] sm:$0xff]  ;;  %v3286_v62 = vpack.c.bf16 %v1334_v59, %v1331_v57  ;;  %v3315_v63 = vpack.c.bf16 %v1336_v61, %v1333_v60  ;;  %v1338_v4 = vld [vmem:[%s5061_s25 + $0x98] sm:$0xff]  ;;  %v1339_v9 = vld [vmem:[%s5061_s25 + $0xa0] sm:$0xff]  ;;  %v1369_v61 = vlaneseq }
 0x34b   : > { %1293 = vadd.xlane.f32.xlu0 %v5113_v35  ;;  %v1341_v5 = vld [vmem:[%s5061_s25 + $0xb0] sm:$0xff]  ;;  %v1340_v8 = vld [vmem:[%s5061_s25 + $0xa8] sm:$0xff]  ;;  %v1342_v11 = vld [vmem:[%s5061_s25 + $0xb8] sm:$0xff] }
 0x34c   : > { %3283 = vmatpush1.bf16.msra.mxu0 %v3282_v53  ;;  %3313 = vmatpush3.bf16.msra.mxu1 %v3312_v54  ;;  %v3288_v6 = vpack.c.bf16 %v1341_v5, %v1338_v4  ;;  %v1337_v7 = vld [vmem:[%s5061_s25 + $0x90] sm:$0xff]  ;;  %v3318_v12 = vpack.c.bf16 %v1342_v11, %v1339_v9  ;;  %v1344_v13 = vld [vmem:[%s5061_s25 + $0xc8] sm:$0xff]  ;;  %v1347_v14 = vld [vmem:[%s5061_s25 + $0xe0] sm:$0xff] }
 0x34d   : > { %3285 = vmatprep.subr.bf16.mxu0 %v3284_v58  ;;  %3314 = vmatprep.subr.bf16.mxu1 %v4326_v40  ;;  %v3290_v10 = vpack.c.bf16 %v1340_v8, %v1337_v7  ;;  %v3292_v15 = vpack.c.bf16 %v1347_v14, %v1344_v13  ;;  %v1343_v16 = vld [vmem:[%s5061_s25 + $0xc0] sm:$0xff]  ;;  %v1346_v17 = vld [vmem:[%s5061_s25 + $0xd8] sm:$0xff]  ;;  %v1345_v18 = vld [vmem:[%s5061_s25 + $0xd0] sm:$0xff] }
 0x34e   : > { %v3294_v19 = vpack.c.bf16 %v1346_v17, %v1343_v16  ;;  %v1348_v20 = vld [vmem:[%s5061_s25 + $0xe8] sm:$0xff]  ;;  %v1350_v21 = vld [vmem:[%s5061_s25 + $0xf8] sm:$0xff]  ;;  %v1353_v22 = vld [vmem:[%s5061_s25 + $0x110] sm:$0xff] }
 0x34f   : > { %v3321_v23 = vpack.c.bf16 %v1348_v20, %v1345_v18  ;;  %v3296_v24 = vpack.c.bf16 %v1353_v22, %v1350_v21  ;;  %v1349_v25 = vld [vmem:[%s5061_s25 + $0xf0] sm:$0xff]  ;;  %v1352_v26 = vld [vmem:[%s5061_s25 + $0x108] sm:$0xff]  ;;  %v1351_v27 = vld [vmem:[%s5061_s25 + $0x100] sm:$0xff]  ;;  %v1535_v18 = vand.u32 127, %v1369_v61 }
 0x350   : > { %3287 = vmatpush1.bf16.msra.mxu0 %v3286_v62  ;;  %3316 = vmatpush3.bf16.msra.mxu1 %v3315_v63  ;;  %v3298_v29 = vpack.c.bf16 %v1352_v26, %v1349_v25  ;;  %v1354_v30 = vld [vmem:[%s5061_s25 + $0x118] sm:$0xff]  ;;  %v1356_v31 = vld [vmem:[%s5061_s25 + $0x128] sm:$0xff]  ;;  %v1359_v32 = vld [vmem:[%s5061_s25 + $0x140] sm:$0xff]  ;;  %v5191_v62 = vshrl.u32 %v1369_v61, 7 }
 0x351   : > { %3317 = vmatprep.subr.bf16.mxu1 %v4326_v40  ;;  %3289 = vmatprep.subr.bf16.mxu0 %v3288_v6  ;;  %v3324_v33 = vpack.c.bf16 %v1354_v30, %v1351_v27  ;;  %v3300_v34 = vpack.c.bf16 %v1359_v32, %v1356_v31  ;;  %v1355_v36 = vld [vmem:[%s5061_s25 + $0x120] sm:$0xff]  ;;  %v1358_v37 = vld [vmem:[%s5061_s25 + $0x138] sm:$0xff]  ;;  %v1357_v38 = vld [vmem:[%s5061_s25 + $0x130] sm:$0xff]  ;;  %vm1536_vm2 = vcmp.lt.s32.totalorder %v1535_v18, 5 }
 0x352   : > { %v1360_v39 = vld [vmem:[%s5061_s25 + $0x148] sm:$0xff]  ;;  %v1362_v41 = vld [vmem:[%s5061_s25 + $0x158] sm:$0xff]  ;;  %v1365_v42 = vld [vmem:[%s5061_s25 + $0x170] sm:$0xff]  ;;  %v3302_v43 = vpack.c.bf16 %v1358_v37, %v1355_v36  ;;  %v1371_v63 = vsub.s32 0, %v5191_v62 }
 0x353   : > { %v3327_v44 = vpack.c.bf16 %v1360_v39, %v1357_v38  ;;  %v3304_v45 = vpack.c.bf16 %v1365_v42, %v1362_v41  ;;  %v1361_v46 = vld [vmem:[%s5061_s25 + $0x150] sm:$0xff]  ;;  %v1364_v47 = vld [vmem:[%s5061_s25 + $0x168] sm:$0xff]  ;;  %v1363_v48 = vld [vmem:[%s5061_s25 + $0x160] sm:$0xff] }
 0x354   : > { %3291 = vmatpush1.bf16.msra.mxu0 %v3290_v10  ;;  %3319 = vmatpush3.bf16.msra.mxu1 %v3318_v12  ;;  %v1366_v49 = vld [vmem:[%s5061_s25 + $0x178] sm:$0xff]  ;;  %v3306_v50 = vpack.c.bf16 %v1364_v47, %v1361_v46  ;;  %v2853_v56 = vld [vmem:[%s777_s2] ss:$0 sm:$0xff]  ;;  %s5628_s2 = scalar_lea.vmem [#allocation20], %s5050_s20 }
 0x355   : > { %3320 = vmatprep.subr.bf16.mxu1 %v4326_v40  ;;  %3293 = vmatprep.subr.bf16.mxu0 %v3292_v15  ;;  %v3330_v51 = vpack.c.bf16 %v1366_v49, %v1363_v48  ;;  %v2854_v58 = vld [vmem:[%s785_s0] ss:$0 sm:$0xff]  ;;  %v1868_v46 = vld [vmem:[%s5072_s11 + $0x18] sm:$0xff]  ;;  %s5629_s0 = sld [smem:[#allocation39_spill]] }
 0x356   : > { %v1865_v42 = vld [vmem:[%s5072_s11] sm:$0xff] }
 0x357   : > { %v1869_v49 = vld [vmem:[%s5072_s11 + $0x20] sm:$0xff] }
 0x358   : > { %3295 = vmatpush1.bf16.msra.mxu0 %v3294_v19  ;;  %3322 = vmatpush3.bf16.msra.mxu1 %v3321_v23  ;;  %v4330_v19 = vmov -1e+30  }
 0x359   : > { %3297 = vmatprep.subr.bf16.mxu0 %v3296_v24  ;;  %3323 = vmatprep.subr.bf16.mxu1 %v4326_v40  ;;  %v1537_v20 = vsel %vm1536_vm2, 0.0, %v4330_v19 }
 0x35b   : > { %p2865_p6 = scmp.ne.s32.totalorder %s5629_s0, 1 }
 0x35c   : > { %3299 = vmatpush1.bf16.msra.mxu0 %v3298_v29  ;;  %3325 = vmatpush3.bf16.msra.mxu1 %v3324_v33 }
 0x35d   : > { %3301 = vmatprep.subr.bf16.mxu0 %v3300_v34  ;;  %3326 = vmatprep.subr.bf16.mxu1 %v4326_v40 }
 0x360   : > { %3303 = vmatpush1.bf16.msra.mxu0 %v3302_v43  ;;  %3328 = vmatpush3.bf16.msra.mxu1 %v3327_v44  ;;  %v1866_v43 = vld [vmem:[%s5072_s11 + $0x8] sm:$0xff]  ;;  %v1867_v44 = vld [vmem:[%s5072_s11 + $0x10] sm:$0xff] }
 0x361   : > { %3305 = vmatprep.subr.bf16.mxu0 %v3304_v45  ;;  %3329 = vmatprep.subr.bf16.mxu1 %v4326_v40  ;;  %v3333_v45 = vpack.c.bf16 %v1866_v43, %v1865_v42  ;;  %v3336_v47 = vpack.c.bf16 %v1868_v46, %v1867_v44  ;;  %v1998_v42 = vld [vmem:[%s5088_s16 + $0x60] sm:$0xff]  ;;  %v1996_v43 = vld [vmem:[%s5088_s16 + $0x50] sm:$0xff]  ;;  %v2003_v46 = vld [vmem:[%s5088_s16 + $0x88] sm:$0xff] }
 0x364   : > { %3307 = vmatpush1.bf16.msra.mxu0 %v3306_v50  ;;  %3331 = vmatpush3.bf16.msra.mxu1 %v3330_v51  ;;  %v1870_v50 = vld [vmem:[%s5072_s11 + $0x28] sm:$0xff] }
 0x365   : > { %3332 = vmatprep.subr.bf16.mxu0 %v4326_v40  ;;  %3125 = vmatprep.subr.mxu1 %v4327_v28 }
 0x3d8   : > { %v1294_v0 = vpop.xlane.xlu0 %1293 }
 0x3d9   : > { %v1296_v1 = vmul.f32 0.0078125, %v1294_v0  ;;  %v1367_v0 = vld [vmem:[%s5069_s3] sm:$0x7] }
 0x3db   : > { %v5139_v2 = vsub.f32 %v5113_v35, %v1296_v1  ;;  %v1375_v1 = vsub.s32 1, %v5191_v62 }
 0x3dd   : > { %v1298_v3 = vmul.f32 %v5139_v2, %v5139_v2  ;;  %v1376_v4 = vrot.slane %v1367_v0, %v1375_v1 }
 0x3df   : > { %1299 = vadd.xlane.f32.xlu0 %v1298_v3  ;;  %v1379_v3 = vsub.s32 2, %v5191_v62 }
 0x3e1   : > { %v1380_v10 = vrot.slane %v1367_v0, %v1379_v3 }
 0x46c   : > { %v1300_v52 = vpop.xlane.xlu0 %1299 }
 0x46d   : > { %v1301_v53 = vmul.f32 0.0078125, %v1300_v52  ;;  %v3339_v52 = vpack.c.bf16 %v1870_v50, %v1869_v49  ;;  %v2005_v50 = vld [vmem:[%s5088_s16 + $0x98] sm:$0xff] }
 0x46f   : > { %v1302_v54 = vadd.f32 1e-06, %v1301_v53  ;;  %v1871_v53 = vld [vmem:[%s5072_s11 + $0x30] sm:$0xff] }
 0x471   : > { %3687 = vrsqrt.f32 %v1302_v54  ;;  %v1872_v54 = vld [vmem:[%s5072_s11 + $0x38] sm:$0xff] }
 0x47b   : > { %v3688_v55 = vpop.eup %3687 }
 0x47c   : > { %v1304_v57 = vmul.f32 %v3688_v55, %v5139_v2  ;;  %v1372_v2 = vrot.slane %v1367_v0, %v1371_v63  ;;  %v3342_v55 = vpack.c.bf16 %v1872_v54, %v1871_v53  ;;  %v1877_v0 = vld [vmem:[%s5072_s11 + $0x60] sm:$0xff] }
 0x47d   : > { %v2006_v54 = vld [vmem:[%s5088_s16 + $0xa0] sm:$0xff] }
 0x47e   : > { %v1311_v59 = vmul.f32 %v2853_v56, %v1304_v57  ;;  %v1873_v56 = vld [vmem:[%s5072_s11 + $0x40] sm:$0xff]  ;;  %v1874_v57 = vld [vmem:[%s5072_s11 + $0x48] sm:$0xff] }
 0x480   : > { %v1318_v60 = vadd.f32 %v2854_v58, %v1311_v59  ;;  %v3345_v58 = vpack.c.bf16 %v1874_v57, %v1873_v56  ;;  %v1875_v59 = vld [vmem:[%s5072_s11 + $0x50] sm:$0xff] }
 0x481   : > { %v2008_v56 = vld [vmem:[%s5088_s16 + $0xb0] sm:$0xff] }
 0x482   : > { %1449 = vmatmul.mubr.f32.vlgmr.msra.gmra.mrb[0].mxu0 %v1318_v60  ;;  %3123 = vmatmul.mubr.f32.vlgmr.msra.gmra.mrb[0].mxu1 %v1318_v60  ;;  %v1876_v60 = vld [vmem:[%s5072_s11 + $0x58] sm:$0xff] }
 0x483   : > { %3127 = vmatprep.mubr.msk.f32.mxu1 %vm4328_vm0, %v4327_v28  ;;  %3177 = vmatprep.mubr.msk.f32.mxu0 %vm4328_vm0, %v4327_v28  ;;  %v3348_v61 = vpack.c.bf16 %v1876_v60, %v1875_v59 }
 0x484   : > { %3334 = vmatpush3.bf16.msra.mxu0 %v3333_v45  ;;  %v2000_v45 = vld [vmem:[%s5088_s16 + $0x70] sm:$0xff] }
 0x485   : > { %3335 = vmatprep.subr.bf16.mxu0 %v4326_v40 }
 0x488   : > { %3337 = vmatpush3.bf16.msra.mxu0 %v3336_v47  ;;  %v2007_v47 = vld [vmem:[%s5088_s16 + $0xa8] sm:$0xff] }
 0x489   : > { %3338 = vmatprep.subr.bf16.mxu0 %v4326_v40  ;;  %v3364_v49 = vpack.c.bf16 %v2007_v47, %v2003_v46  ;;  %v2038_v47 = vld [vmem:[%s5088_s16 + $0x1a0] sm:$0xff] }
 0x48c   : > { %3340 = vmatpush3.bf16.msra.mxu0 %v3339_v52  ;;  %v2002_v52 = vld [vmem:[%s5088_s16 + $0x80] sm:$0xff] }
 0x48d   : > { %3341 = vmatprep.subr.bf16.mxu0 %v4326_v40  ;;  %v3366_v57 = vpack.c.bf16 %v2006_v54, %v2002_v52  ;;  %v2047_v52 = vld [vmem:[%s5088_s16 + $0x1e8] sm:$0xff] }
 0x490   : > { %3343 = vmatpush3.bf16.msra.mxu0 %v3342_v55  ;;  %v2004_v55 = vld [vmem:[%s5088_s16 + $0x90] sm:$0xff] }
 0x491   : > { %3344 = vmatprep.subr.bf16.mxu0 %v4326_v40 }
 0x494   : > { %3346 = vmatpush3.bf16.msra.mxu0 %v3345_v58  ;;  %v3398_v58 = vpack.c.bf16 %v2008_v56, %v2004_v55  ;;  %v2049_v56 = vld [vmem:[%s5088_s16 + $0x1f8] sm:$0xff] }
 0x495   : > { %3347 = vmatprep.subr.bf16.mxu0 %v4326_v40 }
 0x498   : > { %3349 = vmatpush3.bf16.msra.mxu0 %v3348_v61 }
 0x499   : > { %3350 = vmatprep.subr.bf16.mxu0 %v4326_v40 }
 0x555   : > { %v1450_v5 = vpop.f32.mrb[0].mxu0  ;;  %v1521_v6 = vpop.f32.mrb[0].mxu1 }
 0x556   : > { %v1451_v7 = vadd.f32 %v1450_v5, %v1372_v2  ;;  %v1452_v8 = vpop.f32.mrb[1].mxu0  ;;  %v3124_v9 = vpop.f32.mrb[1].mxu1  ;;  %v1522_v12 = vadd.f32 %v1521_v6, %v1380_v10  ;;  %v1878_v2 = vld [vmem:[%s5072_s11 + $0x68] sm:$0xff]  ;;  %v1879_v5 = vld [vmem:[%s5072_s11 + $0x70] sm:$0xff]  ;;  %v1880_v6 = vld [vmem:[%s5072_s11 + $0x78] sm:$0xff] }
 0x557   : > { %v1453_v11 = vadd.f32 %v1452_v8, %v1376_v4  ;;  %v3351_v4 = vpack.c.bf16 %v1878_v2, %v1877_v0  ;;  %v2011_v2 = vld [vmem:[%s5088_s16 + $0xc8] sm:$0xff] }
 0x558   : > { %1539 = vrot.lane.b32.xlu0 %v1451_v7, %s4329_s14 }
 0x559   : > { %1527 = vrot.lane.b32.xlu1 %v1453_v11, %s4329_s14  ;;  %3352 = vmatpush3.bf16.msra.mxu0 %v3351_v4  ;;  %v2015_v4 = vld [vmem:[%s5088_s16 + $0xe8] sm:$0xff] }
 0x55a   : > { %3353 = vmatprep.subr.bf16.mxu0 %v4326_v40 }
 0x55d   : > { %1529 = vrot.lane.b32.xlu1 %v1522_v12, %s4329_s14 }
 0x5ca   : > { %v1540_v13 = vpop.permute.xlu0 %1539 }
 0x5cb   : > { %v1528_v14 = vpop.permute.xlu1 %1527  ;;  %3126 = vmatpush3.xpose.msk.msra.mxu1 %vm1531_vm1, %v1540_v13 }
 0x5cc   : > { %3130 = vmatprep.subr.mxu1 %v4327_v28 }
 0x5ce   : > { %3128 = vmatmul.mubr.msk.f32.vlgmr.msra.gmra.mrb[2].mxu1 %vm1531_vm1, %v1451_v7  ;;  %v3354_v7 = vpack.c.bf16 %v1880_v6, %v1879_v5  ;;  %v2013_v5 = vld [vmem:[%s5088_s16 + $0xd8] sm:$0xff]  ;;  %v3368_v6 = vpack.c.bf16 %v2015_v4, %v2011_v2 }
 0x5cf   : > { %v1530_v15 = vpop.permute.xlu1 %1529  ;;  %3132 = vmatprep.mubr.msk.f32.mxu1 %vm4328_vm0, %v4327_v28 }
 0x5d0   : > { %v1532_v16 = vsel %vm1531_vm1, %v1528_v14, %v1530_v15  ;;  %3355 = vmatpush3.bf16.msra.mxu0 %v3354_v7  ;;  %v2017_v7 = vld [vmem:[%s5088_s16 + $0xf8] sm:$0xff] }
 0x5d1   : > { %1615 = vrot.lane.b32.xlu1 %v1532_v16, %s4329_s14 }
 0x643   : > { %v1616_v17 = vpop.permute.xlu1 %1615 }
 0x644   : > { %3131 = vmatpush3.xpose.msk.msra.mxu1 %vm1531_vm1, %v1616_v17  ;;  %v2861_v17 = vld [vmem:[%s5626_s15] ss:$0 sm:$0xff] }
 0x645   : > { %3135 = vmatprep.subr.mxu1 %v4327_v28 }
 0x647   : > { %3133 = vmatmul.mubr.msk.f32.vlgmr.msra.gmra.mrb[4].mxu1 %vm1531_vm1, %v1532_v16 }
 0x648   : > { %3136 = vmatpush3.msra.mxu1 %v1453_v11  ;;  %3137 = vmatprep.mubr.msk.f32.mxu1 %vm4328_vm0, %v4327_v28 }
 0x649   : > { %3140 = vmatprep.subr.mxu1 %v4327_v28 }
 0x6a1   : > { %v1611_v21 = vpop.f32.mrb[2].mxu1 }
 0x6a2   : > { %v1612_v22 = vadd.f32 %v1611_v21, %v1537_v20  ;;  %v3129_v23 = vpop.f32.mrb[3].mxu1 }
 0x6a3   : > { %v1991_v23 = vld [vmem:[%s5088_s16 + $0x28] sm:$0xff] }
 0x6a4   : > { %v1692_v24 = vsel %vm1691_vm3, %v1612_v22, -inf }
 0x6a5   : > { %1693 = vmax.xlane.f32.xlu1 %v1692_v24  ;;  %v1989_v24 = vld [vmem:[%s5088_s16 + $0x18] sm:$0xff] }
 0x71a   : > { %v1687_v25 = vpop.f32.mrb[4].mxu1 }
 0x71b   : > { %v1688_v26 = vadd.f32 %v1687_v25, %v1537_v20  ;;  %v3134_v27 = vpop.f32.mrb[5].mxu1  ;;  %v1993_v25 = vld [vmem:[%s5088_s16 + $0x38] sm:$0xff] }
 0x71c   : > { %v1990_v27 = vld [vmem:[%s5088_s16 + $0x20] sm:$0xff] }
 0x71d   : > { %v1695_v29 = vsel %vm1691_vm3, %v1688_v26, -inf }
 0x71e   : > { %1696 = vmax.xlane.f32.xlu0 %v1695_v29  ;;  %v3388_v29 = vpack.c.bf16 %v1993_v25, %v1989_v24  ;;  %v2020_v24 = vld [vmem:[%s5088_s16 + $0x110] sm:$0xff]  ;;  %v2027_v25 = vld [vmem:[%s5088_s16 + $0x148] sm:$0xff] }
 0x720   : > { %3389 = vmatprep.subr.bf16.mxu0 %v3388_v29  ;;  %v2029_v29 = vld [vmem:[%s5088_s16 + $0x158] sm:$0xff] }
 0x732   : > { %v1694_v30 = vpop.xlane.xlu1 %1693 }
 0x733   : > { %v1698_v31 = vsub.f32 %v1612_v22, %v1694_v30  ;;  %v1987_v22 = vld [vmem:[%s5088_s16 + $0x8] sm:$0xff] }
 0x735   : > { %v1700_v32 = vmul.f32 1.442695, %v1698_v31  ;;  %v1988_v31 = vld [vmem:[%s5088_s16 + $0x10] sm:$0xff] }
 0x737   : > { %3689 = vpow2.f32 %v1700_v32  ;;  %v1995_v32 = vld [vmem:[%s5088_s16 + $0x48] sm:$0xff] }
 0x741   : > { %v3690_v33 = vpop.eup %3689 }
 0x742   : > { %3138 = vmatmul.mubr.msk.f32.vlgmr.msra.gmra.mrb[6].mxu1 %vm1691_vm3, %v3690_v33  ;;  %v1704_v41 = vsel %vm1691_vm3, %v3690_v33, 0.0 }
 0x743   : > { %3141 = vmatpush3.msra.mxu1 %v1530_v15  ;;  %3142 = vmatprep.mubr.msk.f32.mxu1 %vm4328_vm0, %v4327_v28 }
 0x7ab   : > { %v1697_v34 = vpop.xlane.xlu0 %1696 }
 0x7ac   : > { %v1699_v36 = vsub.f32 %v1688_v26, %v1697_v34  ;;  %v1986_v26 = vld [vmem:[%s5088_s16] sm:$0xff]  ;;  %v1999_v34 = vld [vmem:[%s5088_s16 + $0x68] sm:$0xff] }
 0x7ad   : > { %v3358_v30 = vpack.c.bf16 %v1990_v27, %v1986_v26  ;;  %v2031_v27 = vld [vmem:[%s5088_s16 + $0x168] sm:$0xff] }
 0x7ae   : > { %v1702_v37 = vmul.f32 1.442695, %v1699_v36  ;;  %v1997_v36 = vld [vmem:[%s5088_s16 + $0x58] sm:$0xff] }
 0x7b0   : > { %3691 = vpow2.f32 %v1702_v37  ;;  %v2001_v37 = vld [vmem:[%s5088_s16 + $0x78] sm:$0xff] }
 0x7ba   : > { %v3692_v38 = vpop.eup %3691 }
 0x7bb   : > { %3143 = vmatmul.mubr.msk.f32.vlgmr.msra.gmra.mrb[8].mxu1 %vm1691_vm3, %v3692_v38  ;;  %v1707_v39 = vsel %vm1691_vm3, %v3692_v38, 0.0  ;;  %v3360_v38 = vpack.c.bf16 %v1999_v34, %v1995_v32  ;;  %v2026_v32 = vld [vmem:[%s5088_s16 + $0x140] sm:$0xff]  ;;  %v2028_v34 = vld [vmem:[%s5088_s16 + $0x150] sm:$0xff] }
 0x7bc   : > { %1708 = vadd.xlane.f32.xlu1 %v1707_v39  ;;  %2136 = vmatprep.mubr.f32.mxu1 %v4327_v28  ;;  %v3392_v39 = vpack.c.bf16 %v2001_v37, %v1997_v36  ;;  %v2032_v37 = vld [vmem:[%s5088_s16 + $0x170] sm:$0xff] }
 0x7c0   : > { %1705 = vadd.xlane.f32.xlu1 %v1704_v41  ;;  %v1994_v41 = vld [vmem:[%s5088_s16 + $0x40] sm:$0xff] }
 0x7c1   : > { %v3362_v44 = vpack.c.bf16 %v1998_v42, %v1994_v41  ;;  %v3410_v41 = vpack.c.bf16 %v2032_v37, %v2028_v34  ;;  %v2285_v34 = vld [vmem:[%s5098_s27 + $0x118] sm:$0xff]  ;;  %v2270_v37 = vld [vmem:[%s5098_s27 + $0xa0] sm:$0xff] }
 0x815   : > { %v1779_v48 = vpop.f32.mrb[6].mxu1 }
 0x816   : > { %v3139_v51 = vpop.f32.mrb[7].mxu1 }
 0x817   : > { %v2009_v51 = vld [vmem:[%s5088_s16 + $0xb8] sm:$0xff] }
 0x818   : > { %v3396_v53 = vpack.c.bf16 %v2009_v51, %v2005_v50  ;;  %v2043_v51 = vld [vmem:[%s5088_s16 + $0x1c8] sm:$0xff] }
 0x819   : > { %v3384_v55 = vpack.c.bf16 %v2047_v52, %v2043_v51  ;;  %v2273_v51 = vld [vmem:[%s5098_s27 + $0xb8] sm:$0xff]  ;;  %v2304_v52 = vld [vmem:[%s5098_s27 + $0x1b0] sm:$0xff] }
 0x849   : > { %v1709_v8 = vpop.xlane.xlu1 %1708 }
 0x84a   : > { %3693 = vrcp.f32 %v1709_v8  ;;  %v2010_v8 = vld [vmem:[%s5088_s16 + $0xc0] sm:$0xff] }
 0x84d   : > { %v1706_v13 = vpop.xlane.xlu1 %1705 }
 0x84e   : > { %3695 = vrcp.f32 %v1706_v13  ;;  %v2016_v13 = vld [vmem:[%s5088_s16 + $0xf0] sm:$0xff] }
 0x854   : > { %v3694_v9 = vpop.eup %3693 }
 0x858   : > { %v3696_v14 = vpop.eup %3695 }
 0x859   : > { %v1858_v15 = vmul.f32 %v3696_v14, %v1779_v48  ;;  %v3394_v48 = vpack.c.bf16 %v2000_v45, %v1996_v43  ;;  %v2037_v43 = vld [vmem:[%s5088_s16 + $0x198] sm:$0xff]  ;;  %v2034_v45 = vld [vmem:[%s5088_s16 + $0x180] sm:$0xff] }
 0x85a   : > { %v3382_v50 = vpack.c.bf16 %v2038_v47, %v2034_v45  ;;  %v2286_v47 = vld [vmem:[%s5098_s27 + $0x120] sm:$0xff] }
 0x88e   : > { %v1852_v10 = vpop.f32.mrb[8].mxu1 }
 0x88f   : > { %v1859_v11 = vmul.f32 %v3694_v9, %v1852_v10  ;;  %v3144_v12 = vpop.f32.mrb[9].mxu1  ;;  %v2014_v9 = vld [vmem:[%s5088_s16 + $0xe0] sm:$0xff]  ;;  %v3400_v10 = vpack.c.bf16 %v2017_v7, %v2013_v5 }
 0x890   : > { %v2012_v12 = vld [vmem:[%s5088_s16 + $0xd0] sm:$0xff] }
 0x891   : > { %1861 = vrot.lane.b32.xlu1 %v1859_v11, %s4329_s14  ;;  %v3370_v11 = vpack.c.bf16 %v2014_v9, %v2010_v8  ;;  %v3402_v14 = vpack.c.bf16 %v2016_v13, %v2012_v12  ;;  %v2862_v9 = vld [vmem:[%s5627_s5] ss:$0 sm:$0xff] }
 0x903   : > { %v1862_v40 = vpop.permute.xlu1 %1861 }
 0x904   : > { %v1864_v16 = vsel %vm1531_vm1, %v1858_v15, %v1862_v40  ;;  %v2019_v15 = vld [vmem:[%s5088_s16 + $0x108] sm:$0xff] }
 0x905   : > { %3178 = vmatmul.mubr.f32.vlgmr.msra.gmra.mrb[2].mxu0 %v1864_v16  ;;  %v2023_v40 = vld [vmem:[%s5088_s16 + $0x128] sm:$0xff]  ;;  %v2021_v16 = vld [vmem:[%s5088_s16 + $0x118] sm:$0xff] }
 0x906   : > { %2207 = vmatprep.mubr.f32.mxu0 %v4327_v28  ;;  %v3356_v28 = vpack.c.bf16 %v1991_v23, %v1987_v22 }
 0x908   : > { %3357 = vmatprep.subr.bf16.mxu1 %v3356_v28  ;;  %v2024_v28 = vld [vmem:[%s5088_s16 + $0x130] sm:$0xff] }
 0x909   : > { %3359 = vmatpush1.bf16.msra.mxu1 %v3358_v30  ;;  %v3406_v26 = vpack.c.bf16 %v2024_v28, %v2020_v24  ;;  %v2033_v30 = vld [vmem:[%s5088_s16 + $0x178] sm:$0xff] }
 0x90a   : > { %3361 = vmatprep.subr.bf16.mxu1 %v3360_v38  ;;  %v2035_v38 = vld [vmem:[%s5088_s16 + $0x188] sm:$0xff]  ;;  %v2268_v28 = vld [vmem:[%s5098_s27 + $0x90] sm:$0xff] }
 0x90d   : > { %3363 = vmatpush1.bf16.msra.mxu1 %v3362_v44  ;;  %v2041_v44 = vld [vmem:[%s5088_s16 + $0x1b8] sm:$0xff] }
 0x90e   : > { %3365 = vmatprep.subr.bf16.mxu1 %v3364_v49  ;;  %v3412_v46 = vpack.c.bf16 %v2041_v44, %v2037_v43  ;;  %v2040_v49 = vld [vmem:[%s5088_s16 + $0x1b0] sm:$0xff]  ;;  %v2254_v43 = vld [vmem:[%s5098_s27 + $0x20] sm:$0xff] }
 0x90f   : > { %v2255_v44 = vld [vmem:[%s5098_s27 + $0x28] sm:$0xff] }
 0x911   : > { %3367 = vmatpush1.bf16.msra.mxu1 %v3366_v57  ;;  %v2042_v57 = vld [vmem:[%s5088_s16 + $0x1c0] sm:$0xff] }
 0x912   : > { %3369 = vmatprep.subr.bf16.mxu1 %v3368_v6 }
 0x915   : > { %3371 = vmatpush1.bf16.msra.mxu1 %v3370_v11  ;;  %v2863_v11 = vld [vmem:[%s5628_s2] ss:$0 sm:$0xff] }
 0x9d8   : > { %v1954_v18 = vpop.f32.mrb[2].mxu0 }
 0x9d9   : > { %v1955_v19 = vadd.f32 %v2861_v17, %v1954_v18  ;;  %v3179_v20 = vpop.f32.mrb[3].mxu0  ;;  %v3372_v17 = vpack.c.bf16 %v2023_v40, %v2019_v15  ;;  %v2025_v18 = vld [vmem:[%s5088_s16 + $0x138] sm:$0xff]  ;;  %v2267_v15 = vld [vmem:[%s5098_s27 + $0x88] sm:$0xff]  ;;  %v2298_v40 = vld [vmem:[%s5098_s27 + $0x180] sm:$0xff] }
 0x9da   : > { %v2022_v20 = vld [vmem:[%s5088_s16 + $0x120] sm:$0xff]  ;;  %v3404_v22 = vpack.c.bf16 %v2025_v18, %v2021_v16  ;;  %v2250_v18 = vld [vmem:[%s5098_s27] sm:$0xff] }
 0x9db   : > { %v5257_v21 = vadd.f32 %v1955_v19, %v5113_v35  ;;  %v1992_v35 = vld [vmem:[%s5088_s16 + $0x30] sm:$0xff]  ;;  %v2018_v19 = vld [vmem:[%s5088_s16 + $0x100] sm:$0xff]  ;;  %3373 = vmatprep.subr.bf16.mxu1 %v3372_v17 }
 0x9dc   : > { %v3390_v33 = vpack.c.bf16 %v1992_v35, %v1988_v31  ;;  %v3374_v23 = vpack.c.bf16 %v2022_v20, %v2018_v19  ;;  %v3376_v31 = vpack.c.bf16 %v2031_v27, %v2027_v25  ;;  %v3408_v35 = vpack.c.bf16 %v2033_v30, %v2029_v29  ;;  %v2299_v17 = vld [vmem:[%s5098_s27 + $0x188] sm:$0xff]  ;;  %v2269_v25 = vld [vmem:[%s5098_s27 + $0x98] sm:$0xff]  ;;  %v2252_v30 = vld [vmem:[%s5098_s27 + $0x10] sm:$0xff] }
 0x9dd   : > { %1961 = vadd.xlane.f32.xlu0 %v5257_v21  ;;  %v2251_v19 = vld [vmem:[%s5098_s27 + $0x8] sm:$0xff]  ;;  %v3424_v27 = vpack.c.bf16 %v2269_v25, %v2268_v28  ;;  %v2301_v29 = vld [vmem:[%s5098_s27 + $0x198] sm:$0xff]  ;;  %v2278_v28 = vld [vmem:[%s5098_s27 + $0xe0] sm:$0xff] }
 0x9de   : > { %3391 = vmatpush1.bf16.msra.mxu0 %v3390_v33  ;;  %3375 = vmatpush1.bf16.msra.mxu1 %v3374_v23  ;;  %v2030_v33 = vld [vmem:[%s5088_s16 + $0x160] sm:$0xff]  ;;  %v3422_v20 = vpack.c.bf16 %v2251_v19, %v2250_v18  ;;  %v2283_v23 = vld [vmem:[%s5098_s27 + $0x108] sm:$0xff] }
 0x9df   : > { %3393 = vmatprep.subr.bf16.mxu0 %v3392_v39  ;;  %v3378_v36 = vpack.c.bf16 %v2030_v33, %v2026_v32  ;;  %v2039_v39 = vld [vmem:[%s5088_s16 + $0x1a8] sm:$0xff]  ;;  %3377 = vmatprep.subr.bf16.mxu1 %v3376_v31  ;;  %v2253_v31 = vld [vmem:[%s5098_s27 + $0x18] sm:$0xff]  ;;  %v2284_v33 = vld [vmem:[%s5098_s27 + $0x110] sm:$0xff] }
 0x9e0   : > { %v3380_v42 = vpack.c.bf16 %v2039_v39, %v2035_v38  ;;  %v3426_v32 = vpack.c.bf16 %v2253_v31, %v2252_v30  ;;  %v2271_v38 = vld [vmem:[%s5098_s27 + $0xa8] sm:$0xff]  ;;  %v2302_v39 = vld [vmem:[%s5098_s27 + $0x1a0] sm:$0xff] }
 0x9e1   : > { %v2279_v25 = vld [vmem:[%s5098_s27 + $0xe8] sm:$0xff]  ;;  %v2262_v31 = vld [vmem:[%s5098_s27 + $0x60] sm:$0xff] }
 0x9e2   : > { %3395 = vmatpush1.bf16.msra.mxu0 %v3394_v48  ;;  %v2036_v48 = vld [vmem:[%s5088_s16 + $0x190] sm:$0xff]  ;;  %3379 = vmatpush1.bf16.msra.mxu1 %v3378_v36  ;;  %v3458_v36 = vpack.c.bf16 %v2285_v34, %v2284_v33  ;;  %v2294_v33 = vld [vmem:[%s5098_s27 + $0x160] sm:$0xff] }
 0x9e3   : > { %3397 = vmatprep.subr.bf16.mxu0 %v3396_v53  ;;  %v2045_v53 = vld [vmem:[%s5088_s16 + $0x1d8] sm:$0xff]  ;;  %3381 = vmatprep.subr.bf16.mxu1 %v3380_v42  ;;  %v3414_v54 = vpack.c.bf16 %v2040_v49, %v2036_v48  ;;  %v2303_v42 = vld [vmem:[%s5098_s27 + $0x1a8] sm:$0xff] }
 0x9e4   : > { %v3460_v45 = vpack.c.bf16 %v2303_v42, %v2302_v39  ;;  %v2287_v48 = vld [vmem:[%s5098_s27 + $0x128] sm:$0xff]  ;;  %v2312_v39 = vld [vmem:[%s5098_s27 + $0x1f0] sm:$0xff] }
 0x9e5   : > { %v3462_v49 = vpack.c.bf16 %v2287_v48, %v2286_v47  ;;  %v2311_v30 = vld [vmem:[%s5098_s27 + $0x1e8] sm:$0xff]  ;;  %v2296_v47 = vld [vmem:[%s5098_s27 + $0x170] sm:$0xff]  ;;  %v2297_v48 = vld [vmem:[%s5098_s27 + $0x178] sm:$0xff] }
 0x9e6   : > { %3399 = vmatpush1.bf16.msra.mxu0 %v3398_v58  ;;  %v2046_v58 = vld [vmem:[%s5088_s16 + $0x1e0] sm:$0xff]  ;;  %3383 = vmatpush1.bf16.msra.mxu1 %v3382_v50  ;;  %v2272_v50 = vld [vmem:[%s5098_s27 + $0xb0] sm:$0xff]  ;;  %v2295_v34 = vld [vmem:[%s5098_s27 + $0x168] sm:$0xff] }
 0x9e7   : > { %3401 = vmatprep.subr.bf16.mxu0 %v3400_v10  ;;  %v3386_v2 = vpack.c.bf16 %v2046_v58, %v2042_v57  ;;  %3385 = vmatprep.subr.bf16.mxu1 %v3384_v55  ;;  %v2256_v55 = vld [vmem:[%s5098_s27 + $0x30] sm:$0xff] }
 0x9ea   : > { %3403 = vmatpush1.bf16.msra.mxu0 %v3402_v14  ;;  %3387 = vmatpush1.bf16.msra.mxu1 %v3386_v2  ;;  %v2266_v14 = vld [vmem:[%s5098_s27 + $0x80] sm:$0xff] }
 0x9eb   : > { %3405 = vmatprep.subr.bf16.mxu0 %v3404_v22  ;;  %v3420_v16 = vpack.c.bf16 %v2267_v15, %v2266_v14  ;;  %v2282_v22 = vld [vmem:[%s5098_s27 + $0x100] sm:$0xff]  ;;  %v2276_v14 = vld [vmem:[%s5098_s27 + $0xd0] sm:$0xff] }
 0x9ec   : > { %v3454_v24 = vpack.c.bf16 %v2283_v23, %v2282_v22  ;;  %v2274_v2 = vld [vmem:[%s5098_s27 + $0xc0] sm:$0xff]  ;;  %v2292_v22 = vld [vmem:[%s5098_s27 + $0x150] sm:$0xff] }
 0x9ed   : > { %3421 = vmatprep.subr.bf16.mxu1 %v3420_v16  ;;  %v2308_v16 = vld [vmem:[%s5098_s27 + $0x1d0] sm:$0xff] }
 0x9ee   : > { %3407 = vmatpush1.bf16.msra.mxu0 %v3406_v26  ;;  %v2300_v26 = vld [vmem:[%s5098_s27 + $0x190] sm:$0xff] }
 0x9ef   : > { %3409 = vmatprep.subr.bf16.mxu0 %v3408_v35  ;;  %v3456_v35 = vpack.c.bf16 %v2301_v29, %v2300_v26  ;;  %v2310_v29 = vld [vmem:[%s5098_s27 + $0x1e0] sm:$0xff] }
 0x9f2   : > { %3411 = vmatpush1.bf16.msra.mxu0 %v3410_v41  ;;  %v3428_v41 = vpack.c.bf16 %v2271_v38, %v2270_v37  ;;  %v2280_v37 = vld [vmem:[%s5098_s27 + $0xf0] sm:$0xff]  ;;  %v2281_v38 = vld [vmem:[%s5098_s27 + $0xf8] sm:$0xff] }
 0x9f3   : > { %3413 = vmatprep.subr.bf16.mxu0 %v3412_v46  ;;  %v3430_v46 = vpack.c.bf16 %v2255_v44, %v2254_v43  ;;  %v3448_v42 = vpack.c.bf16 %v2281_v38, %v2280_v37  ;;  %v2313_v43 = vld [vmem:[%s5098_s27 + $0x1f8] sm:$0xff]  ;;  %v2264_v44 = vld [vmem:[%s5098_s27 + $0x70] sm:$0xff] }
 0x9f6   : > { %3415 = vmatpush1.bf16.msra.mxu0 %v3414_v54  ;;  %v2305_v54 = vld [vmem:[%s5098_s27 + $0x1b8] sm:$0xff] }
 0x9f7   : > { %v3464_v57 = vpack.c.bf16 %v2305_v54, %v2304_v52  ;;  %v2066_v52 = vsub.s32 3, %v5191_v62 }
 0xa6a   : > { %v1962_v59 = vpop.xlane.xlu0 %1961 }
 0xa6b   : > { %v1963_v60 = vmul.f32 0.0078125, %v1962_v59  ;;  %v3416_v59 = vpack.c.bf16 %v2049_v56, %v2045_v53  ;;  %v3432_v53 = vpack.c.bf16 %v2273_v51, %v2272_v50  ;;  %v2257_v56 = vld [vmem:[%s5098_s27 + $0x38] sm:$0xff]  ;;  %v3482_v50 = vpack.c.bf16 %v2297_v48, %v2296_v47 }
 0xa6c   : > { %v3434_v58 = vpack.c.bf16 %v2257_v56, %v2256_v55  ;;  %v2050_v51 = vld [vmem:[%s5095_s7] sm:$0xf] }
 0xa6d   : > { %v5285_v61 = vsub.f32 %v5257_v21, %v1963_v60  ;;  %v2044_v60 = vld [vmem:[%s5088_s16 + $0x1d0] sm:$0xff]  ;;  %3417 = vmatprep.subr.bf16.mxu0 %v3416_v59  ;;  %v2288_v59 = vld [vmem:[%s5098_s27 + $0x130] sm:$0xff]  ;;  %v2063_v54 = vrot.slane %v2050_v51, %v1379_v3  ;;  %v2059_v55 = vrot.slane %v2050_v51, %v1375_v1  ;;  %v2067_v56 = vrot.slane %v2050_v51, %v2066_v52 }
 0xa6f   : > { %v1965_v0 = vmul.f32 %v5285_v61, %v5285_v61 }
 0xa71   : > { %1966 = vadd.xlane.f32.xlu0 %v1965_v0  ;;  %v2048_v0 = vld [vmem:[%s5088_s16 + $0x1f0] sm:$0xff] }
 0xa72   : > { %v3418_v4 = vpack.c.bf16 %v2048_v0, %v2044_v60  ;;  %v2289_v60 = vld [vmem:[%s5098_s27 + $0x138] sm:$0xff] }
 0xa73   : > { %v3466_v0 = vpack.c.bf16 %v2289_v60, %v2288_v59 }
 0xa74   : > { %3419 = vmatpush1.bf16.msra.mxu0 %v3418_v4  ;;  %v2275_v4 = vld [vmem:[%s5098_s27 + $0xc8] sm:$0xff] }
 0xafe   : > { %v1967_v5 = vpop.xlane.xlu0 %1966 }
 0xaff   : > { %v1968_v6 = vmul.f32 0.0078125, %v1967_v5  ;;  %v2306_v5 = vld [vmem:[%s5098_s27 + $0x1c0] sm:$0xff] }
 0xb01   : > { %v1969_v7 = vadd.f32 1e-06, %v1968_v6  ;;  %v3436_v6 = vpack.c.bf16 %v2275_v4, %v2274_v2 }
 0xb03   : > { %3697 = vrsqrt.f32 %v1969_v7  ;;  %v2307_v7 = vld [vmem:[%s5098_s27 + $0x1c8] sm:$0xff] }
 0xb0d   : > { %v3698_v8 = vpop.eup %3697 }
 0xb0e   : > { %v1971_v10 = vmul.f32 %v3698_v8, %v5285_v61  ;;  %v3452_v61 = vpack.c.bf16 %v2299_v17, %v2298_v40  ;;  %v2258_v8 = vld [vmem:[%s5098_s27 + $0x40] sm:$0xff]  ;;  %v2277_v40 = vld [vmem:[%s5098_s27 + $0xd8] sm:$0xff] }
 0xb0f   : > { %v2309_v17 = vld [vmem:[%s5098_s27 + $0x1d8] sm:$0xff]  ;;  %v3440_v18 = vpack.c.bf16 %v2277_v40, %v2276_v14 }
 0xb10   : > { %v1978_v12 = vmul.f32 %v2862_v9, %v1971_v10  ;;  %3453 = vmatprep.subr.bf16.mxu0 %v3452_v61  ;;  %v2259_v9 = vld [vmem:[%s5098_s27 + $0x48] sm:$0xff]  ;;  %v3468_v10 = vpack.c.bf16 %v2307_v7, %v2306_v5  ;;  %v3472_v19 = vpack.c.bf16 %v2309_v17, %v2308_v16  ;;  %v2260_v61 = vld [vmem:[%s5098_s27 + $0x50] sm:$0xff] }
 0xb12   : > { %v1985_v13 = vadd.f32 %v2863_v11, %v1978_v12  ;;  %v3438_v11 = vpack.c.bf16 %v2259_v9, %v2258_v8  ;;  %v2290_v12 = vld [vmem:[%s5098_s27 + $0x140] sm:$0xff] }
 0xb14   : > { %2137 = vmatmul.mubr.f32.vlgmr.msra.gmra.mrb[10].mxu1 %v1985_v13  ;;  %2208 = vmatmul.mubr.f32.vlgmr.msra.gmra.mrb[4].mxu0 %v1985_v13  ;;  %v2291_v13 = vld [vmem:[%s5098_s27 + $0x148] sm:$0xff] }
 0xb15   : > { %3423 = vmatpush3.bf16.msra.mxu1 %v3422_v20  ;;  %3455 = vmatpush3.bf16.msra.mxu0 %v3454_v24  ;;  %v3470_v15 = vpack.c.bf16 %v2291_v13, %v2290_v12  ;;  %v2261_v20 = vld [vmem:[%s5098_s27 + $0x58] sm:$0xff] }
 0xb16   : > { %3425 = vmatprep.subr.bf16.mxu1 %v3424_v27  ;;  %3457 = vmatprep.subr.bf16.mxu0 %v3456_v35  ;;  %v3442_v23 = vpack.c.bf16 %v2261_v20, %v2260_v61  ;;  %v2293_v24 = vld [vmem:[%s5098_s27 + $0x158] sm:$0xff]  ;;  %v3444_v27 = vpack.c.bf16 %v2279_v25, %v2278_v28  ;;  %v3476_v35 = vpack.c.bf16 %v2311_v30, %v2310_v29 }
 0xb17   : > { %v3474_v26 = vpack.c.bf16 %v2293_v24, %v2292_v22 }
 0xb19   : > { %3427 = vmatpush3.bf16.msra.mxu1 %v3426_v32  ;;  %3459 = vmatpush3.bf16.msra.mxu0 %v3458_v36  ;;  %v2263_v32 = vld [vmem:[%s5098_s27 + $0x68] sm:$0xff] }
 0xb1a   : > { %3429 = vmatprep.subr.bf16.mxu1 %v3428_v41  ;;  %3461 = vmatprep.subr.bf16.mxu0 %v3460_v45  ;;  %v3446_v36 = vpack.c.bf16 %v2263_v32, %v2262_v31  ;;  %v3478_v41 = vpack.c.bf16 %v2295_v34, %v2294_v33  ;;  %v2265_v45 = vld [vmem:[%s5098_s27 + $0x78] sm:$0xff] }
 0xb1d   : > { %3431 = vmatpush3.bf16.msra.mxu1 %v3430_v46  ;;  %3463 = vmatpush3.bf16.msra.mxu0 %v3462_v49  ;;  %v3480_v46 = vpack.c.bf16 %v2313_v43, %v2312_v39  ;;  %v3450_v49 = vpack.c.bf16 %v2265_v45, %v2264_v44  ;;  %v2864_v45 = vld [vmem:[%s871_s10] ss:$0 sm:$0xff] }
 0xb1e   : > { %3433 = vmatprep.subr.bf16.mxu1 %v3432_v53  ;;  %3465 = vmatprep.subr.bf16.mxu0 %v3464_v57  ;;  %v2055_v53 = vrot.slane %v2050_v51, %v1371_v63 }
 0xb21   : > { %3435 = vmatpush3.bf16.msra.mxu1 %v3434_v58  ;;  %3467 = vmatpush3.bf16.msra.mxu0 %v3466_v0 }
 0xb22   : > { %3437 = vmatprep.subr.bf16.mxu1 %v3436_v6  ;;  %3469 = vmatprep.subr.bf16.mxu0 %v3468_v10 }
 0xb25   : > { %3439 = vmatpush3.bf16.msra.mxu1 %v3438_v11  ;;  %3471 = vmatpush3.bf16.msra.mxu0 %v3470_v15 }
 0xb26   : > { %3441 = vmatprep.subr.bf16.mxu1 %v3440_v18  ;;  %3473 = vmatprep.subr.bf16.mxu0 %v3472_v19 }
 0xb29   : > { %3443 = vmatpush3.bf16.msra.mxu1 %v3442_v23  ;;  %3475 = vmatpush3.bf16.msra.mxu0 %v3474_v26 }
 0xb2a   : > { %3445 = vmatprep.subr.bf16.mxu1 %v3444_v27  ;;  %3477 = vmatprep.subr.bf16.mxu0 %v3476_v35 }
 0xb2d   : > { %3447 = vmatpush3.bf16.msra.mxu1 %v3446_v36  ;;  %3479 = vmatpush3.bf16.msra.mxu0 %v3478_v41 }
 0xb2e   : > { %3449 = vmatprep.subr.bf16.mxu1 %v3448_v42  ;;  %3481 = vmatprep.subr.bf16.mxu0 %v3480_v46 }
 0xb31   : > { %3451 = vmatpush3.bf16.msra.mxu1 %v3450_v49  ;;  %3483 = vmatpush3.bf16.msra.mxu0 %v3482_v50 }
 0xbe7   : > { %v2138_v57 = vpop.f32.mrb[10].mxu1  ;;  %v2209_v58 = vpop.f32.mrb[4].mxu0 }
 0xbe8   : > { %v2139_v59 = vadd.f32 %v2138_v57, %v2055_v53  ;;  %v2210_v60 = vadd.f32 %v2209_v58, %v2063_v54  ;;  %v2140_v0 = vpop.f32.mrb[11].mxu1  ;;  %v2211_v2 = vpop.f32.mrb[5].mxu0 }
 0xbe9   : > { %v2141_v4 = vadd.f32 %v2140_v0, %v2059_v55  ;;  %v2212_v5 = vadd.f32 %v2211_v2, %v2067_v56 }
 0xbea   : > { %v2214_v6 = vmul.f32 %v2139_v59, %v2139_v59  ;;  %v2216_v7 = vmul.f32 %v2210_v60, %v2210_v60 }
 0xbeb   : > { %v2215_v8 = vmul.f32 %v2141_v4, %v2141_v4  ;;  %v2217_v9 = vmul.f32 %v2212_v5, %v2212_v5 }
 0xbec   : > { %v2218_v63 = vmul.f32 %v2214_v6, %v2139_v59  ;;  %v2220_v10 = vmul.f32 %v2216_v7, %v2210_v60 }
 0xbed   : > { %v2219_v11 = vmul.f32 %v2215_v8, %v2141_v4  ;;  %v2221_v3 = vmul.f32 %v2217_v9, %v2212_v5 }
 0xbee   : > { %v2222_v12 = vmul.f32 0.044715, %v2218_v63  ;;  %v2224_v62 = vmul.f32 0.044715, %v2220_v10 }
 0xbef   : > { %v2223_v1 = vmul.f32 0.044715, %v2219_v11  ;;  %v2225_v13 = vmul.f32 0.044715, %v2221_v3 }
 0xbf0   : > { %v2226_v14 = vadd.f32 %v2222_v12, %v2139_v59  ;;  %v2228_v15 = vadd.f32 %v2224_v62, %v2210_v60 }
 0xbf1   : > { %v2227_v40 = vadd.f32 %v2223_v1, %v2141_v4  ;;  %v2229_v16 = vadd.f32 %v2225_v13, %v2212_v5 }
 0xbf2   : > { %v2230_v17 = vmul.f32 0.7978846, %v2226_v14  ;;  %v2232_v18 = vmul.f32 0.7978846, %v2228_v15 }
 0xbf3   : > { %v2231_v19 = vmul.f32 0.7978846, %v2227_v40  ;;  %v2233_v61 = vmul.f32 0.7978846, %v2229_v16 }
 0xbf4   : > { %3699 = vtanh.f32 %v2230_v17 }
 0xbf5   : > { %3701 = vtanh.f32 %v2232_v18 }
 0xbf6   : > { %3703 = vtanh.f32 %v2231_v19 }
 0xbf7   : > { %3705 = vtanh.f32 %v2233_v61 }
 0xbfe   : > { %v3700_v20 = vpop.eup %3699 }
 0xbff   : > { %v3702_v22 = vpop.eup %3701  ;;  %v2238_v23 = vadd.f32 1.0, %v3700_v20 }
 0xc00   : > { %v3704_v24 = vpop.eup %3703  ;;  %v2240_v28 = vadd.f32 1.0, %v3702_v22 }
 0xc01   : > { %v3706_v25 = vpop.eup %3705  ;;  %v2239_v26 = vadd.f32 1.0, %v3704_v24  ;;  %v2242_v29 = vmul.f32 0.5, %v2238_v23 }
 0xc02   : > { %v2241_v27 = vadd.f32 1.0, %v3706_v25  ;;  %v2244_v31 = vmul.f32 0.5, %v2240_v28 }
 0xc03   : > { %v2243_v30 = vmul.f32 0.5, %v2239_v26  ;;  %v2246_v34 = vmul.f32 %v2242_v29, %v2139_v59 }
 0xc04   : > { %v2245_v35 = vmul.f32 0.5, %v2241_v27  ;;  %v2248_v36 = vmul.f32 %v2244_v31, %v2210_v60 }
 0xc05   : > { %v2247_v32 = vmul.f32 %v2243_v30, %v2141_v4 }
 0xc06   : > { %v2249_v33 = vmul.f32 %v2245_v35, %v2212_v5 }
 0xc07   : > { %2378 = vmatprep.mubr.f32.mxu1 %v2247_v32 }
 0xc08   : > { %2448 = vmatprep.mubr.f32.mxu0 %v2249_v33  ;;  %2379 = vmatmul.mubr.f32.vlgmr.msra.gmra.mrb[12].mxu1 %v2246_v34 }
 0xc09   : > { %2449 = vmatmul.mubr.f32.vlgmr.msra.gmra.mrb[6].mxu0 %v2248_v36 }
 0xcdb   : > { %v3052_v37 = vpop.f32.mrb[12].mxu1 }
 0xcdc   : > { %v3087_v38 = vpop.f32.mrb[6].mxu0  ;;  %v3053_v39 = vpop.f32.mrb[13].mxu1 }
 0xcdd   : > { %v3054_v41 = vadd.f32 %v3053_v39, %v3052_v37  ;;  %v3088_v42 = vpop.f32.mrb[7].mxu0 }
 0xcde   : > { %v3089_v43 = vadd.f32 %v3088_v42, %v3087_v38 }
 0xce0   : > { %v2451_v44 = vadd.f32 %v3089_v43, %v3054_v41  ;;  %2467 = sbr.rel (%p2865_p6) target bundleno = 3303 (0xce7), region = 148 }
 0xce2   : > { %v2454_v46 = vadd.f32 %v2451_v44, %v5257_v21 }
 0xce4   : > { %v2462_v47 = vadd.f32 %v2864_v45, %v2454_v46 }
 0xce6   : > { %2463 = vst [vmem:[#allocation2] sm:$0xff] %v2462_v47  ;;  %2468 = vst [vmem:[%s970_s24] sm:$0x1] (!%p2865_p6), %v2462_v47 }
 0xce7 PF: > { %s5630_s25 = sld [smem:[#allocation40_spill]]  ;;  %s2482_s17 = sshll.u32 %s970_s24, 4  ;;  %s2483_s17 = int_to_ptr.vmem [resolvable:$true] %s2482_s17 }
 0xce8   : > { %s5631_s20 = sld [smem:[#allocation63_spill]]  ;;  %s2470_s16 = scalar_lea.sflag [#allocation5], %s5032_s19 }
 0xce9   : > { %s4153_s8 = scalar_lea.vmem %s2483_s17, 16  ;;  %p5633_p3 = scmp.ne.s32.totalorder %s5590_s29, 0 }
 0xcea   : > { %p4154_p11 = scmp.ne.s32.totalorder %s2483_s17, %s4153_s8  ;;  %s4331_s7 = smov [#allocation27]  }
 0xceb   : > { %s4157_s12 = sshll.u32 %s4331_s7, 4  ;;  %s4158_s12 = int_to_ptr.vmem [resolvable:$false] %s4157_s12 }
 0xcec   : > { %p4155_p2 = pnand %p4154_p11, %p5633_p3  ;;  %s4159_s27 = scalar_lea.vmem %s4158_s12, 32 }
 0xced   : > { %s2866_s3 = sshll.u32 %s5630_s25, 4  ;;  %p4160_p0 = scmp.lt.s32.totalorder %s2483_s17, %s4158_s12 }
 0xcee   : > { %s5632_s30 = smov %s5631_s20  ;;  %s5416_s10 = scalar_lea.hbm %s5631_s20, %s2866_s3 }
 0xcef   : > { %p4156_p13 = pneg %p4155_p2  ;;  %p4161_p5 = scmp.lt.s32.totalorder %s4159_s27, %s4153_s8 }
 0xcf1   : > { %p4162_p8 = por %p4161_p5, %p4160_p0 }
 0xcf3   : > { %p4163_p1 = pnand %p4162_p8, %p4156_p13 }
 0xcf5   : > { %4166 = shalt.err (!%p4163_p1)
}
 0xcf6   : > { %s4167_s19 = scalar_lea.hbm %s5416_s10, 16  ;;  %s4171_s15 = scalar_lea.hbm %s5632_s30, 32 }
 0xcf7   : > { %p4168_p9 = scmp.ne.s32.totalorder %s5416_s10, %s4167_s19  ;;  %p4172_p7 = scmp.lt.u32.totalorder %s5416_s10, %s5632_s30 }
 0xcf8   : > { %p4173_p10 = scmp.lt.u32.totalorder %s4171_s15, %s4167_s19  ;;  %p4175_p11 = scmp.lt.u32.totalorder %s4167_s19, %s5416_s10 }
 0xcf9   : > { %p4169_p12 = pnand %p4168_p9, %p5633_p3 }
 0xcfa   : > { %p4174_p6 = por %p4173_p10, %p4172_p7 }
 0xcfb   : > { %p4170_p4 = pneg %p4169_p12 }
 0xcfc   : > { %p4176_p2 = por %p4175_p11, %p4174_p6 }
 0xcfe   : > { %p4177_p13 = pnand %p4176_p2, %p4170_p4 }
 0xd00   : > { %4180 = shalt.err (!%p4177_p13)
}
 0xd01   : > { %3527 = dma.vmem_to_hbm [thread:$0]  (%p5633_p3), %s2483_s17, 16, %s5416_s10, %s2470_s16  }
 0xd02 PF: > { %p3585_p0 = scmp.ge.s32.totalorder %s4303_s28, 2  ;;  %s2494_s0 = sand.u32 1, %s4275_s21  }
 0xd03   : > { %p5634_p5 = scmp.ne.s32.totalorder %s5592_s1, 0  ;;  %s2495_s25 = scalar_lea.sflag [#allocation5], %s2494_s0 }
 0xd05   : > { %p3577_p8 = pnand %p3585_p0, %p5634_p5 }
 0xd07   : > { %4258 = dma.done.wait (!%p3577_p8), %s2495_s25, 16  }
 0xd08   : > { %4260 = vsyncadd (!%p3577_p8), %s2495_s25, 4294967280  ;;  %s50_s28 = sadd.s32 1, %s4303_s28   ;;  %s5635_s3 = sld [smem:[#allocation37_spill]] }
 0xd09   : > { %p47_p1 = scmp.ge.s32.totalorder %s50_s28, 6   ;;  %s5636_s19 = sld [smem:[#allocation38_spill]] }
 0xd0a   : > { %s5637_s11 = smov %s5656_s18  ;;  %s5638_s29 = sld [smem:[#allocation47_spill]] }
 0xd0b   : > { %s5639_s25 = sld [smem:[#allocation41_spill]]  ;;  %s5640_s4 = sld [smem:[#allocation45_spill]] }
 0xd0c   : > { %s5641_s27 = sld [smem:[#allocation46_spill]]  ;;  %s5643_s20 = smov %s5637_s11 }
 0xd0d   : > { %s5644_s21 = smov %s4279_s22  ;;  %s5645_s22 = smov %s4283_s23 }
 0xd0e   : > { %s5642_s18 = smov %s5635_s3  ;;  %s5647_s24 = smov %s4295_s26 }
 0xd0f   :  { %49 = sbr.rel (!%p47_p1) target bundleno = 39 (0x27), region = 285 }
 0xd10   : > { %s5646_s23 = smov %s5638_s29 }
 0xd11   : > { %s5648_s26 = smov %s5640_s4 }
 0xd16   :  { %2499 = vsyncpa [#allocation4], 1 }
 0xd17   :  { %2501 = vsyncpa [#allocation4 + $0x1], 1 }
 0xd18   :  { %2502 = vsyncpa [#allocation7], 1 }
 0xd19   :  { %2503 = vsyncpa [#allocation10], 1 }
 0xd1a   :  { %2505 = vsyncpa [#allocation10 + $0x1], 1 }
 0xd1b   :  { %2506 = vsyncpa [#allocation13], 1 }
 0xd1c   :  { %2508 = vsyncpa [#allocation13 + $0x1], 1 }
 0xd1d   :  { %2509 = vsyncpa [#allocation16], 1 }
 0xd1e   :  { %2511 = vsyncpa [#allocation16 + $0x1], 1 }
 0xd1f   :  { %2512 = vsyncpa [#allocation19], 1 }
 0xd20   :  { %2514 = vsyncpa [#allocation19 + $0x1], 1 }
 0xd21   :  { %2515 = vsyncpa [#allocation22], 1 }
 0xd22   :  { %2517 = vsyncpa [#allocation22 + $0x1], 1 }
 0xd23   :  { %2518 = vsyncpa [#allocation25], 1 }
 0xd24   :  { %2520 = vsyncpa [#allocation25 + $0x1], 1 }
 0xd25   :  { %2521 = vsyncpa [#allocation5], 1 }
 0xd26   :  { %2523 = vsyncpa [#allocation5 + $0x1], 1 }

</bundles_post_ra>
